<compile_context>
chip_gen: v7x
topology: tpu7x:2x2x1
jax: 0.10.0
libtpu: 0.0.40
codegen_flags: <defaults>
</compile_context>

<pallas_src>
import math

import jax
import jax.numpy as jnp
from jax import lax
from jax.experimental import pallas as pl
from jax.experimental.pallas import tpu as pltpu

LANE = 128        # decoder output padded to the lane width for unmasked stores
NEG_INF = -1e30   # large finite negative used for masking (avoids inf - inf = NaN)


# ----------------------------- kernel -------------------------------------- #

def _layer_norm(x, w, b, eps=1e-5):
    # PyTorch nn.LayerNorm: biased variance, eps inside the sqrt. w, b are (1, D).
    mu = jnp.mean(x, axis=-1, keepdims=True)
    var = jnp.mean((x - mu) ** 2, axis=-1, keepdims=True)
    return (x - mu) * lax.rsqrt(var + eps) * w + b


def make_kernel(t_real):
    """t_real = true (unpadded) sequence length, closed over statically."""

    def kernel(idx_ref,                     # (N, 1)        int32 flattened token ids
               emb_ref,                     # (V, D)        token embedding table
               pos_ref,                     # (Tp, D)       positional embedding (zero-padded rows)
               aw_ref,                      # (4L, D, D)    packed q/k/v/out projection weights
               f1_ref,                      # (L, D, F)     FFN linear1 weight
               f2_ref,                      # (L, F, D)     FFN linear2 weight
               vec_ref,                     # (L, 10, W)    packed biases / LN params (W = max(D,F))
               dec_ref,                     # (D+1, Cpad)   decoder weight (rows 0..D-1) + bias (row D)
               o_ref):                      # (N, Cpad)     log-probs out
        n = idx_ref.shape[0]
        V, D = emb_ref.shape
        Tp = pos_ref.shape[0]               # power of two >= t_real
        F = f1_ref.shape[2]
        L = f1_ref.shape[0]
        scale = 1.0 / math.sqrt(D)          # 1 head -> head_dim == d_model

        f32 = jnp.float32

        # ---- embedding gather + positional add as one-hot matmuls (MXU) ----
        idx = idx_ref[...]                                              # (N, 1) int32
        vcol = lax.broadcasted_iota(jnp.int32, (n, V), 1)
        x = jnp.dot((idx == vcol).astype(f32), emb_ref[...],
                    preferred_element_type=f32)                         # (N, D)
        row = lax.broadcasted_iota(jnp.int32, (n, Tp), 0)
        tcol = lax.broadcasted_iota(jnp.int32, (n, Tp), 1)
        pos1h = ((row & (Tp - 1)) == tcol).astype(f32)                  # position within sequence
        x = x + jnp.dot(pos1h, pos_ref[...], preferred_element_type=f32)

        # ---- block-diagonal causal bias built in-kernel (Tp is a power of 2) ----
        r = lax.broadcasted_iota(jnp.int32, (n, n), 0)
        c = lax.broadcasted_iota(jnp.int32, (n, n), 1)
        same_seq = (r & ~(Tp - 1)) == (c & ~(Tp - 1))
        keep = (c <= r) & same_seq & ((c & (Tp - 1)) < t_real)          # causal, same seq, real key
        bias = jnp.where(keep, 0.0, NEG_INF).astype(f32)                # (N, N) additive bias

        for li in range(L):                                             # small L; unrolled at trace time
            vec = vec_ref[li]                                           # (10, W)
            qb, kb, vb, ob = vec[0:1, :D], vec[1:2, :D], vec[2:3, :D], vec[3:4, :D]
            n1w, n1b = vec[4:5, :D], vec[5:6, :D]
            l1b = vec[6:7, :F]
            l2b = vec[7:8, :D]
            n2w, n2b = vec[8:9, :D], vec[9:10, :D]

            # ---- single-head self-attention ----
            q = jnp.dot(x, aw_ref[4 * li + 0], preferred_element_type=f32) + qb
            k = jnp.dot(x, aw_ref[4 * li + 1], preferred_element_type=f32) + kb
            v = jnp.dot(x, aw_ref[4 * li + 2], preferred_element_type=f32) + vb
            q = q * scale                                               # fold 1/sqrt(D) into q

            # q @ k^T without materializing a transpose
            s = lax.dot_general(q, k, (((1,), (1,)), ((), ())),
                                preferred_element_type=f32) + bias
            s = s - jnp.max(s, axis=-1, keepdims=True)
            p = jnp.exp(s)
            den = jnp.sum(p, axis=-1, keepdims=True)
            inv = pl.reciprocal(den, approx=True)                       # EUP slot
            inv = inv * (2.0 - den * inv)                               # one Newton step -> f32-tight
            attn = p * inv

            ctx = jnp.dot(attn, v, preferred_element_type=f32)
            a_out = jnp.dot(ctx, aw_ref[4 * li + 3], preferred_element_type=f32) + ob

            # post-LN residual 1
            x = _layer_norm(x + a_out, n1w, n1b)

            # ---- feed-forward (ReLU) ----
            h = jnp.dot(x, f1_ref[li], preferred_element_type=f32) + l1b
            h = jnp.maximum(h, 0.0)
            ff = jnp.dot(h, f2_ref[li], preferred_element_type=f32) + l2b

            # post-LN residual 2
            x = _layer_norm(x + ff, n2w, n2b)

        # ---- decoder + log-softmax over the lane-padded class dim ----
        dec = dec_ref[...]                                              # (D+1, Cpad)
        logits = jnp.dot(x, dec[:D, :], preferred_element_type=f32) + dec[D:D + 1, :]
        m = jnp.max(logits, axis=-1, keepdims=True)
        lse = m + jnp.log(jnp.sum(jnp.exp(logits - m), axis=-1, keepdims=True))
        o_ref[...] = logits - lse                                       # (N, Cpad) lane-dense store

    return kernel


# ----------------------------- wrapper -------------------------------------- #

def _whole_spec(a):
    """Whole-array VMEM-resident input (constant block index across the grid)."""
    zeros = (0,) * a.ndim
    return pl.BlockSpec(a.shape, lambda i, _z=zeros: _z)


def _next_pow2(n):
    return 1 << max(3, (n - 1).bit_length())   # >= 8 and a power of two


def prepare_params(p, max_len):
    """One-time conversion of PyTorch-layout params into kernel-ready packed layout."""
    L, _, D = p["in_proj_w"].shape
    F = p["lin1_w"].shape[1]
    C = p["dec_w"].shape[0]
    c_pad = ((C + LANE - 1) // LANE) * LANE
    W = max(D, F)
    tp_max = _next_pow2(max_len)

    in_w, in_b = p["in_proj_w"], p["in_proj_b"]
    # nn.MultiheadAttention in_proj rows are [q; k; v]; transpose (out,in)->(in,out)
    qw = jnp.swapaxes(in_w[:, 0 * D:1 * D, :], 1, 2)
    kw = jnp.swapaxes(in_w[:, 1 * D:2 * D, :], 1, 2)
    vw = jnp.swapaxes(in_w[:, 2 * D:3 * D, :], 1, 2)
    ow = jnp.swapaxes(p["out_proj_w"], 1, 2)
    attn_w = jnp.stack([qw, kw, vw, ow], axis=1).reshape(4 * L, D, D)

    def pad_w(v):                                     # (L, n) -> (L, W)
        return jnp.pad(v, ((0, 0), (0, W - v.shape[1])))

    vecs = jnp.stack([
        pad_w(in_b[:, 0 * D:1 * D]), pad_w(in_b[:, 1 * D:2 * D]), pad_w(in_b[:, 2 * D:3 * D]),
        pad_w(p["out_proj_b"]),
        pad_w(p["norm1_w"]), pad_w(p["norm1_b"]),
        pad_w(p["lin1_b"]),
        pad_w(p["lin2_b"]),
        pad_w(p["norm2_w"]), pad_w(p["norm2_b"]),
    ], axis=1)                                        # (L, 10, W)

    dec_w = jnp.pad(p["dec_w"].T, ((0, 0), (0, c_pad - C)))                      # (D, Cpad)
    dec_b = jnp.pad(p["dec_b"].reshape(1, -1), ((0, 0), (0, c_pad - C)),
                    constant_values=NEG_INF)                                     # (1, Cpad)
    dec = jnp.concatenate([dec_w, dec_b], axis=0)                                # (D+1, Cpad)

    pos = p["pos"]
    if tp_max > pos.shape[0]:
        pos = jnp.pad(pos, ((0, tp_max - pos.shape[0]), (0, 0)))                 # zero rows for padding

    return {
        "emb": p["emb"], "pos": pos,
        "attn_w": attn_w,
        "ffn1_w": jnp.swapaxes(p["lin1_w"], 1, 2),
        "ffn2_w": jnp.swapaxes(p["lin2_w"], 1, 2),
        "vecs": vecs, "dec": dec,
        "num_classes": C,
    }


def transformer_forward(indices, kp, num_blocks=None):
    """indices: (T,) or (B, T) int32 token ids. Returns (T, C) or (B, T, C) log-probs."""
    single = indices.ndim == 1
    if single:
        indices = indices[None, :]
    B, T = indices.shape
    C = kp["num_classes"]
    c_pad = kp["dec"].shape[1]

    Tp = _next_pow2(T)                      # power-of-two padded sequence length
    assert Tp <= kp["pos"].shape[0], "sequence longer than positional table"
    pos = kp["pos"] if Tp == kp["pos"].shape[0] else kp["pos"][:Tp]

    if num_blocks is None:
        # two big steps keep both v7x TensorCores busy; one step on odd batches
        num_blocks = 2 if (B % 2 == 0 and B >= 2) else 1
    assert B % num_blocks == 0
    nb_rows = (B // num_blocks) * Tp
    n_rows = B * Tp

    # flatten (and pad) the int32 indices; padded slots use id 0 (rows discarded,
    # and padded key positions are masked inside the kernel).
    idx = jnp.pad(indices.astype(jnp.int32), ((0, 0), (0, Tp - T))).reshape(n_rows, 1)

    weights = (kp["emb"], pos, kp["attn_w"], kp["ffn1_w"], kp["ffn2_w"],
               kp["vecs"], kp["dec"])

    in_specs = [pl.BlockSpec((nb_rows, 1), lambda i: (i, 0))] \
             + [_whole_spec(a) for a in weights]
    out_spec = pl.BlockSpec((nb_rows, c_pad), lambda i: (i, 0))

    out = pl.pallas_call(
        make_kernel(T),
        out_shape=jax.ShapeDtypeStruct((n_rows, c_pad), jnp.float32),
        grid=(num_blocks,),
        in_specs=in_specs,
        out_specs=out_spec,
        compiler_params=pltpu.CompilerParams(
            dimension_semantics=("parallel",),       # megacore sharding on v7x
            vmem_limit_bytes=32 * 1024 * 1024),
    )(idx, *weights)

    # drop sequence / class padding (cheap consumer-side slice)
    out = out.reshape(B, Tp, c_pad)[:, :T, :C]
    return out[0] if single else out


# --------------------- deterministic parameter init ------------------------- #

def init_params(key, vocab, d_model, d_internal, num_classes, num_layers, max_len):
    ks = jax.random.split(key, 10)
    s = 0.05
    f32 = jnp.float32
    return {
        "emb":        jax.random.normal(ks[0], (vocab, d_model), f32) * s,
        "pos":        jax.random.normal(ks[1], (max_len, d_model), f32) * s,
        "in_proj_w":  jax.random.normal(ks[2], (num_layers, 3 * d_model, d_model), f32) * s,
        "in_proj_b":  jax.random.normal(ks[3], (num_layers, 3 * d_model), f32) * s,
        "out_proj_w": jax.random.normal(ks[4], (num_layers, d_model, d_model), f32) * s,
        "out_proj_b": jnp.zeros((num_layers, d_model), f32),
        "norm1_w":    jnp.ones((num_layers, d_model), f32),
        "norm1_b":    jnp.zeros((num_layers, d_model), f32),
        "lin1_w":     jax.random.normal(ks[5], (num_layers, d_internal, d_model), f32) * s,
        "lin1_b":     jax.random.normal(ks[6], (num_layers, d_internal), f32) * s,
        "lin2_w":     jax.random.normal(ks[7], (num_layers, d_model, d_internal), f32) * s,
        "lin2_b":     jnp.zeros((num_layers, d_model), f32),
        "norm2_w":    jnp.ones((num_layers, d_model), f32),
        "norm2_b":    jnp.zeros((num_layers, d_model), f32),
        "dec_w":      jax.random.normal(ks[8], (num_classes, d_model), f32) * s,
        "dec_b":      jnp.zeros((num_classes,), f32),
    }


# --------------------------- pure-JAX reference ------------------------------ #

def reference_forward(indices, p):
    T = indices.shape[0]
    D = p["emb"].shape[1]
    x = p["emb"][indices] + p["pos"][:T]
    mask = jnp.tril(jnp.ones((T, T), bool))
    for l in range(p["in_proj_w"].shape[0]):
        qkv = x @ p["in_proj_w"][l].T + p["in_proj_b"][l]
        q, k, v = qkv[:, :D], qkv[:, D:2 * D], qkv[:, 2 * D:]
        q = q * (1.0 / math.sqrt(D))                # PyTorch MHA scales q before the matmul
        s = q @ k.T
        s = jnp.where(mask, s, -jnp.inf)
        attn = jax.nn.softmax(s, axis=-1)
        a = (attn @ v) @ p["out_proj_w"][l].T + p["out_proj_b"][l]
        x = x + a
        x = (x - x.mean(-1, keepdims=True)) / jnp.sqrt(x.var(-1, keepdims=True) + 1e-5) \
            * p["norm1_w"][l] + p["norm1_b"][l]
        h = jax.nn.relu(x @ p["lin1_w"][l].T + p["lin1_b"][l])
        ff = h @ p["lin2_w"][l].T + p["lin2_b"][l]
        x = x + ff
        x = (x - x.mean(-1, keepdims=True)) / jnp.sqrt(x.var(-1, keepdims=True) + 1e-5) \
            * p["norm2_w"][l] + p["norm2_b"][l]
    logits = x @ p["dec_w"].T + p["dec_b"]
    return jax.nn.log_softmax(logits, axis=-1)


# --------------------------------- main -------------------------------------- #

if __name__ == "__main__":
    # module-consistent shapes: 27-char vocab, 20-token sequences, 27 classes
    VOCAB, T, D_MODEL, D_INTERNAL, NUM_CLASSES, NUM_LAYERS = 27, 20, 32, 64, 27, 2
    BATCH = 8

    key = jax.random.PRNGKey(0)
    k_idx, k_par = jax.random.split(key)
    indices = jax.random.randint(k_idx, (BATCH, T), 0, VOCAB, dtype=jnp.int32)
    params = init_params(k_par, VOCAB, D_MODEL, D_INTERNAL, NUM_CLASSES, NUM_LAYERS, max_len=T)
    kparams = prepare_params(params, max_len=T)      # one-time layout transform

    # batched path (whole batch in 1-2 grid blocks)
    out = jax.block_until_ready(transformer_forward(indices, kparams))
    assert out.shape == (BATCH, T, NUM_CLASSES)

    ref = jnp.stack([reference_forward(indices[b], params) for b in range(BATCH)])
    # margin over f32 exactness for MXU default-precision rounding differences and
    # the Newton-refined approximate reciprocal in the softmax.
    assert jnp.allclose(out, ref, atol=5e-4, rtol=5e-4), "mismatch vs pure-JAX reference"
    assert jnp.allclose(jnp.exp(out).sum(-1), 1.0, atol=1e-4)

    # module-equivalent single-sequence path (20 x 27 log-probs)
    out1 = jax.block_until_ready(transformer_forward(indices[0], kparams))
    assert out1.shape == (T, NUM_CLASSES)
    assert jnp.allclose(out1, ref[0], atol=5e-4, rtol=5e-4)

    print("KERNEL_OK")
</pallas_src>

<mosaic_0001>
module attributes {stable_mosaic.version = 11 : i64} {
  func.func @kernel(%arg0: i32, %arg1: memref<128x1xi32, #tpu.memory_space<vmem>>, %arg2: memref<27x32xf32, #tpu.memory_space<vmem>>, %arg3: memref<32x32xf32, #tpu.memory_space<vmem>>, %arg4: memref<8x32x32xf32, #tpu.memory_space<vmem>>, %arg5: memref<2x32x64xf32, #tpu.memory_space<vmem>>, %arg6: memref<2x64x32xf32, #tpu.memory_space<vmem>>, %arg7: memref<2x10x64xf32, #tpu.memory_space<vmem>>, %arg8: memref<33x128xf32, #tpu.memory_space<vmem>>, %arg9: memref<128x128xf32, #tpu.memory_space<vmem>>) attributes {dimension_semantics = [#tpu.dimension_semantics<parallel>], iteration_bounds = array<i64: 2>, scalar_prefetch = 0 : i64, scratch_operands = 0 : i64, tpu.core_type = #tpu.core_type<tc>, window_params = [{transform_indices = @transform_0, window_bounds = array<i64: 128, 1>}, {pipeline_mode = #tpu.pipeline_mode<synchronous>, transform_indices = @transform_1, window_bounds = array<i64: 27, 32>}, {pipeline_mode = #tpu.pipeline_mode<synchronous>, transform_indices = @transform_2, window_bounds = array<i64: 32, 32>}, {pipeline_mode = #tpu.pipeline_mode<synchronous>, transform_indices = @transform_3, window_bounds = array<i64: 8, 32, 32>}, {pipeline_mode = #tpu.pipeline_mode<synchronous>, transform_indices = @transform_4, window_bounds = array<i64: 2, 32, 64>}, {pipeline_mode = #tpu.pipeline_mode<synchronous>, transform_indices = @transform_5, window_bounds = array<i64: 2, 64, 32>}, {pipeline_mode = #tpu.pipeline_mode<synchronous>, transform_indices = @transform_6, window_bounds = array<i64: 2, 10, 64>}, {pipeline_mode = #tpu.pipeline_mode<synchronous>, transform_indices = @transform_7, window_bounds = array<i64: 33, 128>}, {transform_indices = @transform_8, window_bounds = array<i64: 128, 128>}]} {
    %c0 = arith.constant 0 : index
    %c0_0 = arith.constant 0 : index
    %0 = vector.load %arg1[%c0, %c0_0] : memref<128x1xi32, #tpu.memory_space<vmem>>, vector<128x1xi32>
    %1 = tpu.iota {dimensions = array<i32: 1>} : vector<128x27xi32>
    %2 = vector.broadcast %0 : vector<128x1xi32> to vector<128x27xi32>
    %3 = arith.cmpi eq, %2, %1 : vector<128x27xi32>
    %4 = arith.extui %3 : vector<128x27xi1> to vector<128x27xi32>
    %5 = arith.sitofp %4 : vector<128x27xi32> to vector<128x27xf32>
    %c0_1 = arith.constant 0 : index
    %c0_2 = arith.constant 0 : index
    %6 = vector.load %arg2[%c0_1, %c0_2] : memref<27x32xf32, #tpu.memory_space<vmem>>, vector<27x32xf32>
    %cst = arith.constant dense<0.000000e+00> : vector<128x32xf32>
    %7 = tpu.matmul %5, %6, %cst {dimension_numbers = #tpu.dot_dimension_numbers<[1], [0], [0], [1], [0, 0, 1, 1], [], []>} : vector<128x27xf32>, vector<27x32xf32>, vector<128x32xf32> -> vector<128x32xf32>
    %8 = tpu.iota {dimensions = array<i32: 0>} : vector<128x32xi32>
    %9 = tpu.iota {dimensions = array<i32: 1>} : vector<128x32xi32>
    %c31_i32 = arith.constant 31 : i32
    %10 = vector.broadcast %c31_i32 : i32 to vector<128x32xi32>
    %11 = arith.andi %8, %10 : vector<128x32xi32>
    %12 = arith.cmpi eq, %11, %9 : vector<128x32xi32>
    %13 = arith.extui %12 : vector<128x32xi1> to vector<128x32xi32>
    %14 = arith.sitofp %13 : vector<128x32xi32> to vector<128x32xf32>
    %c0_3 = arith.constant 0 : index
    %c0_4 = arith.constant 0 : index
    %15 = vector.load %arg3[%c0_3, %c0_4] : memref<32x32xf32, #tpu.memory_space<vmem>>, vector<32x32xf32>
    %cst_5 = arith.constant dense<0.000000e+00> : vector<128x32xf32>
    %16 = tpu.matmul %14, %15, %cst_5 {dimension_numbers = #tpu.dot_dimension_numbers<[1], [0], [0], [1], [0, 0, 1, 1], [], []>} : vector<128x32xf32>, vector<32x32xf32>, vector<128x32xf32> -> vector<128x32xf32>
    %17 = arith.addf %7, %16 : vector<128x32xf32>
    %18 = tpu.iota {dimensions = array<i32: 0>} : vector<128x128xi32>
    %19 = tpu.iota {dimensions = array<i32: 1>} : vector<128x128xi32>
    %c-32_i32 = arith.constant -32 : i32
    %20 = vector.broadcast %c-32_i32 : i32 to vector<128x128xi32>
    %21 = arith.andi %18, %20 : vector<128x128xi32>
    %c-32_i32_6 = arith.constant -32 : i32
    %22 = vector.broadcast %c-32_i32_6 : i32 to vector<128x128xi32>
    %23 = arith.andi %19, %22 : vector<128x128xi32>
    %24 = arith.cmpi eq, %21, %23 : vector<128x128xi32>
    %25 = arith.cmpi sle, %19, %18 : vector<128x128xi32>
    %26 = arith.andi %25, %24 : vector<128x128xi1>
    %c31_i32_7 = arith.constant 31 : i32
    %27 = vector.broadcast %c31_i32_7 : i32 to vector<128x128xi32>
    %28 = arith.andi %19, %27 : vector<128x128xi32>
    %c20_i32 = arith.constant 20 : i32
    %29 = vector.broadcast %c20_i32 : i32 to vector<128x128xi32>
    %30 = arith.cmpi slt, %28, %29 : vector<128x128xi32>
    %31 = arith.andi %26, %30 : vector<128x128xi1>
    %cst_8 = arith.constant 0.000000e+00 : f32
    %cst_9 = arith.constant -1.000000e+30 : f32
    %32 = vector.broadcast %cst_8 : f32 to vector<128x128xf32>
    %33 = vector.broadcast %cst_9 : f32 to vector<128x128xf32>
    %34 = arith.select %31, %32, %33 : vector<128x128xi1>, vector<128x128xf32>
    %c0_10 = arith.constant 0 : index
    %c0_11 = arith.constant 0 : index
    %c0_12 = arith.constant 0 : index
    %35 = vector.load %arg7[%c0_10, %c0_11, %c0_12] : memref<2x10x64xf32, #tpu.memory_space<vmem>>, vector<1x10x64xf32>
    %36 = vector.shape_cast %35 : vector<1x10x64xf32> to vector<10x64xf32>
    %37 = vector.extract_strided_slice %36 {offsets = [0, 0], sizes = [1, 32], strides = [1, 1]} : vector<10x64xf32> to vector<1x32xf32>
    %38 = vector.extract_strided_slice %36 {offsets = [1, 0], sizes = [1, 32], strides = [1, 1]} : vector<10x64xf32> to vector<1x32xf32>
    %39 = vector.extract_strided_slice %36 {offsets = [2, 0], sizes = [1, 32], strides = [1, 1]} : vector<10x64xf32> to vector<1x32xf32>
    %40 = vector.extract_strided_slice %36 {offsets = [3, 0], sizes = [1, 32], strides = [1, 1]} : vector<10x64xf32> to vector<1x32xf32>
    %41 = vector.extract_strided_slice %36 {offsets = [4, 0], sizes = [1, 32], strides = [1, 1]} : vector<10x64xf32> to vector<1x32xf32>
    %42 = vector.extract_strided_slice %36 {offsets = [5, 0], sizes = [1, 32], strides = [1, 1]} : vector<10x64xf32> to vector<1x32xf32>
    %43 = vector.extract_strided_slice %36 {offsets = [6, 0], sizes = [1, 64], strides = [1, 1]} : vector<10x64xf32> to vector<1x64xf32>
    %44 = vector.extract_strided_slice %36 {offsets = [7, 0], sizes = [1, 32], strides = [1, 1]} : vector<10x64xf32> to vector<1x32xf32>
    %45 = vector.extract_strided_slice %36 {offsets = [8, 0], sizes = [1, 32], strides = [1, 1]} : vector<10x64xf32> to vector<1x32xf32>
    %46 = vector.extract_strided_slice %36 {offsets = [9, 0], sizes = [1, 32], strides = [1, 1]} : vector<10x64xf32> to vector<1x32xf32>
    %c0_13 = arith.constant 0 : index
    %c0_14 = arith.constant 0 : index
    %c0_15 = arith.constant 0 : index
    %47 = vector.load %arg4[%c0_13, %c0_14, %c0_15] : memref<8x32x32xf32, #tpu.memory_space<vmem>>, vector<1x32x32xf32>
    %48 = vector.shape_cast %47 : vector<1x32x32xf32> to vector<32x32xf32>
    %cst_16 = arith.constant dense<0.000000e+00> : vector<128x32xf32>
    %49 = tpu.matmul %17, %48, %cst_16 {dimension_numbers = #tpu.dot_dimension_numbers<[1], [0], [0], [1], [0, 0, 1, 1], [], []>} : vector<128x32xf32>, vector<32x32xf32>, vector<128x32xf32> -> vector<128x32xf32>
    %50 = vector.broadcast %37 : vector<1x32xf32> to vector<128x32xf32>
    %51 = arith.addf %49, %50 : vector<128x32xf32>
    %c1 = arith.constant 1 : index
    %c0_17 = arith.constant 0 : index
    %c0_18 = arith.constant 0 : index
    %52 = vector.load %arg4[%c1, %c0_17, %c0_18] : memref<8x32x32xf32, #tpu.memory_space<vmem>>, vector<1x32x32xf32>
    %53 = vector.shape_cast %52 : vector<1x32x32xf32> to vector<32x32xf32>
    %cst_19 = arith.constant dense<0.000000e+00> : vector<128x32xf32>
    %54 = tpu.matmul %17, %53, %cst_19 {dimension_numbers = #tpu.dot_dimension_numbers<[1], [0], [0], [1], [0, 0, 1, 1], [], []>} : vector<128x32xf32>, vector<32x32xf32>, vector<128x32xf32> -> vector<128x32xf32>
    %55 = vector.broadcast %38 : vector<1x32xf32> to vector<128x32xf32>
    %56 = arith.addf %54, %55 : vector<128x32xf32>
    %c2 = arith.constant 2 : index
    %c0_20 = arith.constant 0 : index
    %c0_21 = arith.constant 0 : index
    %57 = vector.load %arg4[%c2, %c0_20, %c0_21] : memref<8x32x32xf32, #tpu.memory_space<vmem>>, vector<1x32x32xf32>
    %58 = vector.shape_cast %57 : vector<1x32x32xf32> to vector<32x32xf32>
    %cst_22 = arith.constant dense<0.000000e+00> : vector<128x32xf32>
    %59 = tpu.matmul %17, %58, %cst_22 {dimension_numbers = #tpu.dot_dimension_numbers<[1], [0], [0], [1], [0, 0, 1, 1], [], []>} : vector<128x32xf32>, vector<32x32xf32>, vector<128x32xf32> -> vector<128x32xf32>
    %60 = vector.broadcast %39 : vector<1x32xf32> to vector<128x32xf32>
    %61 = arith.addf %59, %60 : vector<128x32xf32>
    %cst_23 = arith.constant 0.176776692 : f32
    %62 = vector.broadcast %cst_23 : f32 to vector<128x32xf32>
    %63 = arith.mulf %51, %62 : vector<128x32xf32>
    %cst_24 = arith.constant dense<0.000000e+00> : vector<128x128xf32>
    %64 = tpu.matmul %63, %56, %cst_24 {dimension_numbers = #tpu.dot_dimension_numbers<[1], [1], [0], [0], [0, 0, 1, 0], [], []>} : vector<128x32xf32>, vector<128x32xf32>, vector<128x128xf32> -> vector<128x128xf32>
    %65 = arith.addf %64, %34 : vector<128x128xf32>
    %cst_25 = arith.constant dense<0xFF800000> : vector<128xf32>
    %66 = vector.multi_reduction <maximumf>, %65, %cst_25 [1] : vector<128x128xf32> to vector<128xf32>
    %67 = vector.shape_cast %66 : vector<128xf32> to vector<128x1xf32>
    %68 = vector.broadcast %67 : vector<128x1xf32> to vector<128x128xf32>
    %69 = arith.subf %65, %68 : vector<128x128xf32>
    %70 = math.exp %69 : vector<128x128xf32>
    %cst_26 = arith.constant dense<0.000000e+00> : vector<128xf32>
    %71 = vector.multi_reduction <add>, %70, %cst_26 [1] : vector<128x128xf32> to vector<128xf32>
    %72 = vector.shape_cast %71 : vector<128xf32> to vector<128x1xf32>
    %73 = tpu.reciprocal %72 {approx = true} : vector<128x1xf32> -> vector<128x1xf32>
    %74 = arith.mulf %72, %73 : vector<128x1xf32>
    %cst_27 = arith.constant 2.000000e+00 : f32
    %75 = vector.broadcast %cst_27 : f32 to vector<128x1xf32>
    %76 = arith.subf %75, %74 : vector<128x1xf32>
    %77 = arith.mulf %73, %76 : vector<128x1xf32>
    %78 = vector.broadcast %77 : vector<128x1xf32> to vector<128x128xf32>
    %79 = arith.mulf %70, %78 : vector<128x128xf32>
    %cst_28 = arith.constant dense<0.000000e+00> : vector<128x32xf32>
    %80 = tpu.matmul %79, %61, %cst_28 {dimension_numbers = #tpu.dot_dimension_numbers<[1], [0], [0], [1], [0, 0, 1, 1], [], []>} : vector<128x128xf32>, vector<128x32xf32>, vector<128x32xf32> -> vector<128x32xf32>
    %c3 = arith.constant 3 : index
    %c0_29 = arith.constant 0 : index
    %c0_30 = arith.constant 0 : index
    %81 = vector.load %arg4[%c3, %c0_29, %c0_30] : memref<8x32x32xf32, #tpu.memory_space<vmem>>, vector<1x32x32xf32>
    %82 = vector.shape_cast %81 : vector<1x32x32xf32> to vector<32x32xf32>
    %cst_31 = arith.constant dense<0.000000e+00> : vector<128x32xf32>
    %83 = tpu.matmul %80, %82, %cst_31 {dimension_numbers = #tpu.dot_dimension_numbers<[1], [0], [0], [1], [0, 0, 1, 1], [], []>} : vector<128x32xf32>, vector<32x32xf32>, vector<128x32xf32> -> vector<128x32xf32>
    %84 = vector.broadcast %40 : vector<1x32xf32> to vector<128x32xf32>
    %85 = arith.addf %83, %84 : vector<128x32xf32>
    %86 = arith.addf %17, %85 : vector<128x32xf32>
    %cst_32 = arith.constant dense<0.000000e+00> : vector<128xf32>
    %87 = vector.multi_reduction <add>, %86, %cst_32 [1] : vector<128x32xf32> to vector<128xf32>
    %88 = vector.shape_cast %87 : vector<128xf32> to vector<128x1xf32>
    %cst_33 = arith.constant 3.200000e+01 : f32
    %89 = vector.broadcast %cst_33 : f32 to vector<128x1xf32>
    %90 = arith.divf %88, %89 : vector<128x1xf32>
    %91 = vector.broadcast %90 : vector<128x1xf32> to vector<128x32xf32>
    %92 = arith.subf %86, %91 : vector<128x32xf32>
    %93 = arith.mulf %92, %92 : vector<128x32xf32>
    %cst_34 = arith.constant dense<0.000000e+00> : vector<128xf32>
    %94 = vector.multi_reduction <add>, %93, %cst_34 [1] : vector<128x32xf32> to vector<128xf32>
    %95 = vector.shape_cast %94 : vector<128xf32> to vector<128x1xf32>
    %cst_35 = arith.constant 3.200000e+01 : f32
    %96 = vector.broadcast %cst_35 : f32 to vector<128x1xf32>
    %97 = arith.divf %95, %96 : vector<128x1xf32>
    %98 = vector.broadcast %90 : vector<128x1xf32> to vector<128x32xf32>
    %99 = arith.subf %86, %98 : vector<128x32xf32>
    %cst_36 = arith.constant 9.99999974E-6 : f32
    %100 = vector.broadcast %cst_36 : f32 to vector<128x1xf32>
    %101 = arith.addf %97, %100 : vector<128x1xf32>
    %102 = math.rsqrt %101 : vector<128x1xf32>
    %103 = vector.broadcast %102 : vector<128x1xf32> to vector<128x32xf32>
    %104 = arith.mulf %99, %103 : vector<128x32xf32>
    %105 = vector.broadcast %41 : vector<1x32xf32> to vector<128x32xf32>
    %106 = arith.mulf %104, %105 : vector<128x32xf32>
    %107 = vector.broadcast %42 : vector<1x32xf32> to vector<128x32xf32>
    %108 = arith.addf %106, %107 : vector<128x32xf32>
    %c0_37 = arith.constant 0 : index
    %c0_38 = arith.constant 0 : index
    %c0_39 = arith.constant 0 : index
    %109 = vector.load %arg5[%c0_37, %c0_38, %c0_39] : memref<2x32x64xf32, #tpu.memory_space<vmem>>, vector<1x32x64xf32>
    %110 = vector.shape_cast %109 : vector<1x32x64xf32> to vector<32x64xf32>
    %cst_40 = arith.constant dense<0.000000e+00> : vector<128x64xf32>
    %111 = tpu.matmul %108, %110, %cst_40 {dimension_numbers = #tpu.dot_dimension_numbers<[1], [0], [0], [1], [0, 0, 1, 1], [], []>} : vector<128x32xf32>, vector<32x64xf32>, vector<128x64xf32> -> vector<128x64xf32>
    %112 = vector.broadcast %43 : vector<1x64xf32> to vector<128x64xf32>
    %113 = arith.addf %111, %112 : vector<128x64xf32>
    %cst_41 = arith.constant 0.000000e+00 : f32
    %114 = vector.broadcast %cst_41 : f32 to vector<128x64xf32>
    %115 = arith.maximumf %113, %114 : vector<128x64xf32>
    %c0_42 = arith.constant 0 : index
    %c0_43 = arith.constant 0 : index
    %c0_44 = arith.constant 0 : index
    %116 = vector.load %arg6[%c0_42, %c0_43, %c0_44] : memref<2x64x32xf32, #tpu.memory_space<vmem>>, vector<1x64x32xf32>
    %117 = vector.shape_cast %116 : vector<1x64x32xf32> to vector<64x32xf32>
    %cst_45 = arith.constant dense<0.000000e+00> : vector<128x32xf32>
    %118 = tpu.matmul %115, %117, %cst_45 {dimension_numbers = #tpu.dot_dimension_numbers<[1], [0], [0], [1], [0, 0, 1, 1], [], []>} : vector<128x64xf32>, vector<64x32xf32>, vector<128x32xf32> -> vector<128x32xf32>
    %119 = vector.broadcast %44 : vector<1x32xf32> to vector<128x32xf32>
    %120 = arith.addf %118, %119 : vector<128x32xf32>
    %121 = arith.addf %108, %120 : vector<128x32xf32>
    %cst_46 = arith.constant dense<0.000000e+00> : vector<128xf32>
    %122 = vector.multi_reduction <add>, %121, %cst_46 [1] : vector<128x32xf32> to vector<128xf32>
    %123 = vector.shape_cast %122 : vector<128xf32> to vector<128x1xf32>
    %cst_47 = arith.constant 3.200000e+01 : f32
    %124 = vector.broadcast %cst_47 : f32 to vector<128x1xf32>
    %125 = arith.divf %123, %124 : vector<128x1xf32>
    %126 = vector.broadcast %125 : vector<128x1xf32> to vector<128x32xf32>
    %127 = arith.subf %121, %126 : vector<128x32xf32>
    %128 = arith.mulf %127, %127 : vector<128x32xf32>
    %cst_48 = arith.constant dense<0.000000e+00> : vector<128xf32>
    %129 = vector.multi_reduction <add>, %128, %cst_48 [1] : vector<128x32xf32> to vector<128xf32>
    %130 = vector.shape_cast %129 : vector<128xf32> to vector<128x1xf32>
    %cst_49 = arith.constant 3.200000e+01 : f32
    %131 = vector.broadcast %cst_49 : f32 to vector<128x1xf32>
    %132 = arith.divf %130, %131 : vector<128x1xf32>
    %133 = vector.broadcast %125 : vector<128x1xf32> to vector<128x32xf32>
    %134 = arith.subf %121, %133 : vector<128x32xf32>
    %cst_50 = arith.constant 9.99999974E-6 : f32
    %135 = vector.broadcast %cst_50 : f32 to vector<128x1xf32>
    %136 = arith.addf %132, %135 : vector<128x1xf32>
    %137 = math.rsqrt %136 : vector<128x1xf32>
    %138 = vector.broadcast %137 : vector<128x1xf32> to vector<128x32xf32>
    %139 = arith.mulf %134, %138 : vector<128x32xf32>
    %140 = vector.broadcast %45 : vector<1x32xf32> to vector<128x32xf32>
    %141 = arith.mulf %139, %140 : vector<128x32xf32>
    %142 = vector.broadcast %46 : vector<1x32xf32> to vector<128x32xf32>
    %143 = arith.addf %141, %142 : vector<128x32xf32>
    %c1_51 = arith.constant 1 : index
    %c0_52 = arith.constant 0 : index
    %c0_53 = arith.constant 0 : index
    %144 = vector.load %arg7[%c1_51, %c0_52, %c0_53] : memref<2x10x64xf32, #tpu.memory_space<vmem>>, vector<1x10x64xf32>
    %145 = vector.shape_cast %144 : vector<1x10x64xf32> to vector<10x64xf32>
    %146 = vector.extract_strided_slice %145 {offsets = [0, 0], sizes = [1, 32], strides = [1, 1]} : vector<10x64xf32> to vector<1x32xf32>
    %147 = vector.extract_strided_slice %145 {offsets = [1, 0], sizes = [1, 32], strides = [1, 1]} : vector<10x64xf32> to vector<1x32xf32>
    %148 = vector.extract_strided_slice %145 {offsets = [2, 0], sizes = [1, 32], strides = [1, 1]} : vector<10x64xf32> to vector<1x32xf32>
    %149 = vector.extract_strided_slice %145 {offsets = [3, 0], sizes = [1, 32], strides = [1, 1]} : vector<10x64xf32> to vector<1x32xf32>
    %150 = vector.extract_strided_slice %145 {offsets = [4, 0], sizes = [1, 32], strides = [1, 1]} : vector<10x64xf32> to vector<1x32xf32>
    %151 = vector.extract_strided_slice %145 {offsets = [5, 0], sizes = [1, 32], strides = [1, 1]} : vector<10x64xf32> to vector<1x32xf32>
    %152 = vector.extract_strided_slice %145 {offsets = [6, 0], sizes = [1, 64], strides = [1, 1]} : vector<10x64xf32> to vector<1x64xf32>
    %153 = vector.extract_strided_slice %145 {offsets = [7, 0], sizes = [1, 32], strides = [1, 1]} : vector<10x64xf32> to vector<1x32xf32>
    %154 = vector.extract_strided_slice %145 {offsets = [8, 0], sizes = [1, 32], strides = [1, 1]} : vector<10x64xf32> to vector<1x32xf32>
    %155 = vector.extract_strided_slice %145 {offsets = [9, 0], sizes = [1, 32], strides = [1, 1]} : vector<10x64xf32> to vector<1x32xf32>
    %c4 = arith.constant 4 : index
    %c0_54 = arith.constant 0 : index
    %c0_55 = arith.constant 0 : index
    %156 = vector.load %arg4[%c4, %c0_54, %c0_55] : memref<8x32x32xf32, #tpu.memory_space<vmem>>, vector<1x32x32xf32>
    %157 = vector.shape_cast %156 : vector<1x32x32xf32> to vector<32x32xf32>
    %cst_56 = arith.constant dense<0.000000e+00> : vector<128x32xf32>
    %158 = tpu.matmul %143, %157, %cst_56 {dimension_numbers = #tpu.dot_dimension_numbers<[1], [0], [0], [1], [0, 0, 1, 1], [], []>} : vector<128x32xf32>, vector<32x32xf32>, vector<128x32xf32> -> vector<128x32xf32>
    %159 = vector.broadcast %146 : vector<1x32xf32> to vector<128x32xf32>
    %160 = arith.addf %158, %159 : vector<128x32xf32>
    %c5 = arith.constant 5 : index
    %c0_57 = arith.constant 0 : index
    %c0_58 = arith.constant 0 : index
    %161 = vector.load %arg4[%c5, %c0_57, %c0_58] : memref<8x32x32xf32, #tpu.memory_space<vmem>>, vector<1x32x32xf32>
    %162 = vector.shape_cast %161 : vector<1x32x32xf32> to vector<32x32xf32>
    %cst_59 = arith.constant dense<0.000000e+00> : vector<128x32xf32>
    %163 = tpu.matmul %143, %162, %cst_59 {dimension_numbers = #tpu.dot_dimension_numbers<[1], [0], [0], [1], [0, 0, 1, 1], [], []>} : vector<128x32xf32>, vector<32x32xf32>, vector<128x32xf32> -> vector<128x32xf32>
    %164 = vector.broadcast %147 : vector<1x32xf32> to vector<128x32xf32>
    %165 = arith.addf %163, %164 : vector<128x32xf32>
    %c6 = arith.constant 6 : index
    %c0_60 = arith.constant 0 : index
    %c0_61 = arith.constant 0 : index
    %166 = vector.load %arg4[%c6, %c0_60, %c0_61] : memref<8x32x32xf32, #tpu.memory_space<vmem>>, vector<1x32x32xf32>
    %167 = vector.shape_cast %166 : vector<1x32x32xf32> to vector<32x32xf32>
    %cst_62 = arith.constant dense<0.000000e+00> : vector<128x32xf32>
    %168 = tpu.matmul %143, %167, %cst_62 {dimension_numbers = #tpu.dot_dimension_numbers<[1], [0], [0], [1], [0, 0, 1, 1], [], []>} : vector<128x32xf32>, vector<32x32xf32>, vector<128x32xf32> -> vector<128x32xf32>
    %169 = vector.broadcast %148 : vector<1x32xf32> to vector<128x32xf32>
    %170 = arith.addf %168, %169 : vector<128x32xf32>
    %cst_63 = arith.constant 0.176776692 : f32
    %171 = vector.broadcast %cst_63 : f32 to vector<128x32xf32>
    %172 = arith.mulf %160, %171 : vector<128x32xf32>
    %cst_64 = arith.constant dense<0.000000e+00> : vector<128x128xf32>
    %173 = tpu.matmul %172, %165, %cst_64 {dimension_numbers = #tpu.dot_dimension_numbers<[1], [1], [0], [0], [0, 0, 1, 0], [], []>} : vector<128x32xf32>, vector<128x32xf32>, vector<128x128xf32> -> vector<128x128xf32>
    %174 = arith.addf %173, %34 : vector<128x128xf32>
    %cst_65 = arith.constant dense<0xFF800000> : vector<128xf32>
    %175 = vector.multi_reduction <maximumf>, %174, %cst_65 [1] : vector<128x128xf32> to vector<128xf32>
    %176 = vector.shape_cast %175 : vector<128xf32> to vector<128x1xf32>
    %177 = vector.broadcast %176 : vector<128x1xf32> to vector<128x128xf32>
    %178 = arith.subf %174, %177 : vector<128x128xf32>
    %179 = math.exp %178 : vector<128x128xf32>
    %cst_66 = arith.constant dense<0.000000e+00> : vector<128xf32>
    %180 = vector.multi_reduction <add>, %179, %cst_66 [1] : vector<128x128xf32> to vector<128xf32>
    %181 = vector.shape_cast %180 : vector<128xf32> to vector<128x1xf32>
    %182 = tpu.reciprocal %181 {approx = true} : vector<128x1xf32> -> vector<128x1xf32>
    %183 = arith.mulf %181, %182 : vector<128x1xf32>
    %cst_67 = arith.constant 2.000000e+00 : f32
    %184 = vector.broadcast %cst_67 : f32 to vector<128x1xf32>
    %185 = arith.subf %184, %183 : vector<128x1xf32>
    %186 = arith.mulf %182, %185 : vector<128x1xf32>
    %187 = vector.broadcast %186 : vector<128x1xf32> to vector<128x128xf32>
    %188 = arith.mulf %179, %187 : vector<128x128xf32>
    %cst_68 = arith.constant dense<0.000000e+00> : vector<128x32xf32>
    %189 = tpu.matmul %188, %170, %cst_68 {dimension_numbers = #tpu.dot_dimension_numbers<[1], [0], [0], [1], [0, 0, 1, 1], [], []>} : vector<128x128xf32>, vector<128x32xf32>, vector<128x32xf32> -> vector<128x32xf32>
    %c7 = arith.constant 7 : index
    %c0_69 = arith.constant 0 : index
    %c0_70 = arith.constant 0 : index
    %190 = vector.load %arg4[%c7, %c0_69, %c0_70] : memref<8x32x32xf32, #tpu.memory_space<vmem>>, vector<1x32x32xf32>
    %191 = vector.shape_cast %190 : vector<1x32x32xf32> to vector<32x32xf32>
    %cst_71 = arith.constant dense<0.000000e+00> : vector<128x32xf32>
    %192 = tpu.matmul %189, %191, %cst_71 {dimension_numbers = #tpu.dot_dimension_numbers<[1], [0], [0], [1], [0, 0, 1, 1], [], []>} : vector<128x32xf32>, vector<32x32xf32>, vector<128x32xf32> -> vector<128x32xf32>
    %193 = vector.broadcast %149 : vector<1x32xf32> to vector<128x32xf32>
    %194 = arith.addf %192, %193 : vector<128x32xf32>
    %195 = arith.addf %143, %194 : vector<128x32xf32>
    %cst_72 = arith.constant dense<0.000000e+00> : vector<128xf32>
    %196 = vector.multi_reduction <add>, %195, %cst_72 [1] : vector<128x32xf32> to vector<128xf32>
    %197 = vector.shape_cast %196 : vector<128xf32> to vector<128x1xf32>
    %cst_73 = arith.constant 3.200000e+01 : f32
    %198 = vector.broadcast %cst_73 : f32 to vector<128x1xf32>
    %199 = arith.divf %197, %198 : vector<128x1xf32>
    %200 = vector.broadcast %199 : vector<128x1xf32> to vector<128x32xf32>
    %201 = arith.subf %195, %200 : vector<128x32xf32>
    %202 = arith.mulf %201, %201 : vector<128x32xf32>
    %cst_74 = arith.constant dense<0.000000e+00> : vector<128xf32>
    %203 = vector.multi_reduction <add>, %202, %cst_74 [1] : vector<128x32xf32> to vector<128xf32>
    %204 = vector.shape_cast %203 : vector<128xf32> to vector<128x1xf32>
    %cst_75 = arith.constant 3.200000e+01 : f32
    %205 = vector.broadcast %cst_75 : f32 to vector<128x1xf32>
    %206 = arith.divf %204, %205 : vector<128x1xf32>
    %207 = vector.broadcast %199 : vector<128x1xf32> to vector<128x32xf32>
    %208 = arith.subf %195, %207 : vector<128x32xf32>
    %cst_76 = arith.constant 9.99999974E-6 : f32
    %209 = vector.broadcast %cst_76 : f32 to vector<128x1xf32>
    %210 = arith.addf %206, %209 : vector<128x1xf32>
    %211 = math.rsqrt %210 : vector<128x1xf32>
    %212 = vector.broadcast %211 : vector<128x1xf32> to vector<128x32xf32>
    %213 = arith.mulf %208, %212 : vector<128x32xf32>
    %214 = vector.broadcast %150 : vector<1x32xf32> to vector<128x32xf32>
    %215 = arith.mulf %213, %214 : vector<128x32xf32>
    %216 = vector.broadcast %151 : vector<1x32xf32> to vector<128x32xf32>
    %217 = arith.addf %215, %216 : vector<128x32xf32>
    %c1_77 = arith.constant 1 : index
    %c0_78 = arith.constant 0 : index
    %c0_79 = arith.constant 0 : index
    %218 = vector.load %arg5[%c1_77, %c0_78, %c0_79] : memref<2x32x64xf32, #tpu.memory_space<vmem>>, vector<1x32x64xf32>
    %219 = vector.shape_cast %218 : vector<1x32x64xf32> to vector<32x64xf32>
    %cst_80 = arith.constant dense<0.000000e+00> : vector<128x64xf32>
    %220 = tpu.matmul %217, %219, %cst_80 {dimension_numbers = #tpu.dot_dimension_numbers<[1], [0], [0], [1], [0, 0, 1, 1], [], []>} : vector<128x32xf32>, vector<32x64xf32>, vector<128x64xf32> -> vector<128x64xf32>
    %221 = vector.broadcast %152 : vector<1x64xf32> to vector<128x64xf32>
    %222 = arith.addf %220, %221 : vector<128x64xf32>
    %cst_81 = arith.constant 0.000000e+00 : f32
    %223 = vector.broadcast %cst_81 : f32 to vector<128x64xf32>
    %224 = arith.maximumf %222, %223 : vector<128x64xf32>
    %c1_82 = arith.constant 1 : index
    %c0_83 = arith.constant 0 : index
    %c0_84 = arith.constant 0 : index
    %225 = vector.load %arg6[%c1_82, %c0_83, %c0_84] : memref<2x64x32xf32, #tpu.memory_space<vmem>>, vector<1x64x32xf32>
    %226 = vector.shape_cast %225 : vector<1x64x32xf32> to vector<64x32xf32>
    %cst_85 = arith.constant dense<0.000000e+00> : vector<128x32xf32>
    %227 = tpu.matmul %224, %226, %cst_85 {dimension_numbers = #tpu.dot_dimension_numbers<[1], [0], [0], [1], [0, 0, 1, 1], [], []>} : vector<128x64xf32>, vector<64x32xf32>, vector<128x32xf32> -> vector<128x32xf32>
    %228 = vector.broadcast %153 : vector<1x32xf32> to vector<128x32xf32>
    %229 = arith.addf %227, %228 : vector<128x32xf32>
    %230 = arith.addf %217, %229 : vector<128x32xf32>
    %cst_86 = arith.constant dense<0.000000e+00> : vector<128xf32>
    %231 = vector.multi_reduction <add>, %230, %cst_86 [1] : vector<128x32xf32> to vector<128xf32>
    %232 = vector.shape_cast %231 : vector<128xf32> to vector<128x1xf32>
    %cst_87 = arith.constant 3.200000e+01 : f32
    %233 = vector.broadcast %cst_87 : f32 to vector<128x1xf32>
    %234 = arith.divf %232, %233 : vector<128x1xf32>
    %235 = vector.broadcast %234 : vector<128x1xf32> to vector<128x32xf32>
    %236 = arith.subf %230, %235 : vector<128x32xf32>
    %237 = arith.mulf %236, %236 : vector<128x32xf32>
    %cst_88 = arith.constant dense<0.000000e+00> : vector<128xf32>
    %238 = vector.multi_reduction <add>, %237, %cst_88 [1] : vector<128x32xf32> to vector<128xf32>
    %239 = vector.shape_cast %238 : vector<128xf32> to vector<128x1xf32>
    %cst_89 = arith.constant 3.200000e+01 : f32
    %240 = vector.broadcast %cst_89 : f32 to vector<128x1xf32>
    %241 = arith.divf %239, %240 : vector<128x1xf32>
    %242 = vector.broadcast %234 : vector<128x1xf32> to vector<128x32xf32>
    %243 = arith.subf %230, %242 : vector<128x32xf32>
    %cst_90 = arith.constant 9.99999974E-6 : f32
    %244 = vector.broadcast %cst_90 : f32 to vector<128x1xf32>
    %245 = arith.addf %241, %244 : vector<128x1xf32>
    %246 = math.rsqrt %245 : vector<128x1xf32>
    %247 = vector.broadcast %246 : vector<128x1xf32> to vector<128x32xf32>
    %248 = arith.mulf %243, %247 : vector<128x32xf32>
    %249 = vector.broadcast %154 : vector<1x32xf32> to vector<128x32xf32>
    %250 = arith.mulf %248, %249 : vector<128x32xf32>
    %251 = vector.broadcast %155 : vector<1x32xf32> to vector<128x32xf32>
    %252 = arith.addf %250, %251 : vector<128x32xf32>
    %c0_91 = arith.constant 0 : index
    %c0_92 = arith.constant 0 : index
    %253 = vector.load %arg8[%c0_91, %c0_92] : memref<33x128xf32, #tpu.memory_space<vmem>>, vector<33x128xf32>
    %254 = vector.extract_strided_slice %253 {offsets = [0, 0], sizes = [32, 128], strides = [1, 1]} : vector<33x128xf32> to vector<32x128xf32>
    %cst_93 = arith.constant dense<0.000000e+00> : vector<128x128xf32>
    %255 = tpu.matmul %252, %254, %cst_93 {dimension_numbers = #tpu.dot_dimension_numbers<[1], [0], [0], [1], [0, 0, 1, 1], [], []>} : vector<128x32xf32>, vector<32x128xf32>, vector<128x128xf32> -> vector<128x128xf32>
    %256 = vector.extract_strided_slice %253 {offsets = [32, 0], sizes = [1, 128], strides = [1, 1]} : vector<33x128xf32> to vector<1x128xf32>
    %257 = vector.broadcast %256 : vector<1x128xf32> to vector<128x128xf32>
    %258 = arith.addf %255, %257 : vector<128x128xf32>
    %cst_94 = arith.constant dense<0xFF800000> : vector<128xf32>
    %259 = vector.multi_reduction <maximumf>, %258, %cst_94 [1] : vector<128x128xf32> to vector<128xf32>
    %260 = vector.shape_cast %259 : vector<128xf32> to vector<128x1xf32>
    %261 = vector.broadcast %260 : vector<128x1xf32> to vector<128x128xf32>
    %262 = arith.subf %258, %261 : vector<128x128xf32>
    %263 = math.exp %262 : vector<128x128xf32>
    %cst_95 = arith.constant dense<0.000000e+00> : vector<128xf32>
    %264 = vector.multi_reduction <add>, %263, %cst_95 [1] : vector<128x128xf32> to vector<128xf32>
    %265 = vector.shape_cast %264 : vector<128xf32> to vector<128x1xf32>
    %266 = math.log %265 : vector<128x1xf32>
    %267 = arith.addf %260, %266 : vector<128x1xf32>
    %268 = vector.broadcast %267 : vector<128x1xf32> to vector<128x128xf32>
    %269 = arith.subf %258, %268 : vector<128x128xf32>
    %c0_96 = arith.constant 0 : index
    %c0_97 = arith.constant 0 : index
    %270 = vector.load %arg9[%c0_96, %c0_97] : memref<128x128xf32, #tpu.memory_space<vmem>>, vector<128x128xf32>
    tpu.vector_store %arg9[%c0_96, %c0_97], %269 {strides = array<i32>} : memref<128x128xf32, #tpu.memory_space<vmem>>, vector<128x128xf32>,
    return
  }
  func.func @transform_0(%arg0: i32) -> (i32, i32) {
    %c0_i32 = arith.constant 0 : i32
    %c0_i32_0 = arith.constant 0 : i32
    return %arg0, %c0_i32 : i32, i32
  }
  func.func @transform_1(%arg0: i32) -> (i32, i32) {
    %c0_i32 = arith.constant 0 : i32
    %c0_i32_0 = arith.constant 0 : i32
    %c0_i32_1 = arith.constant 0 : i32
    return %c0_i32, %c0_i32_0 : i32, i32
  }
  func.func @transform_2(%arg0: i32) -> (i32, i32) {
    %c0_i32 = arith.constant 0 : i32
    %c0_i32_0 = arith.constant 0 : i32
    %c0_i32_1 = arith.constant 0 : i32
    return %c0_i32, %c0_i32_0 : i32, i32
  }
  func.func @transform_3(%arg0: i32) -> (i32, i32, i32) {
    %c0_i32 = arith.constant 0 : i32
    %c0_i32_0 = arith.constant 0 : i32
    %c0_i32_1 = arith.constant 0 : i32
    %c0_i32_2 = arith.constant 0 : i32
    return %c0_i32, %c0_i32_0, %c0_i32_1 : i32, i32, i32
  }
  func.func @transform_4(%arg0: i32) -> (i32, i32, i32) {
    %c0_i32 = arith.constant 0 : i32
    %c0_i32_0 = arith.constant 0 : i32
    %c0_i32_1 = arith.constant 0 : i32
    %c0_i32_2 = arith.constant 0 : i32
    return %c0_i32, %c0_i32_0, %c0_i32_1 : i32, i32, i32
  }
  func.func @transform_5(%arg0: i32) -> (i32, i32, i32) {
    %c0_i32 = arith.constant 0 : i32
    %c0_i32_0 = arith.constant 0 : i32
    %c0_i32_1 = arith.constant 0 : i32
    %c0_i32_2 = arith.constant 0 : i32
    return %c0_i32, %c0_i32_0, %c0_i32_1 : i32, i32, i32
  }
  func.func @transform_6(%arg0: i32) -> (i32, i32, i32) {
    %c0_i32 = arith.constant 0 : i32
    %c0_i32_0 = arith.constant 0 : i32
    %c0_i32_1 = arith.constant 0 : i32
    %c0_i32_2 = arith.constant 0 : i32
    return %c0_i32, %c0_i32_0, %c0_i32_1 : i32, i32, i32
  }
  func.func @transform_7(%arg0: i32) -> (i32, i32) {
    %c0_i32 = arith.constant 0 : i32
    %c0_i32_0 = arith.constant 0 : i32
    %c0_i32_1 = arith.constant 0 : i32
    return %c0_i32, %c0_i32_0 : i32, i32
  }
  func.func @transform_8(%arg0: i32) -> (i32, i32) {
    %c0_i32 = arith.constant 0 : i32
    %c0_i32_0 = arith.constant 0 : i32
    return %arg0, %c0_i32 : i32, i32
  }
}

</mosaic_0001>

<bundles_post_ra>
// kernel: tpu_custom_call.1
= control target key start
LH: loop header
LB: loop body
LE: loop exit
PB: predicated region body
PF: predicated region fallthrough
CT: control target
= control target key end

     0   :  { %13 = vsyncpa [#allocation3], 0  ;;  %s11331_s0 = inlined_call_operand.vmem [shape: s32[256,1], index: 0, kind: input, shape index: {}]   ;;  %s11332_s1 = inlined_call_operand.vmem [shape: f32[27,32], index: 1, kind: input, shape index: {}]   ;;  %s11333_s2 = inlined_call_operand.vmem [shape: f32[32,32], index: 2, kind: input, shape index: {}]   ;;  %s11334_s3 = inlined_call_operand.vmem [shape: f32[8,32,32], index: 3, kind: input, shape index: {}]   ;;  %s11335_s4 = inlined_call_operand.vmem [shape: f32[2,32,64], index: 4, kind: input, shape index: {}]   ;;  %s11336_s5 = inlined_call_operand.vmem [shape: f32[2,64,32], index: 5, kind: input, shape index: {}]   ;;  %s11337_s6 = inlined_call_operand.vmem [shape: f32[2,10,64], index: 6, kind: input, shape index: {}]   ;;  %s11338_s7 = inlined_call_operand.vmem [shape: f32[33,128], index: 7, kind: input, shape index: {}]   ;;  %s11339_s8 = inlined_call_operand.hbm [shape: f32[256,128], index: 8, kind: output, shape index: {}]  }
   0x1   :  { %15 = vsyncpa [#allocation3 + $0x1], 0  ;;  %s8343_s27 = smov 0   ;;  %s8345_s28 = smov 0  }
   0x2   :  { %s8347_s29 = smov 0   ;;  %s8349_s30 = smov 0  }
   0x3 LB: > { %s8364_s9 = sadd.s32 4294967295, %s8289_s30   ;;  %s5991_s10 = sadd.s32 4294967294, %s8289_s30   ;;  %s8289_s30 = sphi %s8349_s30, %s11441_s30   ;;  %s8285_s29 = sphi %s8347_s29, %s11440_s29   ;;  %s8281_s28 = sphi %s8345_s28, %s11439_s28   ;;  %s8277_s27 = sphi %s8343_s27, %s11438_s27  }
   0x4   : > { %s8368_s11 = sadd.s32 1, %s8289_s30   ;;  %s201_s12 = sadd.s32 1, %s8285_s29 }
   0x5   : > { %s198_s13 = ssub.s32 %s8289_s30, %s8368_s11  ;;  %p211_p0 = scmp.ne.s32.totalorder %s8285_s29, %s8281_s28 }
   0x6   : > { %p199_p1 = scmp.eq.s32.totalorder %s198_s13, 0  ;;  %p212_p2 = scmp.eq.s32.totalorder %s8364_s9, 1 }
   0x7   : > { %p217_p3 = scmp.ne.s32.totalorder %s8281_s28, %s8277_s27  ;;  %p218_p4 = scmp.eq.s32.totalorder %s5991_s10, 1 }
   0x8   : > { %s8379_s14 = scalar_select %p199_p1, %s8285_s29, %s201_s12  }
   0x9   : > { %p8381_p5 = por %p212_p2, %p211_p0  ;;  %p8385_p6 = por %p218_p4, %p217_p3 }
   0xa   : > { %p5994_p7 = scmp.ge.s32.totalorder %s8289_s30, 1  ;;  %p266_p8 = scmp.lt.s32.totalorder %s8289_s30, 3 }
   0xc   : > { %p267_p9 = pnand %p5994_p7, %p266_p8 }
   0xe   : > { %270 = sbr.rel (%p267_p9) target bundleno = 5602 (0x15e2), region = 52 }
  0x15   : > { %s5996_s17 = sshll.u32 %s8364_s9, 4  ;;  %v506_v0 = vld [vmem:[%s11333_s2] sm:$0xff]  ;;  %v507_v1 = vld [vmem:[%s11333_s2 + $0x8] sm:$0xff]  ;;  %v508_v2 = vld [vmem:[%s11333_s2 + $0x10] sm:$0xff]  ;;  %v323_v3 = vlaneseq  ;;  %v8291_v4 = vmov 0   ;;  %vm510_vm0 = vcmask 261120  }
  0x16   : > { %7904 = vset.pattern.permute.xlu1 %v8291_v4  ;;  %7903 = vset.pattern.permute.xlu0 %v8291_v4  ;;  %p301_p10 = scmp.lt.s32.totalorder %s5996_s17, 31  ;;  %v7540_v5 = vpack.c.bf16 %v507_v1, %v506_v0  ;;  %v509_v6 = vld [vmem:[%s11333_s2 + $0x18] sm:$0xff]  ;;  %v421_v10 = vld [vmem:[%s11332_s1] sm:$0xff]  ;;  %v422_v11 = vld [vmem:[%s11332_s1 + $0x8] sm:$0xff]  ;;  %v8292_v23 = vmov 0.0   ;;  %vm753_vm4 = vcmask 1042432  }
  0x17   : > { %v7544_v7 = vpack.c.bf16 %v509_v6, %v508_v2  ;;  %v8404_v8 = vand.u32 127, %v323_v3  ;;  %v8406_v9 = vshrl.u32 %v323_v3, 7  ;;  %v7548_v18 = vpack.c.bf16 %v422_v11, %v421_v10  ;;  %v424_v20 = vld [vmem:[%s11332_s1 + $0x18] sm:$0x7]  ;;  %v423_v27 = vld [vmem:[%s11332_s1 + $0x10] sm:$0xff]  ;;  %s297_s13 = sand.u32 1, %s8281_s28  }
  0x18   : > { %s11443_s17 = smov (!%p301_p10, %s5996_s17), 31  ;;  %7541 = vmatprep.subr.bf16.mxu0 %v7540_v5  ;;  %7838 = vmatprep.subr.bf16.mxu1 %v7540_v5  ;;  %v7552_v33 = vpack.c.bf16 %v424_v20, %v423_v27  ;;  %vm8293_vm7 = vmmov 1   ;;  %v6099_v27 = vld [vmem:[%s11334_s3 + $0x40] sm:$0xff]  ;;  %s6383_s20 = sshll.u32 %s8364_s9, 11 }
  0x19   : > { %7543 = vmatpush3.bf16.msra.mxu0 %v7540_v5  ;;  %v442_v12 = vand.u32 31, %v8406_v9  ;;  %v8416_v13 = vadd.s32 8, %v8406_v9  ;;  %v8419_v14 = vadd.s32 16, %v8406_v9  ;;  %v8422_v15 = vadd.s32 24, %v8406_v9  ;;  %7840 = vmatpush3.bf16.msra.mxu1 %v7540_v5  ;;  %s5997_s18 = sshll.u32 %s11443_s17, 3  ;;  %vm8465_vm8 = vmpackc.low %vm753_vm4, %vm8293_vm7  ;;  %s11281_s23 = scalar_lea.hbm %s11339_s8, %s6383_s20 }
  0x1a   : > { %7545 = vmatprep.subr.bf16.mxu0 %v7544_v7  ;;  %v8425_v16 = vadd.s32 32, %v8406_v9  ;;  %7839 = vmatprep.subr.bf16.mxu1 %v7544_v7  ;;  %s8430_s21 = scalar_lea.vmem %s11331_s0, %s5997_s18  ;;  %v8443_v26 = vadd.s32 40, %v8406_v9  ;;  %v8452_v29 = vadd.s32 48, %v8406_v9  ;;  %v8462_v36 = vadd.s32 56, %v8406_v9  ;;  %s5995_s18 = sshll.u32 %s297_s13, 7 }
  0x1b   : > { %vm458_vm1 = vcmp.eq.s32.totalorder %v442_v12, %v8404_v8  ;;  %v443_v17 = vand.u32 31, %v8416_v13  ;;  %v444_v19 = vand.u32 31, %v8419_v14  ;;  %v309_v21 = vld [vmem:[%s8430_s21 + $0x10] sm:$0xff]  ;;  %v307_v22 = vld [vmem:[%s8430_s21] sm:$0xff]  ;;  %v445_v25 = vand.u32 31, %v8422_v15  ;;  %v310_v30 = vld [vmem:[%s8430_s21 + $0x18] sm:$0xff] }
  0x1c   : > { %v6014_v24 = vsel %vm458_vm1, 1.0, %v8292_v23  ;;  %332 = vperm.xlu1 %7904, %v309_v21   ;;  %326 = vperm.xlu0 %7903, %v307_v22   ;;  %v446_v28 = vand.u32 31, %v8425_v16  ;;  %v308_v31 = vld [vmem:[%s8430_s21 + $0x8] sm:$0xff]  ;;  %v447_v35 = vand.u32 31, %v8443_v26  ;;  %v448_v38 = vand.u32 31, %v8452_v29  ;;  %v311_v40 = vld [vmem:[%s8430_s21 + $0x20] sm:$0xff] }
  0x1d   : > { %vm459_vm2 = vcmp.eq.s32.totalorder %v443_v17, %v8404_v8  ;;  %vm460_vm3 = vcmp.eq.s32.totalorder %v444_v19, %v8404_v8  ;;  %7547 = vmatpush3.bf16.msra.mxu0 %v7544_v7  ;;  %6828 = vmatprep.mubr.msk.f32.mxu0 %vm510_vm0, %v6014_v24  ;;  %vm461_vm5 = vcmp.eq.s32.totalorder %v445_v25, %v8404_v8  ;;  %v312_v39 = vld [vmem:[%s8430_s21 + $0x28] sm:$0xff]  ;;  %v449_v43 = vand.u32 31, %v8462_v36  ;;  %v314_v44 = vld [vmem:[%s8430_s21 + $0x38] sm:$0xff]  ;;  %v313_v45 = vld [vmem:[%s8430_s21 + $0x30] sm:$0xff]  ;;  %s11233_s19 = scalar_lea.vmem [#allocation2], %s5995_s18  ;;  %s11290_s9 = scalar_lea.sflag [#allocation3], %s297_s13 }
  0x1e   : > { %v6015_v32 = vsel %vm459_vm2, 1.0, %v8292_v23  ;;  %7549 = vmatprep.subr.bf16.mxu0 %v7548_v18  ;;  %7841 = vmatpush3.bf16.msra.mxu1 %v7544_v7  ;;  %v6016_v34 = vsel %vm460_vm3, 1.0, %v8292_v23  ;;  %vm462_vm6 = vcmp.eq.s32.totalorder %v446_v28, %v8404_v8  ;;  %v6017_v41 = vsel %vm461_vm5, 1.0, %v8292_v23  ;;  %v316_v48 = vld [vmem:[%s8430_s21 + $0x48] sm:$0xff]  ;;  %v315_v49 = vld [vmem:[%s8430_s21 + $0x40] sm:$0xff]  ;;  %v318_v54 = vld [vmem:[%s8430_s21 + $0x58] sm:$0xff] }
  0x1f   : > { %v6018_v42 = vsel %vm462_vm6, 1.0, %v8292_v23  ;;  %vm463_vm9 = vcmp.eq.s32.totalorder %v447_v35, %v8404_v8  ;;  %vm464_vm10 = vcmp.eq.s32.totalorder %v448_v38, %v8404_v8  ;;  %vm465_vm11 = vcmp.eq.s32.totalorder %v449_v43, %v8404_v8  ;;  %v317_v55 = vld [vmem:[%s8430_s21 + $0x50] sm:$0xff]  ;;  %v320_v62 = vld [vmem:[%s8430_s21 + $0x68] sm:$0xff]  ;;  %v319_v63 = vld [vmem:[%s8430_s21 + $0x60] sm:$0xff]  ;;  %s8295_s25 = smov [#allocation2]  }
  0x20   : > { %335 = vperm.xlu1 %7904, %v310_v30   ;;  %329 = vperm.xlu0 %7903, %v308_v31   ;;  %v6019_v46 = vsel %vm463_vm9, 1.0, %v8292_v23  ;;  %v6020_v47 = vsel %vm464_vm10, 1.0, %v8292_v23  ;;  %v6021_v50 = vsel %vm465_vm11, 1.0, %v8292_v23  ;;  %v8496_v51 = vadd.s32 64, %v8406_v9  ;;  %v322_v6 = vld [vmem:[%s8430_s21 + $0x78] sm:$0xff]  ;;  %v321_v7 = vld [vmem:[%s8430_s21 + $0x70] sm:$0xff] }
  0x21   : > { %6829 = vmatmul.mubr.msk.f32.vlgmr.msra.gmra.mrb[0].mxu0 %vm510_vm0, %v6015_v32  ;;  %v8499_v52 = vadd.s32 72, %v8406_v9  ;;  %v8508_v57 = vadd.s32 80, %v8406_v9  ;;  %v8513_v59 = vadd.s32 88, %v8406_v9  ;;  %v8524_v1 = vadd.s32 96, %v8406_v9  ;;  %v1003_v24 = vld [vmem:[%s11334_s3] sm:$0xff]  ;;  %v1004_v25 = vld [vmem:[%s11334_s3 + $0x8] sm:$0xff] }
  0x22   : > { %7551 = vmatpush3.bf16.msra.mxu0 %v7548_v18  ;;  %6831 = vmatprep.mubr.msk.f32.mxu0 %vm510_vm0, %v6016_v34  ;;  %v450_v53 = vand.u32 31, %v8496_v51  ;;  %v8529_v3 = vadd.s32 104, %v8406_v9  ;;  %v8540_v11 = vadd.s32 112, %v8406_v9  ;;  %v8545_v17 = vadd.s32 120, %v8406_v9  ;;  %v6100_v30 = vld [vmem:[%s11334_s3 + $0x48] sm:$0xff]  ;;  %v1005_v31 = vld [vmem:[%s11334_s3 + $0x10] sm:$0xff] }
  0x23   : > { %7554 = vmatprep.subr.msk.bf16.mxu0 %vm8465_vm8, %v7552_v33  ;;  %v451_v56 = vand.u32 31, %v8499_v52  ;;  %v452_v61 = vand.u32 31, %v8508_v57  ;;  %v453_v0 = vand.u32 31, %v8513_v59  ;;  %v454_v5 = vand.u32 31, %v8524_v1  ;;  %v1006_v32 = vld [vmem:[%s11334_s3 + $0x18] sm:$0xff]  ;;  %s5929_s21 = sshll.u32 %s11233_s19, 4  ;;  %s11283_s21 = int_to_ptr.vmem [resolvable:$true] %s5929_s21 }
  0x24   : > { %341 = vperm.xlu1 %7904, %v312_v39   ;;  %338 = vperm.xlu0 %7903, %v311_v40   ;;  %vm466_vm12 = vcmp.eq.s32.totalorder %v450_v53, %v8404_v8  ;;  %v455_v10 = vand.u32 31, %v8529_v3  ;;  %v456_v19 = vand.u32 31, %v8540_v11  ;;  %v457_v20 = vand.u32 31, %v8545_v17  ;;  %v6101_v39 = vld [vmem:[%s11334_s3 + $0x50] sm:$0xff]  ;;  %v6102_v40 = vld [vmem:[%s11334_s3 + $0x58] sm:$0xff]  ;;  %s8227_s24 = scalar_lea.vmem %s11283_s21, 2048 }
  0x25   : > { %6832 = vmatmul.mubr.msk.f32.gmra.mrb[2].mxu0 %vm510_vm0, %v6017_v41  ;;  %v6022_v58 = vsel %vm466_vm12, 1.0, %v8292_v23  ;;  %vm467_vm13 = vcmp.eq.s32.totalorder %v451_v56, %v8404_v8  ;;  %vm468_vm14 = vcmp.eq.s32.totalorder %v452_v61, %v8404_v8  ;;  %vm469_vm15 = vcmp.eq.s32.totalorder %v453_v0, %v8404_v8  ;;  %p8228_p11 = scmp.ne.s32.totalorder %s11283_s21, %s8227_s24  ;;  %s8231_s26 = sshll.u32 %s8295_s25, 4  ;;  %s8232_s26 = int_to_ptr.vmem [resolvable:$false] %s8231_s26 }
  0x26   : > { %6834 = vmatprep.mubr.msk.f32.mxu0 %vm510_vm0, %v6018_v42  ;;  %7557 = vmatpush3.bf16.msk.msra.mxu0 %vm8465_vm8, %v7552_v33  ;;  %v6023_v60 = vsel %vm467_vm13, 1.0, %v8292_v23  ;;  %v6024_v2 = vsel %vm468_vm14, 1.0, %v8292_v23  ;;  %v6025_v4 = vsel %vm469_vm15, 1.0, %v8292_v23  ;;  %vm470_vm1 = vcmp.eq.s32.totalorder %v454_v5, %v8404_v8  ;;  %s8233_s10 = scalar_lea.vmem %s8232_s26, 4096  ;;  %p8234_p0 = scmp.lt.s32.totalorder %s11283_s21, %s8232_s26 }
  0x27   : > { %6840 = vmatprep.mubr.msk.f32.mxu1 %vm510_vm0, %v6022_v58  ;;  %v6026_v12 = vsel %vm470_vm1, 1.0, %v8292_v23  ;;  %vm471_vm2 = vcmp.eq.s32.totalorder %v455_v10, %v8404_v8  ;;  %vm472_vm3 = vcmp.eq.s32.totalorder %v456_v19, %v8404_v8  ;;  %vm473_vm4 = vcmp.eq.s32.totalorder %v457_v20, %v8404_v8  ;;  %p8229_p12 = pnand %p8228_p11, %p8381_p5  ;;  %p8235_p1 = scmp.lt.s32.totalorder %s8233_s10, %s8227_s24 }
  0x28   : > { %347 = vperm.xlu1 %7904, %v314_v44   ;;  %344 = vperm.xlu0 %7903, %v313_v45   ;;  %v6027_v18 = vsel %vm471_vm2, 1.0, %v8292_v23  ;;  %v6028_v21 = vsel %vm472_vm3, 1.0, %v8292_v23  ;;  %v6029_v22 = vsel %vm473_vm4, 1.0, %v8292_v23  ;;  %v7558_v28 = vpack.c.bf16 %v1004_v25, %v1003_v24 }
  0x29   : > { %6835 = vmatmul.mubr.msk.f32.gmra.mrb[4].mxu0 %vm510_vm0, %v6019_v46  ;;  %6841 = vmatmul.mubr.msk.f32.vlgmr.msra.gmra.mrb[0].mxu1 %vm510_vm0, %v6023_v60  ;;  %v7574_v33 = vpack.c.bf16 %v6100_v30, %v6099_v27  ;;  %v7562_v34 = vpack.c.bf16 %v1006_v32, %v1005_v31  ;;  %vm704_vm5 = vcmask 220160   ;;  %v7578_v44 = vpack.c.bf16 %v6102_v40, %v6101_v39  ;;  %p8230_p13 = pneg %p8229_p12  ;;  %p8236_p2 = por %p8235_p1, %p8234_p0 }
  0x2a   : > { %6837 = vmatprep.mubr.msk.f32.mxu0 %vm510_vm0, %v6020_v47  ;;  %6843 = vmatprep.mubr.msk.f32.mxu1 %vm510_vm0, %v6024_v2 }
  0x2b   : > { %7559 = vmatprep.subr.bf16.mxu1 %v7558_v28  ;;  %7575 = vmatprep.subr.bf16.mxu0 %v7574_v33  ;;  %p8237_p3 = pnand %p8236_p2, %p8230_p13 }
  0x2c   : > { %353 = vperm.xlu1 %7904, %v316_v48   ;;  %350 = vperm.xlu0 %7903, %v315_v49  }
  0x2d   : > { %6838 = vmatmul.mubr.msk.f32.gmra.mrb[6].mxu0 %vm510_vm0, %v6021_v50  ;;  %6844 = vmatmul.mubr.msk.f32.gmra.mrb[2].mxu1 %vm510_vm0, %v6025_v4 }
  0x2e   : > { %6846 = vmatprep.mubr.msk.f32.mxu1 %vm510_vm0, %v6026_v12  ;;  %7561 = vmatpush3.bf16.msra.mxu1 %v7558_v28 }
  0x2f   : > { %7563 = vmatprep.subr.bf16.mxu1 %v7562_v34 }
  0x30   : > { %359 = vperm.xlu1 %7904, %v318_v54   ;;  %356 = vperm.xlu0 %7903, %v317_v55  }
  0x31   : > { %6847 = vmatmul.mubr.msk.f32.gmra.mrb[4].mxu1 %vm510_vm0, %v6027_v18 }
  0x32   : > { %6849 = vmatprep.mubr.msk.f32.mxu1 %vm510_vm0, %v6028_v21  ;;  %7565 = vmatpush3.bf16.msra.mxu1 %v7562_v34  ;;  %v6079_v21 = vld [vmem:[%s11334_s3 + $0x20] sm:$0xff]  ;;  %v6081_v34 = vld [vmem:[%s11334_s3 + $0x30] sm:$0xff] }
  0x34   : > { %365 = vperm.xlu1 %7904, %v320_v62   ;;  %362 = vperm.xlu0 %7903, %v319_v63  }
  0x35   : > { %6850 = vmatmul.mubr.msk.f32.gmra.mrb[6].mxu1 %vm510_vm0, %v6029_v22  ;;  %v6080_v22 = vld [vmem:[%s11334_s3 + $0x28] sm:$0xff] }
  0x36   : > { %v7566_v24 = vpack.c.bf16 %v6080_v22, %v6079_v21 }
  0x38   : > { %371 = vperm.xlu1 %7904, %v322_v6   ;;  %368 = vperm.xlu0 %7903, %v321_v7  }
  0x39   : > { %7567 = vmatprep.subr.bf16.mxu1 %v7566_v24 }
  0x9b   : > { %v333_v35 = vpop.permute.xlu1 %332  ;;  %v327_v37 = vpop.permute.xlu0 %326 }
  0x9c   : > { %vm373_vm6 = vcmp.eq.s32.totalorder %v327_v37, %v8404_v8  ;;  %vm375_vm7 = vcmp.eq.s32.totalorder %v333_v35, %v8404_v8  ;;  %v6082_v35 = vld [vmem:[%s11334_s3 + $0x38] sm:$0xff] }
  0x9d   : > { %v5998_v38 = vsel %vm373_vm6, 1.0, %v8292_v23  ;;  %v6000_v43 = vsel %vm375_vm7, 1.0, %v8292_v23  ;;  %v7570_v39 = vpack.c.bf16 %v6082_v35, %v6081_v34 }
  0x9e   : > { %6860 = vmatprep.mubr.msk.f32.mxu0 %vm704_vm5, %v5998_v38 }
  0x9f   : > { %v336_v41 = vpop.permute.xlu1 %335  ;;  %v330_v42 = vpop.permute.xlu0 %329 }
  0xa0   : > { %vm374_vm8 = vcmp.eq.s32.totalorder %v330_v42, %v8404_v8  ;;  %vm376_vm9 = vcmp.eq.s32.totalorder %v336_v41, %v8404_v8 }
  0xa1   : > { %v5999_v45 = vsel %vm374_vm8, 1.0, %v8292_v23  ;;  %v6001_v48 = vsel %vm376_vm9, 1.0, %v8292_v23  ;;  %vm936_vm9 = vcmp.le.s32.totalorder %v8404_v8, %v8416_v13 }
  0xa2   : > { %6861 = vmatmul.mubr.msk.f32.vlgmr.msra.gmra.mrb[0].mxu0 %vm704_vm5, %v5999_v45 }
  0xa3   : > { %v342_v46 = vpop.permute.xlu1 %341  ;;  %6863 = vmatprep.mubr.msk.f32.mxu0 %vm704_vm5, %v6000_v43  ;;  %v339_v47 = vpop.permute.xlu0 %338  ;;  %7577 = vmatpush3.bf16.msra.mxu0 %v7574_v33 }
  0xa4   : > { %vm377_vm10 = vcmp.eq.s32.totalorder %v339_v47, %v8404_v8  ;;  %7579 = vmatprep.subr.bf16.mxu0 %v7578_v44  ;;  %vm378_vm11 = vcmp.eq.s32.totalorder %v342_v46, %v8404_v8 }
  0xa5   : > { %v6002_v49 = vsel %vm377_vm10, 1.0, %v8292_v23  ;;  %v6003_v54 = vsel %vm378_vm11, 1.0, %v8292_v23  ;;  %vm935_vm11 = vcmp.le.s32.totalorder %v8404_v8, %v8406_v9 }
  0xa6   : > { %6864 = vmatmul.mubr.msk.f32.gmra.mrb[2].mxu0 %vm704_vm5, %v6001_v48 }
  0xa7   : > { %v348_v50 = vpop.permute.xlu1 %347  ;;  %6866 = vmatprep.mubr.msk.f32.mxu0 %vm704_vm5, %v6002_v49  ;;  %v345_v53 = vpop.permute.xlu0 %344  ;;  %7581 = vmatpush3.bf16.msra.mxu0 %v7578_v44 }
  0xa8   : > { %vm379_vm12 = vcmp.eq.s32.totalorder %v345_v53, %v8404_v8  ;;  %vm380_vm13 = vcmp.eq.s32.totalorder %v348_v50, %v8404_v8 }
  0xa9   : > { %v6004_v55 = vsel %vm379_vm12, 1.0, %v8292_v23  ;;  %v6005_v60 = vsel %vm380_vm13, 1.0, %v8292_v23 }
  0xaa   : > { %6867 = vmatmul.mubr.msk.f32.gmra.mrb[4].mxu0 %vm704_vm5, %v6003_v54 }
  0xab   : > { %v354_v56 = vpop.permute.xlu1 %353  ;;  %6869 = vmatprep.mubr.msk.f32.mxu0 %vm704_vm5, %v6004_v55  ;;  %v351_v58 = vpop.permute.xlu0 %350 }
  0xac   : > { %vm381_vm14 = vcmp.eq.s32.totalorder %v351_v58, %v8404_v8  ;;  %vm382_vm15 = vcmp.eq.s32.totalorder %v354_v56, %v8404_v8 }
  0xad   : > { %v6006_v61 = vsel %vm381_vm14, 1.0, %v8292_v23  ;;  %v6007_v0 = vsel %vm382_vm15, 1.0, %v8292_v23 }
  0xae   : > { %6870 = vmatmul.mubr.msk.f32.gmra.mrb[6].mxu0 %vm704_vm5, %v6005_v60 }
  0xaf   : > { %v360_v62 = vpop.permute.xlu1 %359  ;;  %6872 = vmatprep.mubr.msk.f32.mxu0 %vm704_vm5, %v6006_v61  ;;  %v357_v63 = vpop.permute.xlu0 %356 }
  0xb0   : > { %vm383_vm1 = vcmp.eq.s32.totalorder %v357_v63, %v8404_v8  ;;  %vm384_vm2 = vcmp.eq.s32.totalorder %v360_v62, %v8404_v8 }
  0xb1   : > { %v6008_v2 = vsel %vm383_vm1, 1.0, %v8292_v23  ;;  %v6009_v6 = vsel %vm384_vm2, 1.0, %v8292_v23  ;;  %vm937_vm1 = vcmp.le.s32.totalorder %v8404_v8, %v8419_v14 }
  0xb2   : > { %6873 = vmatmul.mubr.msk.f32.gmra.mrb[8].mxu0 %vm704_vm5, %v6007_v0 }
  0xb3   : > { %v366_v4 = vpop.permute.xlu1 %365  ;;  %6875 = vmatprep.mubr.msk.f32.mxu0 %vm704_vm5, %v6008_v2  ;;  %v363_v5 = vpop.permute.xlu0 %362 }
  0xb4   : > { %vm385_vm3 = vcmp.eq.s32.totalorder %v363_v5, %v8404_v8  ;;  %vm386_vm4 = vcmp.eq.s32.totalorder %v366_v4, %v8404_v8  ;;  %v8771_v4 = vsub.s32 0, %v8406_v9  ;;  %v11340_v5 = vsub.s32 2, %v8406_v9 }
  0xb5   : > { %v6010_v7 = vsel %vm385_vm3, 1.0, %v8292_v23  ;;  %v6011_v18 = vsel %vm386_vm4, 1.0, %v8292_v23 }
  0xb6   : > { %6876 = vmatmul.mubr.msk.f32.gmra.mrb[10].mxu0 %vm704_vm5, %v6009_v6  ;;  %11372 = vst [vmem:[#allocation9_spill] sm:$0xff] %v8771_v4  ;;  %v8777_v6 = vld [vmem:[%s11337_s6] sm:$0xff] }
  0xb7   : > { %v372_v10 = vpop.permute.xlu1 %371  ;;  %6878 = vmatprep.mubr.msk.f32.mxu0 %vm704_vm5, %v6010_v7  ;;  %v369_v12 = vpop.permute.xlu0 %368  ;;  %v8781_v7 = vrot.slane %v8777_v6, %v8771_v4 }
  0xb8   : > { %vm387_vm6 = vcmp.eq.s32.totalorder %v369_v12, %v8404_v8  ;;  %vm388_vm7 = vcmp.eq.s32.totalorder %v372_v10, %v8404_v8  ;;  %v8786_v10 = vrot.slane %v8777_v6, %v11340_v5 }
  0xb9   : > { %v6012_v19 = vsel %vm387_vm6, 1.0, %v8292_v23  ;;  %v6013_v20 = vsel %vm388_vm7, 1.0, %v8292_v23  ;;  %vm938_vm6 = vcmp.le.s32.totalorder %v8404_v8, %v8422_v15 }
  0xba   : > { %6879 = vmatmul.mubr.msk.f32.gmra.mrb[12].mxu0 %vm704_vm5, %v6011_v18 }
  0xbb   : > { %6881 = vmatprep.mubr.msk.f32.mxu0 %vm704_vm5, %v6012_v19 }
  0xbe   : > { %6882 = vmatmul.mubr.msk.f32.gmra.mrb[14].mxu0 %vm704_vm5, %v6013_v20  ;;  %vm8858_vm5 = vmpackc.low %vm510_vm0, %vm510_vm0 }
  0xfc   : > { %v6842_v25 = vpop.f32.mrb[0].mxu1 }
  0xfd   : > { %v665_v27 = vpop.f32.mrb[1].mxu1 }
 0x100   : > { %v6845_v28 = vpop.f32.mrb[2].mxu1 }
 0x101   : > { %v675_v30 = vpop.f32.mrb[3].mxu1 }
 0x104   : > { %v6848_v31 = vpop.f32.mrb[4].mxu1 }
 0x105   : > { %v685_v32 = vpop.f32.mrb[5].mxu1 }
 0x108   : > { %v6851_v33 = vpop.f32.mrb[6].mxu1 }
 0x109   : > { %v695_v23 = vpop.f32.mrb[7].mxu1 }
 0x175   : > { %v8642_v37 = vpop.f32.mrb[0].mxu0 }
 0x176   : > { %v8644_v38 = vpop.f32.mrb[1].mxu0 }
 0x177   : > { %6892 = vmatprep.mubr.msk.f32.mxu1 %vm510_vm0, %v8644_v38  ;;  %6956 = vmatprep.mubr.msk.f32.mxu0 %vm510_vm0, %v8644_v38 }
 0x178   : > { %6893 = vmatmul.mubr.msk.f32.vlgmr.msra.gmra.mrb[8].mxu1 %vm510_vm0, %v8642_v37  ;;  %6957 = vmatmul.mubr.msk.f32.vlgmr.msra.gmra.mrb[16].mxu0 %vm510_vm0, %v8642_v37 }
 0x179   : > { %v8654_v40 = vpop.f32.mrb[2].mxu0  ;;  %7569 = vmatpush3.bf16.msra.mxu1 %v7566_v24 }
 0x17a   : > { %v8656_v41 = vpop.f32.mrb[3].mxu0  ;;  %7571 = vmatprep.subr.bf16.mxu1 %v7570_v39 }
 0x17b   : > { %6895 = vmatprep.mubr.msk.f32.mxu1 %vm510_vm0, %v8656_v41  ;;  %6959 = vmatprep.mubr.msk.f32.mxu0 %vm510_vm0, %v8656_v41 }
 0x17c   : > { %6896 = vmatmul.mubr.msk.f32.gmra.mrb[10].mxu1 %vm510_vm0, %v8654_v40  ;;  %6960 = vmatmul.mubr.msk.f32.gmra.mrb[18].mxu0 %vm510_vm0, %v8654_v40 }
 0x17d   : > { %v8666_v42 = vpop.f32.mrb[4].mxu0  ;;  %7573 = vmatpush3.bf16.msra.mxu1 %v7570_v39 }
 0x17e   : > { %v8668_v43 = vpop.f32.mrb[5].mxu0 }
 0x17f   : > { %6898 = vmatprep.mubr.msk.f32.mxu1 %vm510_vm0, %v8668_v43  ;;  %6962 = vmatprep.mubr.msk.f32.mxu0 %vm510_vm0, %v8668_v43 }
 0x180   : > { %6899 = vmatmul.mubr.msk.f32.gmra.mrb[12].mxu1 %vm510_vm0, %v8666_v42  ;;  %6963 = vmatmul.mubr.msk.f32.gmra.mrb[20].mxu0 %vm510_vm0, %v8666_v42 }
 0x181   : > { %v8678_v44 = vpop.f32.mrb[6].mxu0 }
 0x182   : > { %v8680_v45 = vpop.f32.mrb[7].mxu0 }
 0x183   : > { %6901 = vmatprep.mubr.msk.f32.mxu1 %vm510_vm0, %v8680_v45  ;;  %6965 = vmatprep.mubr.msk.f32.mxu0 %vm510_vm0, %v8680_v45 }
 0x184   : > { %6902 = vmatmul.mubr.msk.f32.gmra.mrb[14].mxu1 %vm510_vm0, %v8678_v44  ;;  %6966 = vmatmul.mubr.msk.f32.gmra.mrb[22].mxu0 %vm510_vm0, %v8678_v44 }
 0x185   : > { %v6874_v46 = vpop.f32.mrb[8].mxu0 }
 0x186   : > { %v8690_v47 = vadd.f32 %v6874_v46, %v6842_v25  ;;  %v863_v48 = vpop.f32.mrb[9].mxu0 }
 0x187   : > { %v8692_v49 = vadd.f32 %v863_v48, %v665_v27 }
 0x189   : > { %v6877_v50 = vpop.f32.mrb[10].mxu0  ;;  %6904 = vmatprep.mubr.msk.f32.mxu1 %vm510_vm0, %v8692_v49  ;;  %6968 = vmatprep.mubr.msk.f32.mxu0 %vm510_vm0, %v8692_v49 }
 0x18a   : > { %v8698_v53 = vadd.f32 %v6877_v50, %v6845_v28  ;;  %v873_v54 = vpop.f32.mrb[11].mxu0  ;;  %6905 = vmatmul.mubr.msk.f32.gmra.mrb[16].mxu1 %vm510_vm0, %v8690_v47  ;;  %6969 = vmatmul.mubr.msk.f32.gmra.mrb[24].mxu0 %vm510_vm0, %v8690_v47 }
 0x18b   : > { %v8704_v55 = vadd.f32 %v873_v54, %v675_v30 }
 0x18d   : > { %v6880_v56 = vpop.f32.mrb[12].mxu0  ;;  %6907 = vmatprep.mubr.msk.f32.mxu1 %vm510_vm0, %v8704_v55  ;;  %6971 = vmatprep.mubr.msk.f32.mxu0 %vm510_vm0, %v8704_v55 }
 0x18e   : > { %v8710_v58 = vadd.f32 %v6880_v56, %v6848_v31  ;;  %v883_v60 = vpop.f32.mrb[13].mxu0  ;;  %6908 = vmatmul.mubr.msk.f32.gmra.mrb[18].mxu1 %vm510_vm0, %v8698_v53  ;;  %6972 = vmatmul.mubr.msk.f32.gmra.mrb[26].mxu0 %vm510_vm0, %v8698_v53 }
 0x18f   : > { %v8716_v61 = vadd.f32 %v883_v60, %v685_v32 }
 0x190   : > { %11368 = vst [vmem:[#allocation5_spill] sm:$0xff] %v8710_v58 }
 0x191   : > { %11369 = vst [vmem:[#allocation6_spill] sm:$0xff] %v8716_v61  ;;  %v6883_v62 = vpop.f32.mrb[14].mxu0  ;;  %6910 = vmatprep.mubr.msk.f32.mxu1 %vm510_vm0, %v8716_v61  ;;  %6974 = vmatprep.mubr.msk.f32.mxu0 %vm510_vm0, %v8716_v61 }
 0x192   : > { %v8722_v63 = vadd.f32 %v6883_v62, %v6851_v33  ;;  %v893_v0 = vpop.f32.mrb[15].mxu0  ;;  %6911 = vmatmul.mubr.msk.f32.gmra.mrb[20].mxu1 %vm510_vm0, %v8710_v58  ;;  %6975 = vmatmul.mubr.msk.f32.gmra.mrb[28].mxu0 %vm510_vm0, %v8710_v58 }
 0x193   : > { %v8728_v2 = vadd.f32 %v893_v0, %v695_v23 }
 0x194   : > { %11370 = vst [vmem:[#allocation7_spill] sm:$0xff] %v8722_v63 }
 0x195   : > { %11371 = vst [vmem:[#allocation8_spill] sm:$0xff] %v8728_v2  ;;  %6913 = vmatprep.mubr.msk.f32.mxu1 %vm510_vm0, %v8728_v2  ;;  %6977 = vmatprep.mubr.msk.f32.mxu0 %vm510_vm0, %v8728_v2 }
 0x196   : > { %6914 = vmatmul.mubr.msk.f32.gmra.mrb[22].mxu1 %vm510_vm0, %v8722_v63  ;;  %6978 = vmatmul.mubr.msk.f32.gmra.mrb[30].mxu0 %vm510_vm0, %v8722_v63 }
 0x197   : > { %6924 = vmatprep.mubr.msk.f32.mxu1 %vm510_vm0, %v8644_v38 }
 0x19a   : > { %6925 = vmatmul.mubr.msk.f32.vlgmr.msra.gmra.mrb[24].mxu1 %vm510_vm0, %v8642_v37 }
 0x19b   : > { %6927 = vmatprep.mubr.msk.f32.mxu1 %vm510_vm0, %v8656_v41 }
 0x19e   : > { %6928 = vmatmul.mubr.msk.f32.gmra.mrb[26].mxu1 %vm510_vm0, %v8654_v40 }
 0x19f   : > { %6930 = vmatprep.mubr.msk.f32.mxu1 %vm510_vm0, %v8668_v43 }
 0x1a2   : > { %6931 = vmatmul.mubr.msk.f32.gmra.mrb[28].mxu1 %vm510_vm0, %v8666_v42 }
 0x1a3   : > { %6933 = vmatprep.mubr.msk.f32.mxu1 %vm510_vm0, %v8680_v45 }
 0x1a6   : > { %6934 = vmatmul.mubr.msk.f32.gmra.mrb[30].mxu1 %vm510_vm0, %v8678_v44 }
 0x1a7   : > { %6936 = vmatprep.mubr.msk.f32.mxu1 %vm510_vm0, %v8692_v49 }
 0x1aa   : > { %6937 = vmatmul.mubr.msk.f32.gmra.mrb[32].mxu1 %vm510_vm0, %v8690_v47 }
 0x1ab   : > { %6939 = vmatprep.mubr.msk.f32.mxu1 %vm510_vm0, %v8704_v55 }
 0x1ae   : > { %6940 = vmatmul.mubr.msk.f32.gmra.mrb[34].mxu1 %vm510_vm0, %v8698_v53 }
 0x1af   : > { %6942 = vmatprep.mubr.msk.f32.mxu1 %vm510_vm0, %v8716_v61 }
 0x1b2   : > { %6943 = vmatmul.mubr.msk.f32.gmra.mrb[36].mxu1 %vm510_vm0, %v8710_v58 }
 0x1b3   : > { %6945 = vmatprep.mubr.msk.f32.mxu1 %vm510_vm0, %v8728_v2 }
 0x1b6   : > { %6946 = vmatmul.mubr.msk.f32.gmra.mrb[38].mxu1 %vm510_vm0, %v8722_v63 }
 0x24b   : > { %v6894_v12 = vpop.f32.mrb[8].mxu1  ;;  %v6958_v18 = vpop.f32.mrb[16].mxu0 }
 0x24c   : > { %v8789_v19 = vadd.f32 %v6894_v12, %v8781_v7  ;;  %v1439_v20 = vadd.f32 %v6958_v18, %v8786_v10  ;;  %v1125_v21 = vpop.f32.mrb[9].mxu1  ;;  %v1433_v22 = vpop.f32.mrb[17].mxu0 }
 0x24d   : > { %v1126_v24 = vadd.f32 %v1125_v21, %v8781_v7  ;;  %v1434_v25 = vadd.f32 %v1433_v22, %v8786_v10 }
 0x24f   : > { %v1512_v27 = vmul.f32 0.17677669, %v1126_v24  ;;  %v7630_v28 = vpack.c.bf16 %v1439_v20, %v1434_v25  ;;  %v6897_v30 = vpop.f32.mrb[10].mxu1  ;;  %v6961_v31 = vpop.f32.mrb[18].mxu0 }
 0x250   : > { %v8795_v32 = vadd.f32 %v6897_v30, %v8781_v7  ;;  %v1449_v33 = vadd.f32 %v6961_v31, %v8786_v10  ;;  %v1135_v23 = vpop.f32.mrb[11].mxu1  ;;  %v1443_v34 = vpop.f32.mrb[19].mxu0 }
 0x251   : > { %v8799_v35 = vadd.f32 %v1135_v23, %v8781_v7  ;;  %v1444_v39 = vadd.f32 %v1443_v34, %v8786_v10  ;;  %7012 = vmatprep.mubr.msk.f32.mxu1 %vm510_vm0, %v1512_v27  ;;  %7631 = vmatprep.subr.bf16.mxu0 %v7630_v28 }
 0x252   : > { %7633 = vmatpush3.bf16.msra.mxu0 %v7630_v28 }
 0x253   : > { %v7634_v46 = vpack.c.bf16 %v1449_v33, %v1444_v39  ;;  %v6900_v48 = vpop.f32.mrb[12].mxu1  ;;  %v6964_v50 = vpop.f32.mrb[20].mxu0 }
 0x254   : > { %v8804_v54 = vadd.f32 %v6900_v48, %v8781_v7  ;;  %v1459_v56 = vadd.f32 %v6964_v50, %v8786_v10  ;;  %v1145_v60 = vpop.f32.mrb[13].mxu1  ;;  %v1453_v62 = vpop.f32.mrb[21].mxu0 }
 0x255   : > { %v8808_v0 = vadd.f32 %v1145_v60, %v8781_v7  ;;  %v1454_v12 = vadd.f32 %v1453_v62, %v8786_v10  ;;  %7635 = vmatprep.subr.bf16.mxu0 %v7634_v46 }
 0x256   : > { %7637 = vmatpush3.bf16.msra.mxu0 %v7634_v46 }
 0x257   : > { %v7638_v18 = vpack.c.bf16 %v1459_v56, %v1454_v12  ;;  %v6903_v20 = vpop.f32.mrb[14].mxu1  ;;  %v6967_v21 = vpop.f32.mrb[22].mxu0 }
 0x258   : > { %v8812_v22 = vadd.f32 %v6903_v20, %v8781_v7  ;;  %v1469_v24 = vadd.f32 %v6967_v21, %v8786_v10  ;;  %v1155_v25 = vpop.f32.mrb[15].mxu1  ;;  %v1463_v27 = vpop.f32.mrb[23].mxu0 }
 0x259   : > { %v8816_v28 = vadd.f32 %v1155_v25, %v8781_v7  ;;  %v1464_v30 = vadd.f32 %v1463_v27, %v8786_v10  ;;  %7639 = vmatprep.subr.bf16.mxu0 %v7638_v18 }
 0x25a   : > { %7641 = vmatpush3.bf16.msra.mxu0 %v7638_v18 }
 0x25b   : > { %v7642_v31 = vpack.c.bf16 %v1469_v24, %v1464_v30 }
 0x25d   : > { %v6906_v33 = vpop.f32.mrb[16].mxu1  ;;  %v6970_v23 = vpop.f32.mrb[24].mxu0  ;;  %7643 = vmatprep.subr.bf16.mxu0 %v7642_v31 }
 0x25e   : > { %v8820_v34 = vadd.f32 %v6906_v33, %v8781_v7  ;;  %v1479_v39 = vadd.f32 %v6970_v23, %v8786_v10  ;;  %v1165_v46 = vpop.f32.mrb[17].mxu1  ;;  %v1473_v48 = vpop.f32.mrb[25].mxu0  ;;  %7645 = vmatpush3.bf16.msra.mxu0 %v7642_v31 }
 0x25f   : > { %v8824_v50 = vadd.f32 %v1165_v46, %v8781_v7  ;;  %v1474_v56 = vadd.f32 %v1473_v48, %v8786_v10 }
 0x261   : > { %v7646_v60 = vpack.c.bf16 %v1479_v39, %v1474_v56  ;;  %v6909_v62 = vpop.f32.mrb[18].mxu1  ;;  %v6973_v12 = vpop.f32.mrb[26].mxu0  ;;  %v8840_v56 = vsub.s32 1, %v8406_v9 }
 0x262   : > { %v8828_v18 = vadd.f32 %v6909_v62, %v8781_v7  ;;  %v1489_v20 = vadd.f32 %v6973_v12, %v8786_v10  ;;  %v1175_v21 = vpop.f32.mrb[19].mxu1  ;;  %v1483_v24 = vpop.f32.mrb[27].mxu0 }
 0x263   : > { %v8832_v25 = vadd.f32 %v1175_v21, %v8781_v7  ;;  %v1484_v27 = vadd.f32 %v1483_v24, %v8786_v10  ;;  %7647 = vmatprep.subr.bf16.mxu0 %v7646_v60  ;;  %11373 = vst [vmem:[#allocation10_spill] sm:$0xff] %v8840_v56  ;;  %v1212_v5 = vrot.slane %v8777_v6, %v8840_v56 }
 0x264   : > { %7649 = vmatpush3.bf16.msra.mxu0 %v7646_v60 }
 0x265   : > { %v7650_v30 = vpack.c.bf16 %v1489_v20, %v1484_v27  ;;  %v6912_v31 = vpop.f32.mrb[20].mxu1  ;;  %v6976_v33 = vpop.f32.mrb[28].mxu0 }
 0x266   : > { %v8836_v23 = vadd.f32 %v6912_v31, %v8781_v7  ;;  %v1499_v39 = vadd.f32 %v6976_v33, %v8786_v10  ;;  %v1185_v46 = vpop.f32.mrb[21].mxu1  ;;  %v1493_v48 = vpop.f32.mrb[29].mxu0 }
 0x267   : > { %v8843_v62 = vadd.f32 %v1185_v46, %v8781_v7  ;;  %v1494_v12 = vadd.f32 %v1493_v48, %v8786_v10  ;;  %7651 = vmatprep.subr.bf16.mxu0 %v7650_v30 }
 0x268   : > { %7653 = vmatpush3.bf16.msra.mxu0 %v7650_v30 }
 0x269   : > { %v7654_v60 = vpack.c.bf16 %v1499_v39, %v1494_v12  ;;  %v6915_v20 = vpop.f32.mrb[22].mxu1  ;;  %v6979_v21 = vpop.f32.mrb[30].mxu0 }
 0x26a   : > { %v8847_v24 = vadd.f32 %v6915_v20, %v8781_v7  ;;  %v1509_v27 = vadd.f32 %v6979_v21, %v8786_v10  ;;  %v1195_v31 = vpop.f32.mrb[23].mxu1  ;;  %v1503_v33 = vpop.f32.mrb[31].mxu0 }
 0x26b   : > { %v8853_v46 = vadd.f32 %v1195_v31, %v8781_v7  ;;  %v1504_v48 = vadd.f32 %v1503_v33, %v8786_v10  ;;  %7655 = vmatprep.subr.bf16.mxu0 %v7654_v60 }
 0x26c   : > { %7657 = vmatpush3.bf16.msra.mxu0 %v7654_v60 }
 0x26d   : > { %v7658_v30 = vpack.c.bf16 %v1509_v27, %v1504_v48  ;;  %v6926_v39 = vpop.f32.mrb[24].mxu1 }
 0x26e   : > { %v1285_v12 = vadd.f32 %v6926_v39, %v1212_v5  ;;  %v1279_v4 = vpop.f32.mrb[25].mxu1 }
 0x26f   : > { %v1280_v20 = vadd.f32 %v1279_v4, %v1212_v5  ;;  %7659 = vmatprep.subr.bf16.mxu0 %v7658_v30 }
 0x270   : > { %7661 = vmatpush3.bf16.msra.mxu0 %v7658_v30 }
 0x271   : > { %v7582_v6 = vpack.c.bf16 %v1285_v12, %v1280_v20  ;;  %v6929_v7 = vpop.f32.mrb[26].mxu1 }
 0x272   : > { %v1295_v31 = vadd.f32 %v6929_v7, %v1212_v5  ;;  %v1289_v56 = vpop.f32.mrb[27].mxu1 }
 0x273   : > { %v1290_v10 = vadd.f32 %v1289_v56, %v1212_v5  ;;  %7584 = vmatprep.subr.msk.bf16.mxu1 %vm8858_vm5, %v7582_v6 }
 0x274   : > { %7587 = vmatpush3.bf16.xpose.msk.msra.mxu1 %vm8858_vm5, %v7582_v6 }
 0x275   : > { %v7588_v4 = vpack.c.bf16 %v1295_v31, %v1290_v10  ;;  %v6932_v60 = vpop.f32.mrb[28].mxu1 }
 0x276   : > { %v1305_v27 = vadd.f32 %v6932_v60, %v1212_v5  ;;  %v1299_v33 = vpop.f32.mrb[29].mxu1 }
 0x277   : > { %v1300_v48 = vadd.f32 %v1299_v33, %v1212_v5  ;;  %7590 = vmatprep.subr.msk.bf16.mxu1 %vm8858_vm5, %v7588_v4 }
 0x279   : > { %v7594_v30 = vpack.c.bf16 %v1305_v27, %v1300_v48  ;;  %v6935_v39 = vpop.f32.mrb[30].mxu1 }
 0x27a   : > { %v1315_v12 = vadd.f32 %v6935_v39, %v1212_v5  ;;  %v1309_v20 = vpop.f32.mrb[31].mxu1 }
 0x27b   : > { %v1310_v7 = vadd.f32 %v1309_v20, %v1212_v5 }
 0x27c   : > { %7593 = vmatpush3.bf16.xpose.msk.msra.mxu1 %vm8858_vm5, %v7588_v4 }
 0x27d   : > { %v7600_v56 = vpack.c.bf16 %v1315_v12, %v1310_v7  ;;  %v6938_v2 = vpop.f32.mrb[32].mxu1  ;;  %7596 = vmatprep.subr.msk.bf16.mxu1 %vm8858_vm5, %v7594_v30 }
 0x27e   : > { %v1325_v6 = vadd.f32 %v6938_v2, %v1212_v5  ;;  %v1319_v31 = vpop.f32.mrb[33].mxu1 }
 0x27f   : > { %v1320_v10 = vadd.f32 %v1319_v31, %v1212_v5 }
 0x281   : > { %v7606_v60 = vpack.c.bf16 %v1325_v6, %v1320_v10  ;;  %v6941_v33 = vpop.f32.mrb[34].mxu1  ;;  %v1518_v10 = vmul.f32 0.17677669, %v8816_v28  ;;  %v1524_v28 = vmul.f32 0.17677669, %v8843_v62  ;;  %v902_v62 = vand.u32 4294967264, %v8406_v9 }
 0x282   : > { %v1335_v63 = vadd.f32 %v6941_v33, %v1212_v5  ;;  %v1329_v61 = vpop.f32.mrb[35].mxu1 }
 0x283   : > { %v1330_v27 = vadd.f32 %v1329_v61, %v1212_v5 }
 0x284   : > { %7599 = vmatpush3.bf16.xpose.msk.msra.mxu1 %vm8858_vm5, %v7594_v30  ;;  %v1516_v30 = vmul.f32 0.17677669, %v8808_v0  ;;  %v1522_v0 = vmul.f32 0.17677669, %v8832_v25  ;;  %v8926_v25 = vand.u32 4294967264, %v8404_v8 }
 0x285   : > { %v7612_v48 = vpack.c.bf16 %v1335_v63, %v1330_v27  ;;  %v6944_v39 = vpop.f32.mrb[36].mxu1  ;;  %7602 = vmatprep.subr.msk.bf16.mxu1 %vm8858_vm5, %v7600_v56  ;;  %v1514_v63 = vmul.f32 0.17677669, %v8799_v35  ;;  %v1520_v35 = vmul.f32 0.17677669, %v8824_v50  ;;  %v907_v27 = vand.u32 4294967264, %v8443_v26 }
 0x286   : > { %v1345_v4 = vadd.f32 %v6944_v39, %v1212_v5  ;;  %v1339_v12 = vpop.f32.mrb[37].mxu1  ;;  %v1526_v50 = vmul.f32 0.17677669, %v8853_v46  ;;  %vm919_vm10 = vcmp.eq.s32.totalorder %v902_v62, %v8926_v25  ;;  %v905_v46 = vand.u32 4294967264, %v8422_v15 }
 0x287   : > { %v1340_v20 = vadd.f32 %v1339_v12, %v1212_v5  ;;  %vm8942_vm14 = vmand %vm935_vm11, %vm919_vm10 }
 0x288   : > { %vm922_vm4 = vcmp.eq.s32.totalorder %v905_v46, %v8926_v25 }
 0x289   : > { %v7618_v7 = vpack.c.bf16 %v1345_v4, %v1340_v20  ;;  %v6947_v2 = vpop.f32.mrb[38].mxu1  ;;  %v908_v4 = vand.u32 4294967264, %v8452_v29  ;;  %vm8974_vm10 = vmand %vm938_vm6, %vm922_vm4 }
 0x28a   : > { %v1355_v58 = vadd.f32 %v6947_v2, %v1212_v5  ;;  %v1349_v31 = vpop.f32.mrb[39].mxu1 }
 0x28b   : > { %v1350_v6 = vadd.f32 %v1349_v31, %v1212_v5  ;;  %v1515_v5 = vmul.f32 0.17677669, %v8795_v32  ;;  %v1521_v32 = vmul.f32 0.17677669, %v8820_v34  ;;  %v1527_v34 = vmul.f32 0.17677669, %v8847_v24 }
 0x28c   : > { %7605 = vmatpush3.bf16.xpose.msk.msra.mxu1 %vm8858_vm5, %v7600_v56  ;;  %v1517_v56 = vmul.f32 0.17677669, %v8804_v54  ;;  %v1523_v54 = vmul.f32 0.17677669, %v8828_v18  ;;  %v903_v18 = vand.u32 4294967264, %v8416_v13  ;;  %v906_v13 = vand.u32 4294967264, %v8425_v16 }
 0x28d   : > { %v7624_v61 = vpack.c.bf16 %v1355_v58, %v1350_v6  ;;  %7608 = vmatprep.subr.msk.bf16.mxu1 %vm8858_vm5, %v7606_v60  ;;  %v1513_v58 = vmul.f32 0.17677669, %v8789_v19  ;;  %v1519_v19 = vmul.f32 0.17677669, %v8812_v22  ;;  %v1525_v22 = vmul.f32 0.17677669, %v8836_v23 }
 0x28e   : > { %vm920_vm8 = vcmp.eq.s32.totalorder %v903_v18, %v8926_v25  ;;  %v904_v23 = vand.u32 4294967264, %v8419_v14  ;;  %v8294_v14 = vmov -1e+30  }
 0x28f   : > { %vm952_vm12 = vmand %vm936_vm9, %vm920_vm8  ;;  %vm923_vm8 = vcmp.eq.s32.totalorder %v906_v13, %v8926_v25  ;;  %vm939_vm9 = vcmp.le.s32.totalorder %v8404_v8, %v8425_v16  ;;  %v909_v16 = vand.u32 4294967264, %v8462_v36 }
 0x290   : > { %vm921_vm15 = vcmp.eq.s32.totalorder %v904_v23, %v8926_v25 }
 0x291   : > { %vm8960_vm7 = vmand %vm937_vm1, %vm921_vm15 }
 0x292   : > { %vm8989_vm15 = vmand %vm939_vm9, %vm923_vm8  ;;  %vm942_vm8 = vcmp.le.s32.totalorder %v8404_v8, %v8462_v36  ;;  %v912_v36 = vand.u32 4294967264, %v8508_v57 }
 0x294   : > { %7611 = vmatpush3.bf16.xpose.msk.msra.mxu1 %vm8858_vm5, %v7606_v60  ;;  %v967_v60 = vand.u32 31, %v8404_v8 }
 0x295   : > { %7614 = vmatprep.subr.msk.bf16.mxu1 %vm8858_vm5, %v7612_v48 }
 0x296   : > { %vm8937_vm13 = vcmp.lt.s32.totalorder %v967_v60, 20 }
 0x297   : > { %vm970_vm2 = vmand %vm952_vm12, %vm8937_vm13  ;;  %vm924_vm12 = vcmp.eq.s32.totalorder %v907_v27, %v8926_v25 }
 0x298   : > { %vm969_vm3 = vmand %vm8942_vm14, %vm8937_vm13  ;;  %v8965_v39 = vsel %vm970_vm2, 0.0, %v8294_v14  ;;  %vm940_vm14 = vcmp.le.s32.totalorder %v8404_v8, %v8443_v26  ;;  %vm925_vm2 = vcmp.eq.s32.totalorder %v908_v4, %v8926_v25  ;;  %v910_v26 = vand.u32 4294967264, %v8496_v51 }
 0x299   : > { %v8972_v12 = vsel %vm969_vm3, 0.0, %v8294_v14  ;;  %vm971_vm11 = vmand %vm8960_vm7, %vm8937_vm13  ;;  %vm941_vm3 = vcmp.le.s32.totalorder %v8404_v8, %v8452_v29  ;;  %vm926_vm7 = vcmp.eq.s32.totalorder %v909_v16, %v8926_v25  ;;  %v911_v29 = vand.u32 4294967264, %v8499_v52 }
 0x29a   : > { %vm972_vm1 = vmand %vm8974_vm10, %vm8937_vm13  ;;  %vm944_vm10 = vcmp.le.s32.totalorder %v8404_v8, %v8499_v52  ;;  %v917_v16 = vand.u32 4294967264, %v8545_v17 }
 0x29b   : > { %vm9008_vm4 = vmand %vm940_vm14, %vm924_vm12  ;;  %vm927_vm12 = vcmp.eq.s32.totalorder %v910_v26, %v8926_v25  ;;  %vm943_vm14 = vcmp.le.s32.totalorder %v8404_v8, %v8496_v51  ;;  %v913_v51 = vand.u32 4294967264, %v8513_v59 }
 0x29c   : > { %7617 = vmatpush3.bf16.xpose.msk.msra.mxu1 %vm8858_vm5, %v7612_v48  ;;  %vm973_vm6 = vmand %vm8989_vm15, %vm8937_vm13 }
 0x29d   : > { %7620 = vmatprep.subr.msk.bf16.mxu1 %vm8858_vm5, %v7618_v7  ;;  %vm9021_vm9 = vmand %vm941_vm3, %vm925_vm2  ;;  %vm928_vm3 = vcmp.eq.s32.totalorder %v911_v29, %v8926_v25 }
 0x29e   : > { %vm9047_vm15 = vmand %vm942_vm8, %vm926_vm7  ;;  %vm929_vm7 = vcmp.eq.s32.totalorder %v912_v36, %v8926_v25  ;;  %vm945_vm8 = vcmp.le.s32.totalorder %v8404_v8, %v8508_v57  ;;  %v915_v57 = vand.u32 4294967264, %v8529_v3 }
 0x29f   : > { %vm975_vm2 = vmand %vm9021_vm9, %vm8937_vm13 }
 0x2a0   : > { %vm9089_vm9 = vmand %vm944_vm10, %vm928_vm3  ;;  %vm947_vm10 = vcmp.le.s32.totalorder %v8404_v8, %v8524_v1 }
 0x2a1   : > { %vm978_vm3 = vmand %vm9089_vm9, %vm8937_vm13 }
 0x2a4   : > { %7623 = vmatpush3.bf16.xpose.msk.msra.mxu1 %vm8858_vm5, %v7618_v7 }
 0x2a5   : > { %7626 = vmatprep.subr.msk.bf16.mxu1 %vm8858_vm5, %v7624_v61 }
 0x2ac   : > { %7629 = vmatpush3.bf16.xpose.msk.msra.mxu1 %vm8858_vm5, %v7624_v61  ;;  %v9006_v61 = vsel %vm971_vm11, 0.0, %v8294_v14  ;;  %vm974_vm11 = vmand %vm9008_vm4, %vm8937_vm13  ;;  %vm930_vm4 = vcmp.eq.s32.totalorder %v913_v51, %v8926_v25 }
 0x2ad   : > { %v9084_v52 = vsel %vm974_vm11, 0.0, %v8294_v14  ;;  %vm946_vm11 = vcmp.le.s32.totalorder %v8404_v8, %v8513_v59  ;;  %v916_v59 = vand.u32 4294967264, %v8540_v11 }
 0x2b3   : > { %7013 = vmatmul.mubr.msk.f32.vlgmr.msra.gmra.mrb[40].mxu1 %vm510_vm0, %v1513_v58 }
 0x2b4   : > { %7015 = vmatprep.mubr.msk.f32.mxu1 %vm510_vm0, %v1514_v63 }
 0x2b7   : > { %7016 = vmatmul.mubr.msk.f32.gmra.mrb[42].mxu1 %vm510_vm0, %v1515_v5 }
 0x2b8   : > { %7018 = vmatprep.mubr.msk.f32.mxu1 %vm510_vm0, %v1516_v30 }
 0x2bb   : > { %7019 = vmatmul.mubr.msk.f32.gmra.mrb[44].mxu1 %vm510_vm0, %v1517_v56 }
 0x2bc   : > { %7021 = vmatprep.mubr.msk.f32.mxu1 %vm510_vm0, %v1518_v10  ;;  %v9042_v10 = vsel %vm972_vm1, 0.0, %v8294_v14  ;;  %vm9060_vm1 = vmand %vm943_vm14, %vm927_vm12 }
 0x2bd   : > { %vm977_vm12 = vmand %vm9060_vm1, %vm8937_vm13 }
 0x2be   : > { %vm9103_vm14 = vmand %vm945_vm8, %vm929_vm7  ;;  %v9134_v48 = vsel %vm977_vm12, 0.0, %v8294_v14 }
 0x2bf   : > { %7022 = vmatmul.mubr.msk.f32.gmra.mrb[46].mxu1 %vm510_vm0, %v1519_v19  ;;  %v9045_v19 = vsel %vm973_vm6, 0.0, %v8294_v14  ;;  %vm976_vm6 = vmand %vm9047_vm15, %vm8937_vm13  ;;  %11400 = vst [vmem:[#allocation11_spill] sm:$0xff] %v9134_v48  ;;  %vm932_vm15 = vcmp.eq.s32.totalorder %v915_v57, %v8926_v25 }
 0x2c0   : > { %7024 = vmatprep.mubr.msk.f32.mxu1 %vm510_vm0, %v1520_v35  ;;  %v9131_v27 = vsel %vm976_vm6, 0.0, %v8294_v14  ;;  %vm9136_vm1 = vmand %vm946_vm11, %vm930_vm4  ;;  %vm948_vm6 = vcmp.le.s32.totalorder %v8404_v8, %v8529_v3  ;;  %vm933_vm4 = vcmp.eq.s32.totalorder %v916_v59, %v8926_v25  ;;  %vm949_vm11 = vcmp.le.s32.totalorder %v8404_v8, %v8540_v11 }
 0x2c1   : > { %vm979_vm7 = vmand %vm9103_vm14, %vm8937_vm13  ;;  %v9175_v3 = vsel %vm978_vm3, 0.0, %v8294_v14  ;;  %vm934_vm3 = vcmp.eq.s32.totalorder %v917_v16, %v8926_v25 }
 0x2c2   : > { %vm980_vm12 = vmand %vm9136_vm1, %vm8937_vm13  ;;  %11405 = vst [vmem:[#allocation12_spill] sm:$0xff] %v9175_v3  ;;  %v9178_v26 = vsel %vm979_vm7, 0.0, %v8294_v14 }
 0x2c3   : > { %7025 = vmatmul.mubr.msk.f32.gmra.mrb[48].mxu1 %vm510_vm0, %v1521_v32  ;;  %11406 = vst [vmem:[#allocation13_spill] sm:$0xff] %v9178_v26  ;;  %vm9180_vm14 = vmand %vm948_vm6, %vm932_vm15  ;;  %v9209_v36 = vsel %vm980_vm12, 0.0, %v8294_v14 }
 0x2c4   : > { %7027 = vmatprep.mubr.msk.f32.mxu1 %vm510_vm0, %v1522_v0  ;;  %vm9190_vm9 = vmand %vm949_vm11, %vm933_vm4  ;;  %11411 = vst [vmem:[#allocation14_spill] sm:$0xff] %v9209_v36 }
 0x2c5   : > { %vm982_vm7 = vmand %vm9180_vm14, %vm8937_vm13 }
 0x2c6   : > { %vm983_vm1 = vmand %vm9190_vm9, %vm8937_vm13  ;;  %v9231_v51 = vsel %vm982_vm7, 0.0, %v8294_v14 }
 0x2c7   : > { %7028 = vmatmul.mubr.msk.f32.gmra.mrb[50].mxu1 %vm510_vm0, %v1523_v54  ;;  %11413 = vst [vmem:[#allocation16_spill] sm:$0xff] %v9231_v51 }
 0x2c8   : > { %7030 = vmatprep.mubr.msk.f32.mxu1 %vm510_vm0, %v1524_v28  ;;  %v914_v28 = vand.u32 4294967264, %v8524_v1 }
 0x2cb   : > { %7031 = vmatmul.mubr.msk.f32.gmra.mrb[52].mxu1 %vm510_vm0, %v1525_v22 }
 0x2cc   : > { %7033 = vmatprep.mubr.msk.f32.mxu1 %vm510_vm0, %v1526_v50 }
 0x2cf   : > { %7034 = vmatmul.mubr.msk.f32.gmra.mrb[54].mxu1 %vm510_vm0, %v1527_v34  ;;  %v9087_v34 = vsel %vm975_vm2, 0.0, %v8294_v14  ;;  %vm9108_vm2 = vcmp.eq.s32.totalorder %v914_v28, %v8926_v25 }
 0x2d0   : > { %vm9151_vm8 = vmand %vm947_vm10, %vm9108_vm2  ;;  %vm950_vm10 = vcmp.le.s32.totalorder %v8404_v8, %v8545_v17 }
 0x2d1   : > { %vm981_vm2 = vmand %vm9151_vm8, %vm8937_vm13 }
 0x2d2   : > { %v9216_v35 = vsel %vm981_vm2, 0.0, %v8294_v14  ;;  %vm966_vm15 = vmand %vm950_vm10, %vm934_vm3 }
 0x2d3   : > { %11412 = vst [vmem:[#allocation15_spill] sm:$0xff] %v9216_v35  ;;  %vm984_vm6 = vmand %vm966_vm15, %vm8937_vm13  ;;  %vm2802_vm13 = vcmask 523264  }
 0x2d4   : > { %v9247_v57 = vsel %vm984_vm6, 0.0, %v8294_v14 }
 0x2d5   : > { %11415 = vst [vmem:[#allocation18_spill] sm:$0xff] %v9247_v57 }
 0x386   : > { %v7014_v20 = vpop.f32.mrb[40].mxu1 }
 0x387   : > { %v8987_v7 = vadd.f32 %v7014_v20, %v8965_v39  ;;  %v1690_v2 = vpop.f32.mrb[41].mxu1 }
 0x388   : > { %v8994_v6 = vadd.f32 %v1690_v2, %v8972_v12 }
 0x389   : > { %1771 = vmax.xlane.f32.xlu1 %v8987_v7 }
 0x38a   : > { %v7017_v63 = vpop.f32.mrb[42].mxu1  ;;  %1769 = vmax.xlane.f32.xlu0 %v8994_v6 }
 0x38b   : > { %v1700_v5 = vpop.f32.mrb[43].mxu1  ;;  %v9066_v22 = vadd.f32 %v7017_v63, %v9042_v10 }
 0x38c   : > { %v9026_v56 = vadd.f32 %v1700_v5, %v9006_v61 }
 0x38e   : > { %v7020_v32 = vpop.f32.mrb[44].mxu1  ;;  %1773 = vmax.xlane.f32.xlu0 %v9026_v56 }
 0x38f   : > { %v1710_v0 = vpop.f32.mrb[45].mxu1  ;;  %v9113_v33 = vadd.f32 %v7020_v32, %v9084_v52 }
 0x390   : > { %v9069_v50 = vadd.f32 %v1710_v0, %v9045_v19  ;;  %v9234_v0 = vsel %vm983_vm1, 0.0, %v8294_v14 }
 0x391   : > { %11414 = vst [vmem:[#allocation17_spill] sm:$0xff] %v9234_v0 }
 0x392   : > { %v7023_v62 = vpop.f32.mrb[46].mxu1  ;;  %1777 = vmax.xlane.f32.xlu1 %v9069_v50  ;;  %1775 = vmax.xlane.f32.xlu0 %v9066_v22 }
 0x393   : > { %v1720_v60 = vpop.f32.mrb[47].mxu1  ;;  %v9157_v2 = vadd.f32 %v7023_v62, %v9131_v27 }
 0x394   : > { %v9116_v13 = vadd.f32 %v1720_v60, %v9087_v34 }
 0x396   : > { %v7026_v15 = vpop.f32.mrb[48].mxu1  ;;  %1781 = vmax.xlane.f32.xlu1 %v9116_v13  ;;  %1779 = vmax.xlane.f32.xlu0 %v9113_v33 }
 0x397   : > { %v1730_v1 = vpop.f32.mrb[49].mxu1  ;;  %v9195_v5 = vadd.f32 %v7026_v15, %v9175_v3 }
 0x398   : > { %v9160_v31 = vadd.f32 %v1730_v1, %v9134_v48 }
 0x39a   : > { %v7029_v63 = vpop.f32.mrb[50].mxu1  ;;  %1785 = vmax.xlane.f32.xlu1 %v9160_v31  ;;  %1783 = vmax.xlane.f32.xlu0 %v9157_v2 }
 0x39b   : > { %v1740_v11 = vpop.f32.mrb[51].mxu1  ;;  %v9225_v17 = vadd.f32 %v7029_v63, %v9209_v36 }
 0x39c   : > { %v9198_v30 = vadd.f32 %v1740_v11, %v9178_v26 }
 0x39e   : > { %v7032_v25 = vpop.f32.mrb[52].mxu1  ;;  %1789 = vmax.xlane.f32.xlu1 %v9198_v30  ;;  %1787 = vmax.xlane.f32.xlu0 %v9195_v5 }
 0x39f   : > { %v1750_v8 = vpop.f32.mrb[53].mxu1  ;;  %v9241_v18 = vadd.f32 %v7032_v25, %v9231_v51 }
 0x3a0   : > { %v9228_v32 = vadd.f32 %v1750_v8, %v9216_v35 }
 0x3a2   : > { %1793 = vmax.xlane.f32.xlu1 %v9228_v32  ;;  %1791 = vmax.xlane.f32.xlu0 %v9225_v17  ;;  %v7035_v54 = vpop.f32.mrb[54].mxu1 }
 0x3a3   : > { %v1760_v28 = vpop.f32.mrb[55].mxu1  ;;  %v9252_v60 = vadd.f32 %v7035_v54, %v9247_v57  ;;  %v6153_v57 = vld [vmem:[%s11334_s3 + $0x70] sm:$0xff] }
 0x3a4   : > { %v9244_v62 = vadd.f32 %v1760_v28, %v9234_v0 }
 0x3a6   : > { %1795 = vmax.xlane.f32.xlu0 %v9241_v18  ;;  %1797 = vmax.xlane.f32.xlu1 %v9244_v62 }
 0x3aa   : > { %1799 = vmax.xlane.f32.xlu0 %v9252_v60 }
 0x416   : > { %v1772_v24 = vpop.xlane.xlu1 %1771 }
 0x417   : > { %v1802_v23 = vsub.f32 %v8987_v7, %v1772_v24  ;;  %v1770_v46 = vpop.xlane.xlu0 %1769 }
 0x418   : > { %v1801_v59 = vsub.f32 %v8994_v6, %v1770_v46 }
 0x419   : > { %v1819_v4 = vmul.f32 1.442695, %v1802_v23 }
 0x41a   : > { %v1817_v15 = vmul.f32 1.442695, %v1801_v59 }
 0x41b   : > { %7905 = vpow2.f32 %v1819_v4  ;;  %v1774_v14 = vpop.xlane.xlu0 %1773 }
 0x41c   : > { %7907 = vpow2.f32 %v1817_v15  ;;  %v1803_v1 = vsub.f32 %v9026_v56, %v1774_v14 }
 0x41e   : > { %v1821_v20 = vmul.f32 1.442695, %v1803_v1 }
 0x41f   : > { %v1778_v16 = vpop.xlane.xlu1 %1777  ;;  %v1776_v58 = vpop.xlane.xlu0 %1775 }
 0x420   : > { %7909 = vpow2.f32 %v1821_v20  ;;  %v1805_v63 = vsub.f32 %v9069_v50, %v1778_v16  ;;  %v1804_v11 = vsub.f32 %v9066_v22, %v1776_v58 }
 0x422   : > { %v1825_v29 = vmul.f32 1.442695, %v1805_v63  ;;  %v1823_v7 = vmul.f32 1.442695, %v1804_v11 }
 0x423   : > { %v1782_v25 = vpop.xlane.xlu1 %1781  ;;  %v1780_v8 = vpop.xlane.xlu0 %1779 }
 0x424   : > { %7911 = vpow2.f32 %v1825_v29  ;;  %v1807_v6 = vsub.f32 %v9116_v13, %v1782_v25  ;;  %v1806_v54 = vsub.f32 %v9113_v33, %v1780_v8 }
 0x425   : > { %v9262_v28 = vpop.eup %7905  ;;  %7913 = vpow2.f32 %v1823_v7 }
 0x426   : > { %v9264_v56 = vpop.eup %7907  ;;  %v1829_v24 = vmul.f32 1.442695, %v1807_v6  ;;  %v1827_v23 = vmul.f32 1.442695, %v1806_v54  ;;  %1851 = vadd.xlane.f32.xlu0 %v9262_v28 }
 0x427   : > { %v1786_v50 = vpop.xlane.xlu1 %1785  ;;  %v1784_v22 = vpop.xlane.xlu0 %1783  ;;  %1849 = vadd.xlane.f32.xlu1 %v9264_v56 }
 0x428   : > { %7915 = vpow2.f32 %v1829_v24  ;;  %v1809_v46 = vsub.f32 %v9160_v31, %v1786_v50  ;;  %v1808_v13 = vsub.f32 %v9157_v2, %v1784_v22 }
 0x429   : > { %7917 = vpow2.f32 %v1827_v23 }
 0x42a   : > { %v9270_v33 = vpop.eup %7909  ;;  %v1833_v59 = vmul.f32 1.442695, %v1809_v46  ;;  %v1831_v4 = vmul.f32 1.442695, %v1808_v13 }
 0x42b   : > { %v1790_v15 = vpop.xlane.xlu1 %1789  ;;  %v1788_v14 = vpop.xlane.xlu0 %1787  ;;  %1853 = vadd.xlane.f32.xlu1 %v9270_v33 }
 0x42c   : > { %7919 = vpow2.f32 %v1833_v59  ;;  %v1811_v1 = vsub.f32 %v9198_v30, %v1790_v15  ;;  %v1810_v20 = vsub.f32 %v9195_v5, %v1788_v14 }
 0x42d   : > { %7921 = vpow2.f32 %v1831_v4 }
 0x42e   : > { %v9275_v16 = vpop.eup %7911  ;;  %v1837_v31 = vmul.f32 1.442695, %v1811_v1  ;;  %v1835_v58 = vmul.f32 1.442695, %v1810_v20  ;;  %v6151_v20 = vld [vmem:[%s11334_s3 + $0x60] sm:$0xff] }
 0x42f   : > { %v9277_v2 = vpop.eup %7913  ;;  %v1794_v63 = vpop.xlane.xlu1 %1793  ;;  %1857 = vadd.xlane.f32.xlu1 %v9275_v16 }
 0x430   : > { %v1792_v11 = vpop.xlane.xlu0 %1791  ;;  %7923 = vpow2.f32 %v1837_v31  ;;  %v1813_v29 = vsub.f32 %v9228_v32, %v1794_v63  ;;  %1855 = vadd.xlane.f32.xlu0 %v9277_v2  ;;  %v6152_v31 = vld [vmem:[%s11334_s3 + $0x68] sm:$0xff] }
 0x431   : > { %v1812_v7 = vsub.f32 %v9225_v17, %v1792_v11  ;;  %7925 = vpow2.f32 %v1835_v58  ;;  %v7662_v58 = vpack.c.bf16 %v6152_v31, %v6151_v20 }
 0x432   : > { %v9283_v5 = vpop.eup %7915  ;;  %v1841_v30 = vmul.f32 1.442695, %v1813_v29 }
 0x433   : > { %v1839_v25 = vmul.f32 1.442695, %v1812_v7  ;;  %v9285_v8 = vpop.eup %7917  ;;  %1861 = vadd.xlane.f32.xlu1 %v9283_v5  ;;  %v1798_v54 = vpop.xlane.xlu1 %1797  ;;  %7663 = vmatprep.subr.bf16.mxu0 %v7662_v58 }
 0x434   : > { %v1796_v6 = vpop.xlane.xlu0 %1795  ;;  %7927 = vpow2.f32 %v1841_v30  ;;  %1859 = vadd.xlane.f32.xlu0 %v9285_v8  ;;  %v1815_v17 = vsub.f32 %v9244_v62, %v1798_v54 }
 0x435   : > { %v1814_v24 = vsub.f32 %v9241_v18, %v1796_v6  ;;  %7929 = vpow2.f32 %v1839_v25 }
 0x436   : > { %v9291_v32 = vpop.eup %7919  ;;  %v1845_v50 = vmul.f32 1.442695, %v1815_v17 }
 0x437   : > { %v1843_v23 = vmul.f32 1.442695, %v1814_v24  ;;  %v9293_v22 = vpop.eup %7921  ;;  %1865 = vadd.xlane.f32.xlu1 %v9291_v32 }
 0x438   : > { %v1800_v46 = vpop.xlane.xlu0 %1799  ;;  %1863 = vadd.xlane.f32.xlu0 %v9293_v22 }
 0x439   : > { %7931 = vpow2.f32 %v1843_v23  ;;  %v1816_v13 = vsub.f32 %v9252_v60, %v1800_v46 }
 0x43a   : > { %7933 = vpow2.f32 %v1845_v50  ;;  %v9298_v18 = vpop.eup %7923 }
 0x43b   : > { %v1847_v59 = vmul.f32 1.442695, %v1816_v13  ;;  %v9300_v62 = vpop.eup %7925  ;;  %1869 = vadd.xlane.f32.xlu1 %v9298_v18 }
 0x43c   : > { %1867 = vadd.xlane.f32.xlu0 %v9300_v62 }
 0x43d   : > { %7935 = vpow2.f32 %v1847_v59 }
 0x43e   : > { %v9304_v4 = vpop.eup %7927 }
 0x43f   : > { %v9306_v15 = vpop.eup %7929  ;;  %1873 = vadd.xlane.f32.xlu1 %v9304_v4 }
 0x440   : > { %1871 = vadd.xlane.f32.xlu0 %v9306_v15 }
 0x443   : > { %v9310_v60 = vpop.eup %7931 }
 0x444   : > { %v9312_v14 = vpop.eup %7933  ;;  %1875 = vadd.xlane.f32.xlu0 %v9310_v60 }
 0x445   : > { %1877 = vadd.xlane.f32.xlu1 %v9312_v14 }
 0x447   : > { %v9316_v1 = vpop.eup %7935 }
 0x448   : > { %1879 = vadd.xlane.f32.xlu0 %v9316_v1 }
 0x4b3   : > { %v1852_v63 = vpop.xlane.xlu0 %1851 }
 0x4b4   : > { %7937 = vrcp.f32 %v1852_v63  ;;  %v1850_v11 = vpop.xlane.xlu1 %1849 }
 0x4b5   : > { %7939 = vrcp.f32 %v1850_v11 }
 0x4b8   : > { %v1854_v29 = vpop.xlane.xlu1 %1853 }
 0x4b9   : > { %7941 = vrcp.f32 %v1854_v29 }
 0x4bc   : > { %v1858_v7 = vpop.xlane.xlu1 %1857 }
 0x4bd   : > { %v1856_v30 = vpop.xlane.xlu0 %1855  ;;  %7943 = vrcp.f32 %v1858_v7 }
 0x4be   : > { %v7938_v25 = vpop.eup %7937  ;;  %7945 = vrcp.f32 %v1856_v30 }
 0x4bf   : > { %v7940_v6 = vpop.eup %7939  ;;  %v1898_v54 = vmul.f32 %v7938_v25, %v1852_v63  ;;  %v6154_v63 = vld [vmem:[%s11334_s3 + $0x78] sm:$0xff] }
 0x4c0   : > { %v1897_v24 = vmul.f32 %v7940_v6, %v1850_v11  ;;  %v1862_v17 = vpop.xlane.xlu1 %1861 }
 0x4c1   : > { %v1914_v23 = vsub.f32 2.0, %v1898_v54  ;;  %v1860_v50 = vpop.xlane.xlu0 %1859  ;;  %7947 = vrcp.f32 %v1862_v17 }
 0x4c2   : > { %v1913_v46 = vsub.f32 2.0, %v1897_v24  ;;  %7949 = vrcp.f32 %v1860_v50 }
 0x4c3   : > { %v7942_v13 = vpop.eup %7941  ;;  %v1930_v59 = vmul.f32 %v7938_v25, %v1914_v23 }
 0x4c4   : > { %v1899_v20 = vmul.f32 %v7942_v13, %v1854_v29  ;;  %v1866_v31 = vpop.xlane.xlu1 %1865  ;;  %v1929_v0 = vmul.f32 %v7940_v6, %v1913_v46  ;;  %v7666_v29 = vpack.c.bf16 %v6154_v63, %v6153_v57 }
 0x4c5   : > { %v1864_v11 = vpop.xlane.xlu0 %1863  ;;  %7951 = vrcp.f32 %v1866_v31  ;;  %v1946_v25 = vmul.f32 %v9262_v28, %v1930_v59 }
 0x4c6   : > { %v1915_v54 = vsub.f32 2.0, %v1899_v20  ;;  %7953 = vrcp.f32 %v1864_v11  ;;  %v1945_v24 = vmul.f32 %v9264_v56, %v1929_v0 }
 0x4c7   : > { %v7944_v35 = vpop.eup %7943 }
 0x4c8   : > { %v7946_v23 = vpop.eup %7945  ;;  %v1901_v6 = vmul.f32 %v7944_v35, %v1858_v7  ;;  %7068 = vmatprep.mubr.f32.mxu0 %v1945_v24  ;;  %v1870_v46 = vpop.xlane.xlu1 %1869  ;;  %v1931_v51 = vmul.f32 %v7942_v13, %v1915_v54 }
 0x4c9   : > { %v1900_v26 = vmul.f32 %v7946_v23, %v1856_v30  ;;  %v1868_v36 = vpop.xlane.xlu0 %1867  ;;  %7955 = vrcp.f32 %v1870_v46  ;;  %7069 = vmatmul.mubr.f32.vlgmr.msra.gmra.mrb[32].mxu0 %v1946_v25 }
 0x4ca   : > { %v1917_v48 = vsub.f32 2.0, %v1901_v6  ;;  %7957 = vrcp.f32 %v1868_v36  ;;  %v1947_v20 = vmul.f32 %v9270_v33, %v1931_v51  ;;  %7665 = vmatpush3.bf16.msra.mxu0 %v7662_v58 }
 0x4cb   : > { %v7948_v3 = vpop.eup %7947  ;;  %v1916_v0 = vsub.f32 2.0, %v1900_v26  ;;  %7667 = vmatprep.subr.bf16.mxu0 %v7666_v29 }
 0x4cc   : > { %v7950_v56 = vpop.eup %7949  ;;  %v1903_v28 = vmul.f32 %v7948_v3, %v1862_v17  ;;  %7071 = vmatprep.mubr.f32.mxu0 %v1947_v20  ;;  %v1874_v57 = vpop.xlane.xlu1 %1873  ;;  %v1933_v7 = vmul.f32 %v7944_v35, %v1917_v48 }
 0x4cd   : > { %v1902_v59 = vmul.f32 %v7950_v56, %v1860_v50  ;;  %v1872_v63 = vpop.xlane.xlu0 %1871  ;;  %7959 = vrcp.f32 %v1874_v57  ;;  %v1932_v30 = vmul.f32 %v7946_v23, %v1916_v0 }
 0x4ce   : > { %v1919_v13 = vsub.f32 2.0, %v1903_v28  ;;  %7961 = vrcp.f32 %v1872_v63  ;;  %v1949_v54 = vmul.f32 %v9275_v16, %v1933_v7  ;;  %7669 = vmatpush3.bf16.msra.mxu0 %v7666_v29 }
 0x4cf   : > { %v7952_v24 = vpop.eup %7951  ;;  %v1918_v51 = vsub.f32 2.0, %v1902_v59  ;;  %v1948_v33 = vmul.f32 %v9277_v2, %v1932_v30 }
 0x4d0   : > { %v7954_v26 = vpop.eup %7953  ;;  %v1905_v58 = vmul.f32 %v7952_v24, %v1866_v31  ;;  %v1935_v25 = vmul.f32 %v7948_v3, %v1919_v13 }
 0x4d1   : > { %v1904_v17 = vmul.f32 %v7954_v26, %v1864_v11  ;;  %v1876_v6 = vpop.xlane.xlu0 %1875  ;;  %7072 = vmatmul.mubr.f32.gmra.mrb[34].mxu0 %v1948_v33  ;;  %v1934_v35 = vmul.f32 %v7950_v56, %v1918_v51 }
 0x4d2   : > { %v1878_v48 = vpop.xlane.xlu1 %1877  ;;  %v1921_v50 = vsub.f32 2.0, %v1905_v58  ;;  %7963 = vrcp.f32 %v1876_v6  ;;  %7074 = vmatprep.mubr.f32.mxu0 %v1949_v54  ;;  %v1951_v23 = vmul.f32 %v9283_v5, %v1935_v25 }
 0x4d3   : > { %v7956_v20 = vpop.eup %7955  ;;  %v1920_v16 = vsub.f32 2.0, %v1904_v17  ;;  %7965 = vrcp.f32 %v1878_v48  ;;  %v1950_v29 = vmul.f32 %v9285_v8, %v1934_v35 }
 0x4d4   : > { %v7958_v0 = vpop.eup %7957  ;;  %v1907_v2 = vmul.f32 %v7956_v20, %v1870_v46  ;;  %v1937_v28 = vmul.f32 %v7952_v24, %v1921_v50 }
 0x4d5   : > { %v1906_v31 = vmul.f32 %v7958_v0, %v1868_v36  ;;  %v1880_v3 = vpop.xlane.xlu0 %1879  ;;  %7075 = vmatmul.mubr.f32.gmra.mrb[36].mxu0 %v1950_v29  ;;  %v1936_v11 = vmul.f32 %v7954_v26, %v1920_v16 }
 0x4d6   : > { %v1923_v7 = vsub.f32 2.0, %v1907_v2  ;;  %7967 = vrcp.f32 %v1880_v3  ;;  %7077 = vmatprep.mubr.f32.mxu0 %v1951_v23  ;;  %v1953_v56 = vmul.f32 %v9291_v32, %v1937_v28 }
 0x4d7   : > { %v7960_v59 = vpop.eup %7959  ;;  %v1922_v30 = vsub.f32 2.0, %v1906_v31  ;;  %v1952_v5 = vmul.f32 %v9293_v22, %v1936_v11 }
 0x4d8   : > { %v7962_v13 = vpop.eup %7961  ;;  %v1909_v54 = vmul.f32 %v7960_v59, %v1874_v57  ;;  %v1939_v51 = vmul.f32 %v7956_v20, %v1923_v7 }
 0x4d9   : > { %v1908_v8 = vmul.f32 %v7962_v13, %v1872_v63  ;;  %7078 = vmatmul.mubr.f32.gmra.mrb[38].mxu0 %v1952_v5  ;;  %v1938_v46 = vmul.f32 %v7958_v0, %v1922_v30 }
 0x4da   : > { %v1925_v24 = vsub.f32 2.0, %v1909_v54  ;;  %7080 = vmatprep.mubr.f32.mxu0 %v1953_v56  ;;  %v1955_v36 = vmul.f32 %v9298_v18, %v1939_v51  ;;  %v11361_v51 = vsub.s32 3, %v8406_v9 }
 0x4db   : > { %v1924_v33 = vsub.f32 2.0, %v1908_v8  ;;  %v1954_v26 = vmul.f32 %v9300_v62, %v1938_v46  ;;  %v9367_v8 = vld [vmem:[%s11337_s6] sm:$0xff] }
 0x4dc   : > { %v7964_v58 = vpop.eup %7963  ;;  %v1941_v25 = vmul.f32 %v7960_v59, %v1925_v24  ;;  %v9372_v46 = vrot.slane %v9367_v8, %v11361_v51 }
 0x4dd   : > { %v7966_v32 = vpop.eup %7965  ;;  %v1910_v17 = vmul.f32 %v7964_v58, %v1876_v6  ;;  %7081 = vmatmul.mubr.f32.gmra.mrb[40].mxu0 %v1954_v26  ;;  %v1940_v35 = vmul.f32 %v7962_v13, %v1924_v33 }
 0x4de   : > { %v1911_v22 = vmul.f32 %v7966_v32, %v1878_v48  ;;  %7083 = vmatprep.mubr.f32.mxu0 %v1955_v36  ;;  %v1957_v57 = vmul.f32 %v9304_v4, %v1941_v25 }
 0x4df   : > { %v1926_v63 = vsub.f32 2.0, %v1910_v17  ;;  %v1956_v50 = vmul.f32 %v9306_v15, %v1940_v35 }
 0x4e0   : > { %v7968_v23 = vpop.eup %7967  ;;  %v1927_v20 = vsub.f32 2.0, %v1911_v22 }
 0x4e1   : > { %v1912_v16 = vmul.f32 %v7968_v23, %v1880_v3  ;;  %7084 = vmatmul.mubr.f32.gmra.mrb[42].mxu0 %v1956_v50  ;;  %v1942_v18 = vmul.f32 %v7964_v58, %v1926_v63 }
 0x4e2   : > { %7086 = vmatprep.mubr.f32.mxu0 %v1957_v57  ;;  %v1943_v62 = vmul.f32 %v7966_v32, %v1927_v20 }
 0x4e3   : > { %v1928_v29 = vsub.f32 2.0, %v1912_v16  ;;  %v1958_v0 = vmul.f32 %v9310_v60, %v1942_v18 }
 0x4e4   : > { %v1959_v6 = vmul.f32 %v9312_v14, %v1943_v62 }
 0x4e5   : > { %7087 = vmatmul.mubr.f32.gmra.mrb[44].mxu0 %v1958_v0  ;;  %v1944_v48 = vmul.f32 %v7968_v23, %v1928_v29 }
 0x4e6   : > { %7089 = vmatprep.mubr.f32.mxu0 %v1959_v6 }
 0x4e7   : > { %v1960_v4 = vmul.f32 %v9316_v1, %v1944_v48 }
 0x4e9   : > { %7090 = vmatmul.mubr.f32.gmra.mrb[46].mxu0 %v1960_v4 }
 0x59c   : > { %v7070_v2 = vpop.f32.mrb[32].mxu0 }
 0x59d   : > { %v2027_v15 = vpop.f32.mrb[33].mxu0 }
 0x59e   : > { %7100 = vmatprep.mubr.msk.f32.mxu0 %vm510_vm0, %v2027_v15 }
 0x59f   : > { %7101 = vmatmul.mubr.msk.f32.vlgmr.msra.gmra.mrb[48].mxu0 %vm510_vm0, %v7070_v2 }
 0x5a4   : > { %v7073_v28 = vpop.f32.mrb[34].mxu0 }
 0x5a5   : > { %v2037_v31 = vpop.f32.mrb[35].mxu0 }
 0x5a6   : > { %7103 = vmatprep.mubr.msk.f32.mxu0 %vm510_vm0, %v2037_v31 }
 0x5a7   : > { %7104 = vmatmul.mubr.msk.f32.gmra.mrb[50].mxu0 %vm510_vm0, %v7073_v28 }
 0x5a8   : > { %v7076_v60 = vpop.f32.mrb[36].mxu0 }
 0x5a9   : > { %v2047_v14 = vpop.f32.mrb[37].mxu0 }
 0x5aa   : > { %7106 = vmatprep.mubr.msk.f32.mxu0 %vm510_vm0, %v2047_v14 }
 0x5ab   : > { %7107 = vmatmul.mubr.msk.f32.gmra.mrb[52].mxu0 %vm510_vm0, %v7076_v60 }
 0x5ac   : > { %v7079_v1 = vpop.f32.mrb[38].mxu0 }
 0x5ad   : > { %v2057_v3 = vpop.f32.mrb[39].mxu0 }
 0x5ae   : > { %7109 = vmatprep.mubr.msk.f32.mxu0 %vm510_vm0, %v2057_v3 }
 0x5af   : > { %7110 = vmatmul.mubr.msk.f32.gmra.mrb[54].mxu0 %vm510_vm0, %v7079_v1 }
 0x5b0   : > { %v7082_v11 = vpop.f32.mrb[40].mxu0 }
 0x5b1   : > { %v2067_v7 = vpop.f32.mrb[41].mxu0 }
 0x5b2   : > { %7112 = vmatprep.mubr.msk.f32.mxu0 %vm510_vm0, %v2067_v7 }
 0x5b3   : > { %7113 = vmatmul.mubr.msk.f32.gmra.mrb[56].mxu0 %vm510_vm0, %v7082_v11 }
 0x5b4   : > { %v7085_v56 = vpop.f32.mrb[42].mxu0 }
 0x5b5   : > { %v2077_v59 = vpop.f32.mrb[43].mxu0 }
 0x5b6   : > { %7115 = vmatprep.mubr.msk.f32.mxu0 %vm510_vm0, %v2077_v59 }
 0x5b7   : > { %7116 = vmatmul.mubr.msk.f32.gmra.mrb[58].mxu0 %vm510_vm0, %v7085_v56 }
 0x5b8   : > { %v7088_v30 = vpop.f32.mrb[44].mxu0 }
 0x5b9   : > { %v2087_v5 = vpop.f32.mrb[45].mxu0 }
 0x5ba   : > { %7118 = vmatprep.mubr.msk.f32.mxu0 %vm510_vm0, %v2087_v5 }
 0x5bb   : > { %7119 = vmatmul.mubr.msk.f32.gmra.mrb[60].mxu0 %vm510_vm0, %v7088_v30 }
 0x5bc   : > { %v7091_v13 = vpop.f32.mrb[46].mxu0 }
 0x5bd   : > { %v2097_v54 = vpop.f32.mrb[47].mxu0 }
 0x5be   : > { %7121 = vmatprep.mubr.msk.f32.mxu0 %vm510_vm0, %v2097_v54 }
 0x5bf   : > { %7122 = vmatmul.mubr.msk.f32.gmra.mrb[62].mxu0 %vm510_vm0, %v7091_v13 }
 0x672   : > { %v7102_v24 = vpop.f32.mrb[48].mxu0 }
 0x673   : > { %v2235_v36 = vadd.f32 %v7102_v24, %v9372_v46  ;;  %v2229_v33 = vpop.f32.mrb[49].mxu0 }
 0x674   : > { %v2230_v26 = vadd.f32 %v2229_v33, %v9372_v46 }
 0x675   : > { %v9377_v58 = vadd.f32 %v8642_v37, %v2235_v36 }
 0x676   : > { %v9380_v25 = vadd.f32 %v2230_v26, %v8644_v38  ;;  %v11416_v26 = vld [vmem:[#allocation5_spill] sm:$0xff] }
 0x677   : > { %v2327_v32 = vsel %vm510_vm0, %v9377_v58, 0.0 }
 0x678   : > { %2328 = vadd.xlane.f32.xlu0 %v2327_v32  ;;  %v2324_v17 = vsel %vm510_vm0, %v9380_v25, 0.0 }
 0x679   : > { %2325 = vadd.xlane.f32.xlu1 %v2324_v17  ;;  %v11417_v17 = vld [vmem:[#allocation6_spill] sm:$0xff] }
 0x67a   : > { %v7105_v35 = vpop.f32.mrb[50].mxu0 }
 0x67b   : > { %v2245_v22 = vadd.f32 %v7105_v35, %v9372_v46  ;;  %v2239_v57 = vpop.f32.mrb[51].mxu0 }
 0x67c   : > { %v2240_v63 = vadd.f32 %v2239_v57, %v9372_v46 }
 0x67d   : > { %v9389_v37 = vadd.f32 %v8654_v40, %v2245_v22 }
 0x67e   : > { %v7108_v50 = vpop.f32.mrb[52].mxu0  ;;  %v9392_v38 = vadd.f32 %v2240_v63, %v8656_v41 }
 0x67f   : > { %v2255_v23 = vadd.f32 %v7108_v50, %v9372_v46  ;;  %v2249_v20 = vpop.f32.mrb[53].mxu0  ;;  %v2333_v16 = vsel %vm510_vm0, %v9389_v37, 0.0 }
 0x680   : > { %v2250_v18 = vadd.f32 %v2249_v20, %v9372_v46  ;;  %2334 = vadd.xlane.f32.xlu0 %v2333_v16  ;;  %v2330_v62 = vsel %vm510_vm0, %v9392_v38, 0.0  ;;  %v11419_v16 = vld [vmem:[#allocation8_spill] sm:$0xff] }
 0x681   : > { %2331 = vadd.xlane.f32.xlu1 %v2330_v62  ;;  %v9401_v40 = vadd.f32 %v8666_v42, %v2255_v23  ;;  %v11418_v23 = vld [vmem:[#allocation7_spill] sm:$0xff] }
 0x682   : > { %v7111_v29 = vpop.f32.mrb[54].mxu0  ;;  %v9404_v41 = vadd.f32 %v2250_v18, %v8668_v43 }
 0x683   : > { %v2265_v0 = vadd.f32 %v7111_v29, %v9372_v46  ;;  %v2259_v6 = vpop.f32.mrb[55].mxu0  ;;  %v2339_v48 = vsel %vm510_vm0, %v9401_v40, 0.0 }
 0x684   : > { %v2260_v4 = vadd.f32 %v2259_v6, %v9372_v46  ;;  %2340 = vadd.xlane.f32.xlu0 %v2339_v48  ;;  %v2336_v2 = vsel %vm510_vm0, %v9404_v41, 0.0 }
 0x685   : > { %2337 = vadd.xlane.f32.xlu1 %v2336_v2  ;;  %v9413_v42 = vadd.f32 %v8678_v44, %v2265_v0  ;;  %v2574_v0 = vld [vmem:[%s11335_s4 + $0x8] sm:$0xff] }
 0x686   : > { %v7114_v15 = vpop.f32.mrb[56].mxu0  ;;  %v9416_v43 = vadd.f32 %v2260_v4, %v8680_v45 }
 0x687   : > { %v2275_v28 = vadd.f32 %v7114_v15, %v9372_v46  ;;  %v2269_v31 = vpop.f32.mrb[57].mxu0  ;;  %v2345_v60 = vsel %vm510_vm0, %v9413_v42, 0.0 }
 0x688   : > { %v2270_v14 = vadd.f32 %v2269_v31, %v9372_v46  ;;  %2346 = vadd.xlane.f32.xlu0 %v2345_v60  ;;  %v2342_v1 = vsel %vm510_vm0, %v9416_v43, 0.0 }
 0x689   : > { %2343 = vadd.xlane.f32.xlu1 %v2342_v1  ;;  %v9425_v44 = vadd.f32 %v2275_v28, %v8690_v47 }
 0x68a   : > { %v7117_v3 = vpop.f32.mrb[58].mxu0  ;;  %v9428_v45 = vadd.f32 %v2270_v14, %v8692_v49 }
 0x68b   : > { %v2285_v11 = vadd.f32 %v7117_v3, %v9372_v46  ;;  %v2279_v7 = vpop.f32.mrb[59].mxu0  ;;  %v2351_v56 = vsel %vm510_vm0, %v9425_v44, 0.0 }
 0x68c   : > { %v2280_v59 = vadd.f32 %v2279_v7, %v9372_v46  ;;  %2352 = vadd.xlane.f32.xlu0 %v2351_v56  ;;  %v2348_v30 = vsel %vm510_vm0, %v9428_v45, 0.0 }
 0x68d   : > { %2349 = vadd.xlane.f32.xlu1 %v2348_v30  ;;  %v9437_v47 = vadd.f32 %v2285_v11, %v8698_v53 }
 0x68e   : > { %v7120_v5 = vpop.f32.mrb[60].mxu0  ;;  %v9440_v49 = vadd.f32 %v2280_v59, %v8704_v55 }
 0x68f   : > { %v2295_v13 = vadd.f32 %v7120_v5, %v9372_v46  ;;  %v2289_v54 = vpop.f32.mrb[61].mxu0  ;;  %v2357_v24 = vsel %vm510_vm0, %v9437_v47, 0.0 }
 0x690   : > { %v2290_v36 = vadd.f32 %v2289_v54, %v9372_v46  ;;  %2358 = vadd.xlane.f32.xlu0 %v2357_v24  ;;  %v2354_v33 = vsel %vm510_vm0, %v9440_v49, 0.0 }
 0x691   : > { %2355 = vadd.xlane.f32.xlu1 %v2354_v33  ;;  %v9449_v53 = vadd.f32 %v2295_v13, %v11416_v26 }
 0x692   : > { %v7123_v32 = vpop.f32.mrb[62].mxu0  ;;  %v9452_v55 = vadd.f32 %v2290_v36, %v11417_v17 }
 0x693   : > { %v2305_v35 = vadd.f32 %v7123_v32, %v9372_v46  ;;  %v2299_v22 = vpop.f32.mrb[63].mxu0  ;;  %v2363_v57 = vsel %vm510_vm0, %v9449_v53, 0.0 }
 0x694   : > { %v2300_v63 = vadd.f32 %v2299_v22, %v9372_v46  ;;  %2364 = vadd.xlane.f32.xlu0 %v2363_v57  ;;  %v2360_v50 = vsel %vm510_vm0, %v9452_v55, 0.0  ;;  %v2573_v46 = vld [vmem:[%s11335_s4] sm:$0xff] }
 0x695   : > { %2361 = vadd.xlane.f32.xlu1 %v2360_v50  ;;  %v9461_v20 = vadd.f32 %v2305_v35, %v11418_v23  ;;  %v7670_v6 = vpack.c.bf16 %v2574_v0, %v2573_v46 }
 0x696   : > { %v9464_v18 = vadd.f32 %v2300_v63, %v11419_v16 }
 0x697   : > { %v2369_v62 = vsel %vm510_vm0, %v9461_v20, 0.0  ;;  %7671 = vmatprep.subr.bf16.mxu1 %v7670_v6 }
 0x698   : > { %2370 = vadd.xlane.f32.xlu0 %v2369_v62  ;;  %v2366_v29 = vsel %vm510_vm0, %v9464_v18, 0.0  ;;  %7673 = vmatpush3.bf16.msra.mxu1 %v7670_v6 }
 0x699   : > { %2367 = vadd.xlane.f32.xlu1 %v2366_v29 }
 0x705   : > { %v2329_v48 = vpop.xlane.xlu0 %2328 }
 0x706   : > { %v2374_v4 = vmul.f32 0.03125, %v2329_v48  ;;  %v2326_v2 = vpop.xlane.xlu1 %2325 }
 0x707   : > { %v2373_v15 = vmul.f32 0.03125, %v2326_v2 }
 0x708   : > { %v9477_v28 = vsub.f32 %v9377_v58, %v2374_v4 }
 0x709   : > { %v9480_v31 = vsub.f32 %v9380_v25, %v2373_v15 }
 0x70a   : > { %v2406_v60 = vmul.f32 %v9477_v28, %v9477_v28 }
 0x70b   : > { %v2405_v14 = vmul.f32 %v9480_v31, %v9480_v31 }
 0x70c   : > { %v2424_v1 = vsel %vm510_vm0, %v2406_v60, 0.0 }
 0x70d   : > { %v2335_v3 = vpop.xlane.xlu0 %2334  ;;  %2425 = vadd.xlane.f32.xlu0 %v2424_v1  ;;  %v2421_v11 = vsel %vm510_vm0, %v2405_v14, 0.0 }
 0x70e   : > { %v2376_v7 = vmul.f32 0.03125, %v2335_v3  ;;  %v2332_v56 = vpop.xlane.xlu1 %2331  ;;  %2422 = vadd.xlane.f32.xlu1 %v2421_v11 }
 0x70f   : > { %v2375_v58 = vmul.f32 0.03125, %v2332_v56 }
 0x710   : > { %v9489_v59 = vsub.f32 %v9389_v37, %v2376_v7 }
 0x711   : > { %v9492_v25 = vsub.f32 %v9392_v38, %v2375_v58  ;;  %v2341_v30 = vpop.xlane.xlu0 %2340 }
 0x712   : > { %v2378_v5 = vmul.f32 0.03125, %v2341_v30  ;;  %v2338_v13 = vpop.xlane.xlu1 %2337  ;;  %v2408_v54 = vmul.f32 %v9489_v59, %v9489_v59 }
 0x713   : > { %v2377_v24 = vmul.f32 0.03125, %v2338_v13  ;;  %v2407_v36 = vmul.f32 %v9492_v25, %v9492_v25 }
 0x714   : > { %v9499_v33 = vsub.f32 %v9401_v40, %v2378_v5  ;;  %v2430_v26 = vsel %vm510_vm0, %v2408_v54, 0.0 }
 0x715   : > { %v9503_v37 = vsub.f32 %v9404_v41, %v2377_v24  ;;  %v2347_v38 = vpop.xlane.xlu0 %2346  ;;  %2431 = vadd.xlane.f32.xlu0 %v2430_v26  ;;  %v2427_v32 = vsel %vm510_vm0, %v2407_v36, 0.0 }
 0x716   : > { %v2380_v17 = vmul.f32 0.03125, %v2347_v38  ;;  %2428 = vadd.xlane.f32.xlu1 %v2427_v32  ;;  %v2344_v35 = vpop.xlane.xlu1 %2343  ;;  %v2410_v22 = vmul.f32 %v9499_v33, %v9499_v33 }
 0x717   : > { %v2379_v57 = vmul.f32 0.03125, %v2344_v35  ;;  %v2409_v40 = vmul.f32 %v9503_v37, %v9503_v37 }
 0x718   : > { %v9511_v63 = vsub.f32 %v9413_v42, %v2380_v17  ;;  %v2436_v41 = vsel %vm510_vm0, %v2410_v22, 0.0 }
 0x719   : > { %v9515_v50 = vsub.f32 %v9416_v43, %v2379_v57  ;;  %v2353_v23 = vpop.xlane.xlu0 %2352  ;;  %2437 = vadd.xlane.f32.xlu0 %v2436_v41  ;;  %v2433_v16 = vsel %vm510_vm0, %v2409_v40, 0.0 }
 0x71a   : > { %v2382_v62 = vmul.f32 0.03125, %v2353_v23  ;;  %2434 = vadd.xlane.f32.xlu1 %v2433_v16  ;;  %v2350_v29 = vpop.xlane.xlu1 %2349  ;;  %v2412_v46 = vmul.f32 %v9511_v63, %v9511_v63 }
 0x71b   : > { %v2381_v0 = vmul.f32 0.03125, %v2350_v29  ;;  %v2411_v42 = vmul.f32 %v9515_v50, %v9515_v50 }
 0x71c   : > { %v9523_v6 = vsub.f32 %v9425_v44, %v2382_v62  ;;  %v2442_v43 = vsel %vm510_vm0, %v2412_v46, 0.0  ;;  %v2790_v46 = vld [vmem:[%s11336_s5] sm:$0xff] }
 0x71d   : > { %v9527_v48 = vsub.f32 %v9428_v45, %v2381_v0  ;;  %v2359_v4 = vpop.xlane.xlu0 %2358  ;;  %2443 = vadd.xlane.f32.xlu0 %v2442_v43  ;;  %v2439_v2 = vsel %vm510_vm0, %v2411_v42, 0.0  ;;  %v2791_v0 = vld [vmem:[%s11336_s5 + $0x8] sm:$0xff]  ;;  %v2792_v42 = vld [vmem:[%s11336_s5 + $0x10] sm:$0xff] }
 0x71e   : > { %v2384_v15 = vmul.f32 0.03125, %v2359_v4  ;;  %2440 = vadd.xlane.f32.xlu1 %v2439_v2  ;;  %v2356_v60 = vpop.xlane.xlu1 %2355  ;;  %v2414_v14 = vmul.f32 %v9523_v6, %v9523_v6  ;;  %v7678_v43 = vpack.c.bf16 %v2791_v0, %v2790_v46  ;;  %v2793_v4 = vld [vmem:[%s11336_s5 + $0x18] sm:$0xff] }
 0x71f   : > { %v2383_v1 = vmul.f32 0.03125, %v2356_v60  ;;  %v2413_v44 = vmul.f32 %v9527_v48, %v9527_v48  ;;  %v7682_v2 = vpack.c.bf16 %v2793_v4, %v2792_v42  ;;  %v2795_v60 = vld [vmem:[%s11336_s5 + $0x28] sm:$0xff] }
 0x720   : > { %v9535_v3 = vsub.f32 %v9437_v47, %v2384_v15  ;;  %v2448_v45 = vsel %vm510_vm0, %v2414_v14, 0.0  ;;  %v2794_v15 = vld [vmem:[%s11336_s5 + $0x20] sm:$0xff]  ;;  %7679 = vmatprep.subr.bf16.mxu0 %v7678_v43 }
 0x721   : > { %v9539_v11 = vsub.f32 %v9440_v49, %v2383_v1  ;;  %v2365_v7 = vpop.xlane.xlu0 %2364  ;;  %2449 = vadd.xlane.f32.xlu0 %v2448_v45  ;;  %v2445_v56 = vsel %vm510_vm0, %v2413_v44, 0.0  ;;  %7681 = vmatpush3.bf16.msra.mxu0 %v7678_v43  ;;  %v7686_v14 = vpack.c.bf16 %v2795_v60, %v2794_v15  ;;  %v2796_v1 = vld [vmem:[%s11336_s5 + $0x30] sm:$0xff]  ;;  %v2797_v44 = vld [vmem:[%s11336_s5 + $0x38] sm:$0xff] }
 0x722   : > { %v2386_v58 = vmul.f32 0.03125, %v2365_v7  ;;  %2446 = vadd.xlane.f32.xlu1 %v2445_v56  ;;  %v2362_v30 = vpop.xlane.xlu1 %2361  ;;  %v2416_v5 = vmul.f32 %v9535_v3, %v9535_v3  ;;  %7683 = vmatprep.subr.bf16.mxu0 %v7682_v2  ;;  %v7690_v45 = vpack.c.bf16 %v2797_v44, %v2796_v1 }
 0x723   : > { %v2385_v13 = vmul.f32 0.03125, %v2362_v30  ;;  %v2415_v47 = vmul.f32 %v9539_v11, %v9539_v11 }
 0x724   : > { %v9547_v54 = vsub.f32 %v9449_v53, %v2386_v58  ;;  %v2454_v49 = vsel %vm510_vm0, %v2416_v5, 0.0 }
 0x725   : > { %v9551_v24 = vsub.f32 %v9452_v55, %v2385_v13  ;;  %2455 = vadd.xlane.f32.xlu0 %v2454_v49  ;;  %v2371_v36 = vpop.xlane.xlu0 %2370  ;;  %v2451_v26 = vsel %vm510_vm0, %v2415_v47, 0.0  ;;  %7685 = vmatpush3.bf16.msra.mxu0 %v7682_v2 }
 0x726   : > { %v2388_v38 = vmul.f32 0.03125, %v2371_v36  ;;  %2452 = vadd.xlane.f32.xlu1 %v2451_v26  ;;  %v2368_v32 = vpop.xlane.xlu1 %2367  ;;  %v2418_v17 = vmul.f32 %v9547_v54, %v9547_v54  ;;  %7687 = vmatprep.subr.bf16.mxu0 %v7686_v14  ;;  %v11360_v26 = vsub.s32 4, %v8406_v9 }
 0x727   : > { %v2387_v35 = vmul.f32 0.03125, %v2368_v32  ;;  %v2417_v53 = vmul.f32 %v9551_v24, %v9551_v24 }
 0x728   : > { %v9559_v22 = vsub.f32 %v9461_v20, %v2388_v38  ;;  %v2460_v55 = vsel %vm510_vm0, %v2418_v17, 0.0  ;;  %v2575_v20 = vld [vmem:[%s11335_s4 + $0x10] sm:$0xff] }
 0x729   : > { %v9563_v57 = vsub.f32 %v9464_v18, %v2387_v35  ;;  %2461 = vadd.xlane.f32.xlu0 %v2460_v55  ;;  %v2457_v40 = vsel %vm510_vm0, %v2417_v53, 0.0  ;;  %v2576_v18 = vld [vmem:[%s11335_s4 + $0x18] sm:$0xff]  ;;  %7689 = vmatpush3.bf16.msra.mxu0 %v7686_v14 }
 0x72a   : > { %2458 = vadd.xlane.f32.xlu1 %v2457_v40  ;;  %v2420_v41 = vmul.f32 %v9559_v22, %v9559_v22  ;;  %v7674_v29 = vpack.c.bf16 %v2576_v18, %v2575_v20  ;;  %7691 = vmatprep.subr.bf16.mxu0 %v7690_v45  ;;  %v11359_v40 = vsub.s32 5, %v8406_v9 }
 0x72b   : > { %v2419_v23 = vmul.f32 %v9563_v57, %v9563_v57 }
 0x72c   : > { %v2466_v16 = vsel %vm510_vm0, %v2420_v41, 0.0  ;;  %7675 = vmatprep.subr.bf16.mxu1 %v7674_v29  ;;  %v9607_v41 = vrot.slane %v9367_v8, %v11360_v26  ;;  %v9614_v4 = vrot.slane %v9367_v8, %v11359_v40 }
 0x72d   : > { %2467 = vadd.xlane.f32.xlu0 %v2466_v16  ;;  %v2463_v62 = vsel %vm510_vm0, %v2419_v23, 0.0  ;;  %7677 = vmatpush3.bf16.msra.mxu1 %v7674_v29 }
 0x72e   : > { %2464 = vadd.xlane.f32.xlu1 %v2463_v62  ;;  %7693 = vmatpush3.bf16.msra.mxu0 %v7690_v45 }
 0x79a   : > { %v2426_v7 = vpop.xlane.xlu0 %2425 }
 0x79b   : > { %v2470_v56 = vmul.f32 0.03125, %v2426_v7  ;;  %v2423_v58 = vpop.xlane.xlu1 %2422 }
 0x79c   : > { %v2469_v30 = vmul.f32 0.03125, %v2423_v58 }
 0x79d   : > { %v2486_v5 = vadd.f32 1e-05, %v2470_v56 }
 0x79e   : > { %v2485_v13 = vadd.f32 1e-05, %v2469_v30 }
 0x79f   : > { %7969 = vrsqrt.f32 %v2486_v5 }
 0x7a0   : > { %7971 = vrsqrt.f32 %v2485_v13 }
 0x7a2   : > { %v2432_v47 = vpop.xlane.xlu0 %2431 }
 0x7a3   : > { %v2472_v49 = vmul.f32 0.03125, %v2432_v47  ;;  %v2429_v36 = vpop.xlane.xlu1 %2428 }
 0x7a4   : > { %v2471_v38 = vmul.f32 0.03125, %v2429_v36 }
 0x7a5   : > { %v2488_v32 = vadd.f32 1e-05, %v2472_v49 }
 0x7a6   : > { %v2487_v17 = vadd.f32 1e-05, %v2471_v38  ;;  %v2438_v35 = vpop.xlane.xlu0 %2437 }
 0x7a7   : > { %7973 = vrsqrt.f32 %v2488_v32  ;;  %v2474_v53 = vmul.f32 0.03125, %v2438_v35  ;;  %v2435_v55 = vpop.xlane.xlu1 %2434 }
 0x7a8   : > { %7975 = vrsqrt.f32 %v2487_v17  ;;  %v2473_v23 = vmul.f32 0.03125, %v2435_v55 }
 0x7a9   : > { %v7970_v16 = vpop.eup %7969  ;;  %v2490_v20 = vadd.f32 1e-05, %v2474_v53 }
 0x7aa   : > { %v7972_v18 = vpop.eup %7971  ;;  %v2518_v62 = vmul.f32 %v7970_v16, %v9477_v28  ;;  %v2489_v29 = vadd.f32 1e-05, %v2473_v23  ;;  %v2444_v46 = vpop.xlane.xlu0 %2443 }
 0x7ab   : > { %7977 = vrsqrt.f32 %v2490_v20  ;;  %v2476_v0 = vmul.f32 0.03125, %v2444_v46  ;;  %v2441_v42 = vpop.xlane.xlu1 %2440  ;;  %v2517_v43 = vmul.f32 %v7972_v18, %v9480_v31 }
 0x7ac   : > { %v2538_v2 = vmul.f32 %v9607_v41, %v2518_v62  ;;  %7979 = vrsqrt.f32 %v2489_v29  ;;  %v2475_v15 = vmul.f32 0.03125, %v2441_v42 }
 0x7ad   : > { %v2492_v60 = vadd.f32 1e-05, %v2476_v0  ;;  %v2537_v14 = vmul.f32 %v9607_v41, %v2517_v43 }
 0x7ae   : > { %v2491_v28 = vadd.f32 1e-05, %v2475_v15  ;;  %v2450_v1 = vpop.xlane.xlu0 %2449  ;;  %v9622_v56 = vadd.f32 %v9614_v4, %v2538_v2 }
 0x7af   : > { %7981 = vrsqrt.f32 %v2492_v60  ;;  %v2478_v44 = vmul.f32 0.03125, %v2450_v1  ;;  %v2447_v45 = vpop.xlane.xlu1 %2446  ;;  %v9619_v7 = vadd.f32 %v9614_v4, %v2537_v14 }
 0x7b0   : > { %7983 = vrsqrt.f32 %v2491_v28  ;;  %v2477_v31 = vmul.f32 0.03125, %v2447_v45 }
 0x7b1   : > { %v7974_v58 = vpop.eup %7973  ;;  %v2494_v30 = vadd.f32 1e-05, %v2478_v44  ;;  %7132 = vmatprep.mubr.msk.f32.mxu1 %vm510_vm0, %v9619_v7 }
 0x7b2   : > { %v7976_v5 = vpop.eup %7975  ;;  %v2493_v13 = vadd.f32 1e-05, %v2477_v31  ;;  %v2456_v47 = vpop.xlane.xlu0 %2455  ;;  %7133 = vmatmul.mubr.msk.f32.vlgmr.msra.gmra.mrb[56].mxu1 %vm510_vm0, %v9622_v56  ;;  %v2520_v49 = vmul.f32 %v7974_v58, %v9489_v59 }
 0x7b3   : > { %7985 = vrsqrt.f32 %v2494_v30  ;;  %v2480_v36 = vmul.f32 0.03125, %v2456_v47  ;;  %v2453_v38 = vpop.xlane.xlu1 %2452  ;;  %v2519_v32 = vmul.f32 %v7976_v5, %v9492_v25 }
 0x7b4   : > { %7987 = vrsqrt.f32 %v2493_v13  ;;  %v2479_v17 = vmul.f32 0.03125, %v2453_v38  ;;  %v2540_v35 = vmul.f32 %v9607_v41, %v2520_v49 }
 0x7b5   : > { %v7978_v53 = vpop.eup %7977  ;;  %v2496_v55 = vadd.f32 1e-05, %v2480_v36  ;;  %v2539_v23 = vmul.f32 %v9607_v41, %v2519_v32 }
 0x7b6   : > { %v7980_v16 = vpop.eup %7979  ;;  %v2495_v20 = vadd.f32 1e-05, %v2479_v17  ;;  %v2462_v18 = vpop.xlane.xlu0 %2461  ;;  %v2522_v62 = vmul.f32 %v7978_v53, %v9499_v33  ;;  %v9638_v42 = vadd.f32 %v9614_v4, %v2540_v35 }
 0x7b7   : > { %7989 = vrsqrt.f32 %v2496_v55  ;;  %v2482_v59 = vmul.f32 0.03125, %v2462_v18  ;;  %v2459_v29 = vpop.xlane.xlu1 %2458  ;;  %v9634_v46 = vadd.f32 %v9614_v4, %v2539_v23  ;;  %v2521_v25 = vmul.f32 %v7980_v16, %v9503_v37 }
 0x7b8   : > { %7991 = vrsqrt.f32 %v2495_v20  ;;  %v2481_v0 = vmul.f32 0.03125, %v2459_v29  ;;  %v2542_v43 = vmul.f32 %v9607_v41, %v2522_v62 }
 0x7b9   : > { %v7982_v2 = vpop.eup %7981  ;;  %v2498_v15 = vadd.f32 1e-05, %v2482_v59  ;;  %7135 = vmatprep.mubr.msk.f32.mxu1 %vm510_vm0, %v9634_v46  ;;  %v2541_v33 = vmul.f32 %v9607_v41, %v2521_v25 }
 0x7ba   : > { %v7984_v60 = vpop.eup %7983  ;;  %v2497_v14 = vadd.f32 1e-05, %v2481_v0  ;;  %v2468_v28 = vpop.xlane.xlu0 %2467  ;;  %7136 = vmatmul.mubr.msk.f32.gmra.mrb[58].mxu1 %vm510_vm0, %v9638_v42  ;;  %v2524_v37 = vmul.f32 %v7982_v2, %v9511_v63  ;;  %v9652_v30 = vadd.f32 %v9614_v4, %v2542_v43 }
 0x7bb   : > { %7993 = vrsqrt.f32 %v2498_v15  ;;  %v2484_v1 = vmul.f32 0.03125, %v2468_v28  ;;  %v2465_v44 = vpop.xlane.xlu1 %2464  ;;  %v9648_v45 = vadd.f32 %v9614_v4, %v2541_v33  ;;  %v2523_v31 = vmul.f32 %v7984_v60, %v9515_v50 }
 0x7bc   : > { %7995 = vrsqrt.f32 %v2497_v14  ;;  %v2483_v58 = vmul.f32 0.03125, %v2465_v44  ;;  %v2544_v5 = vmul.f32 %v9607_v41, %v2524_v37 }
 0x7bd   : > { %v7986_v13 = vpop.eup %7985  ;;  %v2500_v47 = vadd.f32 1e-05, %v2484_v1  ;;  %7138 = vmatprep.mubr.msk.f32.mxu1 %vm510_vm0, %v9648_v45  ;;  %v2543_v63 = vmul.f32 %v9607_v41, %v2523_v31 }
 0x7be   : > { %v7988_v49 = vpop.eup %7987  ;;  %v2499_v36 = vadd.f32 1e-05, %v2483_v58  ;;  %7139 = vmatmul.mubr.msk.f32.gmra.mrb[60].mxu1 %vm510_vm0, %v9652_v30  ;;  %v2526_v50 = vmul.f32 %v7986_v13, %v9523_v6  ;;  %v9666_v17 = vadd.f32 %v9614_v4, %v2544_v5 }
 0x7bf   : > { %7997 = vrsqrt.f32 %v2500_v47  ;;  %v9662_v38 = vadd.f32 %v9614_v4, %v2543_v63  ;;  %v2525_v32 = vmul.f32 %v7988_v49, %v9527_v48 }
 0x7c0   : > { %7999 = vrsqrt.f32 %v2499_v36  ;;  %v2546_v35 = vmul.f32 %v9607_v41, %v2526_v50 }
 0x7c1   : > { %v7990_v53 = vpop.eup %7989  ;;  %7141 = vmatprep.mubr.msk.f32.mxu1 %vm510_vm0, %v9662_v38  ;;  %v2545_v55 = vmul.f32 %v9607_v41, %v2525_v32 }
 0x7c2   : > { %v7992_v23 = vpop.eup %7991  ;;  %7142 = vmatmul.mubr.msk.f32.gmra.mrb[62].mxu1 %vm510_vm0, %v9666_v17  ;;  %v2528_v6 = vmul.f32 %v7990_v53, %v9535_v3  ;;  %v9680_v20 = vadd.f32 %v9614_v4, %v2546_v35 }
 0x7c3   : > { %v9676_v48 = vadd.f32 %v9614_v4, %v2545_v55  ;;  %v2527_v16 = vmul.f32 %v7992_v23, %v9539_v11 }
 0x7c4   : > { %v2548_v18 = vmul.f32 %v9607_v41, %v2528_v6 }
 0x7c5   : > { %v7994_v62 = vpop.eup %7993  ;;  %7144 = vmatprep.mubr.msk.f32.mxu1 %vm510_vm0, %v9676_v48  ;;  %v2547_v59 = vmul.f32 %v9607_v41, %v2527_v16 }
 0x7c6   : > { %v7996_v29 = vpop.eup %7995  ;;  %7145 = vmatmul.mubr.msk.f32.gmra.mrb[64].mxu1 %vm510_vm0, %v9680_v20  ;;  %v2530_v3 = vmul.f32 %v7994_v62, %v9547_v54  ;;  %v9694_v0 = vadd.f32 %v9614_v4, %v2548_v18 }
 0x7c7   : > { %v9690_v25 = vadd.f32 %v9614_v4, %v2547_v59  ;;  %v2529_v11 = vmul.f32 %v7996_v29, %v9551_v24 }
 0x7c8   : > { %v2550_v43 = vmul.f32 %v9607_v41, %v2530_v3 }
 0x7c9   : > { %v7998_v2 = vpop.eup %7997  ;;  %7147 = vmatprep.mubr.msk.f32.mxu1 %vm510_vm0, %v9690_v25  ;;  %v2549_v15 = vmul.f32 %v9607_v41, %v2529_v11 }
 0x7ca   : > { %v8000_v33 = vpop.eup %7999  ;;  %7148 = vmatmul.mubr.msk.f32.gmra.mrb[66].mxu1 %vm510_vm0, %v9694_v0  ;;  %v2532_v54 = vmul.f32 %v7998_v2, %v9559_v22  ;;  %v9708_v14 = vadd.f32 %v9614_v4, %v2550_v43 }
 0x7cb   : > { %v9704_v60 = vadd.f32 %v9614_v4, %v2549_v15  ;;  %v2531_v24 = vmul.f32 %v8000_v33, %v9563_v57  ;;  %v11358_v57 = vsub.s32 6, %v8406_v9 }
 0x7cc   : > { %v2552_v28 = vmul.f32 %v9607_v41, %v2532_v54 }
 0x7cd   : > { %7150 = vmatprep.mubr.msk.f32.mxu1 %vm510_vm0, %v9704_v60  ;;  %v2551_v37 = vmul.f32 %v9607_v41, %v2531_v24  ;;  %v2580_v41 = vrot.slane %v9367_v8, %v11358_v57 }
 0x7ce   : > { %7151 = vmatmul.mubr.msk.f32.gmra.mrb[68].mxu1 %vm510_vm0, %v9708_v14  ;;  %v9720_v1 = vadd.f32 %v9614_v4, %v2552_v28 }
 0x7cf   : > { %v9717_v22 = vadd.f32 %v9614_v4, %v2551_v37 }
 0x7d1   : > { %7153 = vmatprep.mubr.msk.f32.mxu1 %vm510_vm0, %v9717_v22 }
 0x7d2   : > { %7154 = vmatmul.mubr.msk.f32.gmra.mrb[70].mxu1 %vm510_vm0, %v9720_v1 }
 0x885   : > { %v7134_v44 = vpop.f32.mrb[56].mxu1 }
 0x886   : > { %v2701_v31 = vadd.f32 %v7134_v44, %v2580_v41  ;;  %v2695_v58 = vpop.f32.mrb[57].mxu1 }
 0x887   : > { %v2696_v5 = vadd.f32 %v2695_v58, %v2580_v41 }
 0x888   : > { %v2775_v4 = vmax.f32 %v2701_v31, 0.0 }
 0x889   : > { %v2774_v13 = vmax.f32 %v2696_v5, 0.0 }
 0x88b   : > { %7172 = vmatprep.mubr.msk.f32.mxu0 %vm2802_vm13, %v2774_v13 }
 0x88c   : > { %7173 = vmatmul.mubr.msk.f32.vlgmr.msra.gmra.mrb[64].mxu0 %vm2802_vm13, %v2775_v4 }
 0x88d   : > { %v7137_v47 = vpop.f32.mrb[58].mxu1 }
 0x88e   : > { %v2711_v63 = vadd.f32 %v7137_v47, %v2580_v41  ;;  %v2705_v49 = vpop.f32.mrb[59].mxu1 }
 0x88f   : > { %v2706_v36 = vadd.f32 %v2705_v49, %v2580_v41 }
 0x890   : > { %v2777_v35 = vmax.f32 %v2711_v63, 0.0 }
 0x891   : > { %v2776_v50 = vmax.f32 %v2706_v36, 0.0  ;;  %v7140_v32 = vpop.f32.mrb[60].mxu1 }
 0x892   : > { %v2721_v53 = vadd.f32 %v7140_v32, %v2580_v41  ;;  %v2715_v55 = vpop.f32.mrb[61].mxu1 }
 0x893   : > { %v2716_v23 = vadd.f32 %v2715_v55, %v2580_v41  ;;  %7175 = vmatprep.mubr.msk.f32.mxu0 %vm2802_vm13, %v2776_v50 }
 0x894   : > { %7176 = vmatmul.mubr.msk.f32.gmra.mrb[66].mxu0 %vm2802_vm13, %v2777_v35  ;;  %v2779_v18 = vmax.f32 %v2721_v53, 0.0 }
 0x895   : > { %v2778_v6 = vmax.f32 %v2716_v23, 0.0  ;;  %v7143_v16 = vpop.f32.mrb[62].mxu1 }
 0x896   : > { %v2731_v62 = vadd.f32 %v7143_v16, %v2580_v41  ;;  %v2725_v59 = vpop.f32.mrb[63].mxu1 }
 0x897   : > { %v2726_v29 = vadd.f32 %v2725_v59, %v2580_v41  ;;  %7178 = vmatprep.mubr.msk.f32.mxu0 %vm2802_vm13, %v2778_v6  ;;  %v11357_v6 = vsub.s32 7, %v8406_v9 }
 0x898   : > { %7179 = vmatmul.mubr.msk.f32.gmra.mrb[68].mxu0 %vm2802_vm13, %v2779_v18  ;;  %v2781_v43 = vmax.f32 %v2731_v62, 0.0 }
 0x899   : > { %v2780_v3 = vmax.f32 %v2726_v29, 0.0  ;;  %v7146_v11 = vpop.f32.mrb[64].mxu1  ;;  %v9750_v16 = vrot.slane %v9367_v8, %v11357_v6 }
 0x89a   : > { %v2741_v2 = vadd.f32 %v7146_v11, %v2580_v41  ;;  %v2735_v15 = vpop.f32.mrb[65].mxu1 }
 0x89b   : > { %v2736_v33 = vadd.f32 %v2735_v15, %v2580_v41  ;;  %7181 = vmatprep.mubr.msk.f32.mxu0 %vm2802_vm13, %v2780_v3 }
 0x89c   : > { %7182 = vmatmul.mubr.msk.f32.gmra.mrb[70].mxu0 %vm2802_vm13, %v2781_v43  ;;  %v2783_v28 = vmax.f32 %v2741_v2, 0.0 }
 0x89d   : > { %v2782_v54 = vmax.f32 %v2736_v33, 0.0  ;;  %v7149_v24 = vpop.f32.mrb[66].mxu1 }
 0x89e   : > { %v2751_v37 = vadd.f32 %v7149_v24, %v2580_v41  ;;  %v2745_v44 = vpop.f32.mrb[67].mxu1 }
 0x89f   : > { %v2746_v31 = vadd.f32 %v2745_v44, %v2580_v41  ;;  %7184 = vmatprep.mubr.msk.f32.mxu0 %vm2802_vm13, %v2782_v54 }
 0x8a0   : > { %7185 = vmatmul.mubr.msk.f32.gmra.mrb[72].mxu0 %vm2802_vm13, %v2783_v28  ;;  %v2785_v13 = vmax.f32 %v2751_v37, 0.0 }
 0x8a1   : > { %v2784_v58 = vmax.f32 %v2746_v31, 0.0  ;;  %v7152_v5 = vpop.f32.mrb[68].mxu1 }
 0x8a2   : > { %v2761_v4 = vadd.f32 %v7152_v5, %v2580_v41  ;;  %v2755_v47 = vpop.f32.mrb[69].mxu1 }
 0x8a3   : > { %v2756_v63 = vadd.f32 %v2755_v47, %v2580_v41  ;;  %7187 = vmatprep.mubr.msk.f32.mxu0 %vm2802_vm13, %v2784_v58 }
 0x8a4   : > { %7188 = vmatmul.mubr.msk.f32.gmra.mrb[74].mxu0 %vm2802_vm13, %v2785_v13  ;;  %v2787_v50 = vmax.f32 %v2761_v4, 0.0 }
 0x8a5   : > { %v2786_v49 = vmax.f32 %v2756_v63, 0.0  ;;  %v7155_v36 = vpop.f32.mrb[70].mxu1 }
 0x8a6   : > { %v2771_v32 = vadd.f32 %v7155_v36, %v2580_v41  ;;  %v2765_v35 = vpop.f32.mrb[71].mxu1 }
 0x8a7   : > { %v2766_v53 = vadd.f32 %v2765_v35, %v2580_v41  ;;  %7190 = vmatprep.mubr.msk.f32.mxu0 %vm2802_vm13, %v2786_v49 }
 0x8a8   : > { %7191 = vmatmul.mubr.msk.f32.gmra.mrb[76].mxu0 %vm2802_vm13, %v2787_v50  ;;  %v2789_v23 = vmax.f32 %v2771_v32, 0.0 }
 0x8a9   : > { %v2788_v55 = vmax.f32 %v2766_v53, 0.0 }
 0x8ab   : > { %7193 = vmatprep.mubr.msk.f32.mxu0 %vm2802_vm13, %v2788_v55 }
 0x8ac   : > { %7194 = vmatmul.mubr.msk.f32.gmra.mrb[78].mxu0 %vm2802_vm13, %v2789_v23 }
 0x95f   : > { %v7174_v18 = vpop.f32.mrb[64].mxu0 }
 0x960   : > { %v2923_v41 = vadd.f32 %v7174_v18, %v9750_v16  ;;  %v2917_v62 = vpop.f32.mrb[65].mxu0 }
 0x961   : > { %v2918_v59 = vadd.f32 %v2917_v62, %v9750_v16 }
 0x962   : > { %v9755_v29 = vadd.f32 %v2923_v41, %v9622_v56 }
 0x963   : > { %v9758_v3 = vadd.f32 %v2918_v59, %v9619_v7 }
 0x964   : > { %v3015_v11 = vsel %vm510_vm0, %v9755_v29, 0.0 }
 0x965   : > { %3016 = vadd.xlane.f32.xlu0 %v3015_v11  ;;  %v3012_v8 = vsel %vm510_vm0, %v9758_v3, 0.0 }
 0x966   : > { %3013 = vadd.xlane.f32.xlu1 %v3012_v8 }
 0x967   : > { %v7177_v43 = vpop.f32.mrb[66].mxu0 }
 0x968   : > { %v2933_v2 = vadd.f32 %v7177_v43, %v9750_v16  ;;  %v2927_v15 = vpop.f32.mrb[67].mxu0 }
 0x969   : > { %v2928_v33 = vadd.f32 %v2927_v15, %v9750_v16 }
 0x96a   : > { %v9767_v56 = vadd.f32 %v2933_v2, %v9638_v42 }
 0x96b   : > { %v7180_v54 = vpop.f32.mrb[68].mxu0  ;;  %v9770_v7 = vadd.f32 %v2928_v33, %v9634_v46 }
 0x96c   : > { %v2943_v24 = vadd.f32 %v7180_v54, %v9750_v16  ;;  %v2937_v28 = vpop.f32.mrb[69].mxu0  ;;  %v3021_v37 = vsel %vm510_vm0, %v9767_v56, 0.0 }
 0x96d   : > { %v2938_v44 = vadd.f32 %v2937_v28, %v9750_v16  ;;  %3022 = vadd.xlane.f32.xlu0 %v3021_v37  ;;  %v3018_v31 = vsel %vm510_vm0, %v9770_v7, 0.0 }
 0x96e   : > { %3019 = vadd.xlane.f32.xlu1 %v3018_v31  ;;  %v9779_v42 = vadd.f32 %v2943_v24, %v9652_v30 }
 0x96f   : > { %v7183_v58 = vpop.f32.mrb[70].mxu0  ;;  %v9782_v46 = vadd.f32 %v2938_v44, %v9648_v45 }
 0x970   : > { %v2953_v5 = vadd.f32 %v7183_v58, %v9750_v16  ;;  %v2947_v13 = vpop.f32.mrb[71].mxu0  ;;  %v3027_v4 = vsel %vm510_vm0, %v9779_v42, 0.0 }
 0x971   : > { %v2948_v47 = vadd.f32 %v2947_v13, %v9750_v16  ;;  %3028 = vadd.xlane.f32.xlu0 %v3027_v4  ;;  %v3024_v63 = vsel %vm510_vm0, %v9782_v46, 0.0 }
 0x972   : > { %3025 = vadd.xlane.f32.xlu1 %v3024_v63  ;;  %v9791_v30 = vadd.f32 %v2953_v5, %v9666_v17 }
 0x973   : > { %v7186_v49 = vpop.f32.mrb[72].mxu0  ;;  %v9794_v45 = vadd.f32 %v2948_v47, %v9662_v38 }
 0x974   : > { %v2963_v36 = vadd.f32 %v7186_v49, %v9750_v16  ;;  %v2957_v50 = vpop.f32.mrb[73].mxu0  ;;  %v3033_v32 = vsel %vm510_vm0, %v9791_v30, 0.0 }
 0x975   : > { %v2958_v35 = vadd.f32 %v2957_v50, %v9750_v16  ;;  %3034 = vadd.xlane.f32.xlu0 %v3033_v32  ;;  %v3030_v53 = vsel %vm510_vm0, %v9794_v45, 0.0 }
 0x976   : > { %3031 = vadd.xlane.f32.xlu1 %v3030_v53  ;;  %v9803_v17 = vadd.f32 %v2963_v36, %v9680_v20 }
 0x977   : > { %v7189_v55 = vpop.f32.mrb[74].mxu0  ;;  %v9806_v38 = vadd.f32 %v2958_v35, %v9676_v48 }
 0x978   : > { %v2973_v23 = vadd.f32 %v7189_v55, %v9750_v16  ;;  %v2967_v18 = vpop.f32.mrb[75].mxu0  ;;  %v3039_v41 = vsel %vm510_vm0, %v9803_v17, 0.0 }
 0x979   : > { %v2968_v62 = vadd.f32 %v2967_v18, %v9750_v16  ;;  %3040 = vadd.xlane.f32.xlu0 %v3039_v41  ;;  %v3036_v59 = vsel %vm510_vm0, %v9806_v38, 0.0 }
 0x97a   : > { %3037 = vadd.xlane.f32.xlu1 %v3036_v59  ;;  %v9815_v20 = vadd.f32 %v2973_v23, %v9694_v0 }
 0x97b   : > { %v7192_v11 = vpop.f32.mrb[76].mxu0  ;;  %v9818_v48 = vadd.f32 %v2968_v62, %v9690_v25 }
 0x97c   : > { %v2983_v8 = vadd.f32 %v7192_v11, %v9750_v16  ;;  %v2977_v43 = vpop.f32.mrb[77].mxu0  ;;  %v3045_v2 = vsel %vm510_vm0, %v9815_v20, 0.0 }
 0x97d   : > { %v2978_v15 = vadd.f32 %v2977_v43, %v9750_v16  ;;  %3046 = vadd.xlane.f32.xlu0 %v3045_v2  ;;  %v3042_v33 = vsel %vm510_vm0, %v9818_v48, 0.0 }
 0x97e   : > { %3043 = vadd.xlane.f32.xlu1 %v3042_v33  ;;  %v9827_v0 = vadd.f32 %v2983_v8, %v9708_v14 }
 0x97f   : > { %v7195_v54 = vpop.f32.mrb[78].mxu0  ;;  %v9830_v25 = vadd.f32 %v2978_v15, %v9704_v60 }
 0x980   : > { %v2993_v24 = vadd.f32 %v7195_v54, %v9750_v16  ;;  %v2987_v28 = vpop.f32.mrb[79].mxu0  ;;  %v3051_v37 = vsel %vm510_vm0, %v9827_v0, 0.0 }
 0x981   : > { %v2988_v44 = vadd.f32 %v2987_v28, %v9750_v16  ;;  %3052 = vadd.xlane.f32.xlu0 %v3051_v37  ;;  %v3048_v31 = vsel %vm510_vm0, %v9830_v25, 0.0  ;;  %v6225_v16 = vld [vmem:[%s11334_s3 + $0xa0] sm:$0xff] }
 0x982   : > { %3049 = vadd.xlane.f32.xlu1 %v3048_v31  ;;  %v9839_v14 = vadd.f32 %v2993_v24, %v9720_v1  ;;  %v6226_v1 = vld [vmem:[%s11334_s3 + $0xa8] sm:$0xff] }
 0x983   : > { %v9842_v58 = vadd.f32 %v2988_v44, %v9717_v22  ;;  %v7702_v13 = vpack.c.bf16 %v6226_v1, %v6225_v16 }
 0x984   : > { %v3057_v60 = vsel %vm510_vm0, %v9839_v14, 0.0 }
 0x985   : > { %3058 = vadd.xlane.f32.xlu0 %v3057_v60  ;;  %v3054_v5 = vsel %vm510_vm0, %v9842_v58, 0.0  ;;  %7703 = vmatprep.subr.bf16.mxu0 %v7702_v13 }
 0x986   : > { %3055 = vadd.xlane.f32.xlu1 %v3054_v5  ;;  %7705 = vmatpush3.bf16.msra.mxu0 %v7702_v13 }
 0x9f2   : > { %v3017_v22 = vpop.xlane.xlu0 %3016 }
 0x9f3   : > { %v3061_v4 = vmul.f32 0.03125, %v3017_v22  ;;  %v3014_v47 = vpop.xlane.xlu1 %3013 }
 0x9f4   : > { %v3060_v63 = vmul.f32 0.03125, %v3014_v47 }
 0x9f5   : > { %v9855_v49 = vsub.f32 %v9755_v29, %v3061_v4 }
 0x9f6   : > { %v9858_v36 = vsub.f32 %v9758_v3, %v3060_v63 }
 0x9f7   : > { %v3093_v50 = vmul.f32 %v9855_v49, %v9855_v49 }
 0x9f8   : > { %v3092_v32 = vmul.f32 %v9858_v36, %v9858_v36 }
 0x9f9   : > { %v3111_v35 = vsel %vm510_vm0, %v3093_v50, 0.0 }
 0x9fa   : > { %v3023_v53 = vpop.xlane.xlu0 %3022  ;;  %3112 = vadd.xlane.f32.xlu0 %v3111_v35  ;;  %v3108_v55 = vsel %vm510_vm0, %v3092_v32, 0.0 }
 0x9fb   : > { %v3063_v23 = vmul.f32 0.03125, %v3023_v53  ;;  %v3020_v18 = vpop.xlane.xlu1 %3019  ;;  %3109 = vadd.xlane.f32.xlu1 %v3108_v55 }
 0x9fc   : > { %v3062_v29 = vmul.f32 0.03125, %v3020_v18 }
 0x9fd   : > { %v9867_v41 = vsub.f32 %v9767_v56, %v3063_v23 }
 0x9fe   : > { %v9870_v3 = vsub.f32 %v9770_v7, %v3062_v29  ;;  %v3029_v62 = vpop.xlane.xlu0 %3028 }
 0x9ff   : > { %v3065_v59 = vmul.f32 0.03125, %v3029_v62  ;;  %v3026_v11 = vpop.xlane.xlu1 %3025  ;;  %v3095_v8 = vmul.f32 %v9867_v41, %v9867_v41 }
 0xa00   : > { %v3064_v43 = vmul.f32 0.03125, %v3026_v11  ;;  %v3094_v2 = vmul.f32 %v9870_v3, %v9870_v3 }
 0xa01   : > { %v9877_v15 = vsub.f32 %v9779_v42, %v3065_v59  ;;  %v3117_v33 = vsel %vm510_vm0, %v3095_v8, 0.0 }
 0xa02   : > { %v9881_v56 = vsub.f32 %v9782_v46, %v3064_v43  ;;  %v3035_v7 = vpop.xlane.xlu0 %3034  ;;  %3118 = vadd.xlane.f32.xlu0 %v3117_v33  ;;  %v3114_v54 = vsel %vm510_vm0, %v3094_v2, 0.0 }
 0xa03   : > { %v3067_v24 = vmul.f32 0.03125, %v3035_v7  ;;  %3115 = vadd.xlane.f32.xlu1 %v3114_v54  ;;  %v3032_v28 = vpop.xlane.xlu1 %3031  ;;  %v3097_v37 = vmul.f32 %v9877_v15, %v9877_v15 }
 0xa04   : > { %v3066_v44 = vmul.f32 0.03125, %v3032_v28  ;;  %v3096_v42 = vmul.f32 %v9881_v56, %v9881_v56 }
 0xa05   : > { %v9889_v31 = vsub.f32 %v9791_v30, %v3067_v24  ;;  %v3123_v46 = vsel %vm510_vm0, %v3097_v37, 0.0 }
 0xa06   : > { %v9893_v60 = vsub.f32 %v9794_v45, %v3066_v44  ;;  %v3041_v5 = vpop.xlane.xlu0 %3040  ;;  %3124 = vadd.xlane.f32.xlu0 %v3123_v46  ;;  %v3120_v16 = vsel %vm510_vm0, %v3096_v42, 0.0 }
 0xa07   : > { %v3069_v1 = vmul.f32 0.03125, %v3041_v5  ;;  %3121 = vadd.xlane.f32.xlu1 %v3120_v16  ;;  %v3038_v13 = vpop.xlane.xlu1 %3037  ;;  %v3099_v22 = vmul.f32 %v9889_v31, %v9889_v31 }
 0xa08   : > { %v3068_v4 = vmul.f32 0.03125, %v3038_v13  ;;  %v3098_v30 = vmul.f32 %v9893_v60, %v9893_v60  ;;  %v6206_v13 = vld [vmem:[%s11334_s3 + $0x88] sm:$0xff] }
 0xa09   : > { %v9901_v47 = vsub.f32 %v9803_v17, %v3069_v1  ;;  %v3129_v45 = vsel %vm510_vm0, %v3099_v22, 0.0  ;;  %v6205_v1 = vld [vmem:[%s11334_s3 + $0x80] sm:$0xff] }
 0xa0a   : > { %v9905_v63 = vsub.f32 %v9806_v38, %v3068_v4  ;;  %v3047_v50 = vpop.xlane.xlu0 %3046  ;;  %3130 = vadd.xlane.f32.xlu0 %v3129_v45  ;;  %v3126_v32 = vsel %vm510_vm0, %v3098_v30, 0.0  ;;  %v7694_v22 = vpack.c.bf16 %v6206_v13, %v6205_v1  ;;  %v6227_v30 = vld [vmem:[%s11334_s3 + $0xb0] sm:$0xff]  ;;  %v6228_v45 = vld [vmem:[%s11334_s3 + $0xb8] sm:$0xff] }
 0xa0b   : > { %v3071_v35 = vmul.f32 0.03125, %v3047_v50  ;;  %3127 = vadd.xlane.f32.xlu1 %v3126_v32  ;;  %v3044_v53 = vpop.xlane.xlu1 %3043  ;;  %v3101_v55 = vmul.f32 %v9901_v47, %v9901_v47  ;;  %v7706_v32 = vpack.c.bf16 %v6228_v45, %v6227_v30 }
 0xa0c   : > { %v3070_v23 = vmul.f32 0.03125, %v3044_v53  ;;  %v3100_v17 = vmul.f32 %v9905_v63, %v9905_v63  ;;  %7695 = vmatprep.subr.bf16.mxu1 %v7694_v22  ;;  %v6208_v53 = vld [vmem:[%s11334_s3 + $0x98] sm:$0xff] }
 0xa0d   : > { %v9913_v18 = vsub.f32 %v9815_v20, %v3071_v35  ;;  %v3135_v38 = vsel %vm510_vm0, %v3101_v55, 0.0  ;;  %7697 = vmatpush3.bf16.msra.mxu1 %v7694_v22  ;;  %v6207_v35 = vld [vmem:[%s11334_s3 + $0x90] sm:$0xff]  ;;  %7707 = vmatprep.subr.bf16.mxu0 %v7706_v32 }
 0xa0e   : > { %v9917_v29 = vsub.f32 %v9818_v48, %v3070_v23  ;;  %v3053_v62 = vpop.xlane.xlu0 %3052  ;;  %3136 = vadd.xlane.f32.xlu0 %v3135_v38  ;;  %v3132_v59 = vsel %vm510_vm0, %v3100_v17, 0.0  ;;  %v7698_v55 = vpack.c.bf16 %v6208_v53, %v6207_v35  ;;  %7709 = vmatpush3.bf16.msra.mxu0 %v7706_v32  ;;  %v6245_v23 = vld [vmem:[%s11334_s3 + $0xc0] sm:$0xff]  ;;  %v6246_v17 = vld [vmem:[%s11334_s3 + $0xc8] sm:$0xff] }
 0xa0f   : > { %v3073_v11 = vmul.f32 0.03125, %v3053_v62  ;;  %3133 = vadd.xlane.f32.xlu1 %v3132_v59  ;;  %v3050_v8 = vpop.xlane.xlu1 %3049  ;;  %v3103_v43 = vmul.f32 %v9913_v18, %v9913_v18  ;;  %v9974_v38 = vpack.c.bf16 %v6246_v17, %v6245_v23  ;;  %v11421_v53 = vld [vmem:[#allocation10_spill] sm:$0xff] }
 0xa10   : > { %v3072_v2 = vmul.f32 0.03125, %v3050_v8  ;;  %v3102_v20 = vmul.f32 %v9917_v29, %v9917_v29  ;;  %7699 = vmatprep.subr.bf16.mxu1 %v7698_v55 }
 0xa11   : > { %v9925_v33 = vsub.f32 %v9827_v0, %v3073_v11  ;;  %v3141_v48 = vsel %vm510_vm0, %v3103_v43, 0.0  ;;  %7701 = vmatpush3.bf16.msra.mxu1 %v7698_v55 }
 0xa12   : > { %v9929_v7 = vsub.f32 %v9830_v25, %v3072_v2  ;;  %3142 = vadd.xlane.f32.xlu0 %v3141_v48  ;;  %v3059_v54 = vpop.xlane.xlu0 %3058  ;;  %v3138_v24 = vsel %vm510_vm0, %v3102_v20, 0.0  ;;  %7711 = vmatprep.subr.bf16.mxu1 %v9974_v38 }
 0xa13   : > { %v3075_v28 = vmul.f32 0.03125, %v3059_v54  ;;  %3139 = vadd.xlane.f32.xlu1 %v3138_v24  ;;  %v3056_v37 = vpop.xlane.xlu1 %3055  ;;  %v3105_v44 = vmul.f32 %v9925_v33, %v9925_v33 }
 0xa14   : > { %v3074_v42 = vmul.f32 0.03125, %v3056_v37  ;;  %v3104_v0 = vmul.f32 %v9929_v7, %v9929_v7 }
 0xa15   : > { %v9937_v46 = vsub.f32 %v9839_v14, %v3075_v28  ;;  %v3147_v25 = vsel %vm510_vm0, %v3105_v44, 0.0  ;;  %v1002_v28 = vld [vmem:[%s11337_s6 + $0x8] sm:$0x3] }
 0xa16   : > { %v9941_v5 = vsub.f32 %v9842_v58, %v3074_v42  ;;  %3148 = vadd.xlane.f32.xlu0 %v3147_v25  ;;  %v3144_v16 = vsel %vm510_vm0, %v3104_v0, 0.0  ;;  %v9986_v55 = vrot.slane %v1002_v28, %v11421_v53 }
 0xa17   : > { %3145 = vadd.xlane.f32.xlu1 %v3144_v16  ;;  %v3107_v14 = vmul.f32 %v9937_v46, %v9937_v46  ;;  %v11420_v16 = vld [vmem:[#allocation9_spill] sm:$0xff] }
 0xa18   : > { %v3106_v58 = vmul.f32 %v9941_v5, %v9941_v5  ;;  %v9981_v1 = vrot.slane %v1002_v28, %v11420_v16 }
 0xa19   : > { %v3153_v4 = vsel %vm510_vm0, %v3107_v14, 0.0 }
 0xa1a   : > { %3154 = vadd.xlane.f32.xlu0 %v3153_v4  ;;  %v3150_v50 = vsel %vm510_vm0, %v3106_v58, 0.0 }
 0xa1b   : > { %3151 = vadd.xlane.f32.xlu1 %v3150_v50 }
 0xa87   : > { %v3113_v62 = vpop.xlane.xlu0 %3112 }
 0xa88   : > { %v3157_v59 = vmul.f32 0.03125, %v3113_v62  ;;  %v3110_v11 = vpop.xlane.xlu1 %3109 }
 0xa89   : > { %v3156_v8 = vmul.f32 0.03125, %v3110_v11  ;;  %v6248_v11 = vld [vmem:[%s11334_s3 + $0xd8] sm:$0xff] }
 0xa8a   : > { %v3173_v43 = vadd.f32 1e-05, %v3157_v59 }
 0xa8b   : > { %v3172_v2 = vadd.f32 1e-05, %v3156_v8 }
 0xa8c   : > { %8001 = vrsqrt.f32 %v3173_v43 }
 0xa8d   : > { %8003 = vrsqrt.f32 %v3172_v2 }
 0xa8f   : > { %v3119_v20 = vpop.xlane.xlu0 %3118 }
 0xa90   : > { %v3159_v48 = vmul.f32 0.03125, %v3119_v20  ;;  %v3116_v54 = vpop.xlane.xlu1 %3115 }
 0xa91   : > { %v3158_v24 = vmul.f32 0.03125, %v3116_v54 }
 0xa92   : > { %v3175_v37 = vadd.f32 1e-05, %v3159_v48 }
 0xa93   : > { %v3174_v44 = vadd.f32 1e-05, %v3158_v24  ;;  %v3125_v42 = vpop.xlane.xlu0 %3124 }
 0xa94   : > { %8005 = vrsqrt.f32 %v3175_v37  ;;  %v3161_v0 = vmul.f32 0.03125, %v3125_v42  ;;  %v3122_v25 = vpop.xlane.xlu1 %3121 }
 0xa95   : > { %8007 = vrsqrt.f32 %v3174_v44  ;;  %v3160_v13 = vmul.f32 0.03125, %v3122_v25 }
 0xa96   : > { %v8002_v14 = vpop.eup %8001  ;;  %v3177_v22 = vadd.f32 1e-05, %v3161_v0 }
 0xa97   : > { %v8004_v58 = vpop.eup %8003  ;;  %v3205_v4 = vmul.f32 %v8002_v14, %v9855_v49  ;;  %v3176_v30 = vadd.f32 1e-05, %v3160_v13  ;;  %v3131_v45 = vpop.xlane.xlu0 %3130  ;;  %v6247_v49 = vld [vmem:[%s11334_s3 + $0xd0] sm:$0xff] }
 0xa98   : > { %8009 = vrsqrt.f32 %v3177_v22  ;;  %v3163_v50 = vmul.f32 0.03125, %v3131_v45  ;;  %v3128_v32 = vpop.xlane.xlu1 %3127  ;;  %v3204_v35 = vmul.f32 %v8004_v58, %v9858_v36  ;;  %v7714_v24 = vpack.c.bf16 %v6248_v11, %v6247_v49 }
 0xa99   : > { %v3225_v23 = vmul.f32 %v9981_v1, %v3205_v4  ;;  %8011 = vrsqrt.f32 %v3176_v30  ;;  %v3162_v17 = vmul.f32 0.03125, %v3128_v32 }
 0xa9a   : > { %v3179_v62 = vadd.f32 1e-05, %v3163_v50  ;;  %v3224_v59 = vmul.f32 %v9981_v1, %v3204_v35 }
 0xa9b   : > { %v3178_v8 = vadd.f32 1e-05, %v3162_v17  ;;  %v3137_v36 = vpop.xlane.xlu0 %3136  ;;  %v10000_v54 = vadd.f32 %v9986_v55, %v3225_v23 }
 0xa9c   : > { %8013 = vrsqrt.f32 %v3179_v62  ;;  %v3165_v43 = vmul.f32 0.03125, %v3137_v36  ;;  %v3134_v2 = vpop.xlane.xlu1 %3133  ;;  %v9997_v20 = vadd.f32 %v9986_v55, %v3224_v59 }
 0xa9d   : > { %8015 = vrsqrt.f32 %v3178_v8  ;;  %v3164_v48 = vmul.f32 0.03125, %v3134_v2 }
 0xa9e   : > { %v8006_v28 = vpop.eup %8005  ;;  %v3181_v37 = vadd.f32 1e-05, %v3165_v43  ;;  %7204 = vmatprep.mubr.msk.f32.mxu1 %vm510_vm0, %v9997_v20  ;;  %7236 = vmatprep.mubr.msk.f32.mxu0 %vm510_vm0, %v9997_v20 }
 0xa9f   : > { %v8008_v44 = vpop.eup %8007  ;;  %v3180_v42 = vadd.f32 1e-05, %v3164_v48  ;;  %v3143_v0 = vpop.xlane.xlu0 %3142  ;;  %7205 = vmatmul.mubr.msk.f32.vlgmr.msra.gmra.mrb[72].mxu1 %vm510_vm0, %v10000_v54  ;;  %7237 = vmatmul.mubr.msk.f32.vlgmr.msra.gmra.mrb[80].mxu0 %vm510_vm0, %v10000_v54  ;;  %v3207_v25 = vmul.f32 %v8006_v28, %v9867_v41 }
 0xaa0   : > { %8017 = vrsqrt.f32 %v3181_v37  ;;  %v3167_v13 = vmul.f32 0.03125, %v3143_v0  ;;  %v3140_v14 = vpop.xlane.xlu1 %3139  ;;  %v3206_v22 = vmul.f32 %v8008_v44, %v9870_v3  ;;  %7713 = vmatpush3.bf16.msra.mxu1 %v9974_v38 }
 0xaa1   : > { %8019 = vrsqrt.f32 %v3180_v42  ;;  %v3166_v58 = vmul.f32 0.03125, %v3140_v14  ;;  %v3227_v4 = vmul.f32 %v9981_v1, %v3207_v25  ;;  %7715 = vmatprep.subr.bf16.mxu1 %v7714_v24 }
 0xaa2   : > { %v8010_v30 = vpop.eup %8009  ;;  %v3183_v45 = vadd.f32 1e-05, %v3167_v13  ;;  %v3226_v50 = vmul.f32 %v9981_v1, %v3206_v22 }
 0xaa3   : > { %v8012_v32 = vpop.eup %8011  ;;  %v3182_v35 = vadd.f32 1e-05, %v3166_v58  ;;  %v3149_v23 = vpop.xlane.xlu0 %3148  ;;  %v3209_v41 = vmul.f32 %v8010_v30, %v9877_v15  ;;  %v10021_v49 = vadd.f32 %v9986_v55, %v3227_v4 }
 0xaa4   : > { %8021 = vrsqrt.f32 %v3183_v45  ;;  %v3169_v17 = vmul.f32 0.03125, %v3149_v23  ;;  %v3146_v62 = vpop.xlane.xlu1 %3145  ;;  %v10017_v3 = vadd.f32 %v9986_v55, %v3226_v50  ;;  %v3208_v38 = vmul.f32 %v8012_v32, %v9881_v56  ;;  %7717 = vmatpush3.bf16.msra.mxu1 %v7714_v24 }
 0xaa5   : > { %8023 = vrsqrt.f32 %v3182_v35  ;;  %v3168_v59 = vmul.f32 0.03125, %v3146_v62  ;;  %v3229_v11 = vmul.f32 %v9981_v1, %v3209_v41 }
 0xaa6   : > { %v8014_v8 = vpop.eup %8013  ;;  %v3185_v36 = vadd.f32 1e-05, %v3169_v17  ;;  %7207 = vmatprep.mubr.msk.f32.mxu1 %vm510_vm0, %v10017_v3  ;;  %7239 = vmatprep.mubr.msk.f32.mxu0 %vm510_vm0, %v10017_v3  ;;  %v3228_v15 = vmul.f32 %v9981_v1, %v3208_v38 }
 0xaa7   : > { %v8016_v43 = vpop.eup %8015  ;;  %v3184_v56 = vadd.f32 1e-05, %v3168_v59  ;;  %v3155_v2 = vpop.xlane.xlu0 %3154  ;;  %7208 = vmatmul.mubr.msk.f32.gmra.mrb[74].mxu1 %vm510_vm0, %v10021_v49  ;;  %7240 = vmatmul.mubr.msk.f32.gmra.mrb[82].mxu0 %vm510_vm0, %v10021_v49  ;;  %v3211_v48 = vmul.f32 %v8014_v8, %v9889_v31  ;;  %v10039_v0 = vadd.f32 %v9986_v55, %v3229_v11 }
 0xaa8   : > { %8025 = vrsqrt.f32 %v3185_v36  ;;  %v3171_v24 = vmul.f32 0.03125, %v3155_v2  ;;  %v3152_v28 = vpop.xlane.xlu1 %3151  ;;  %v10035_v37 = vadd.f32 %v9986_v55, %v3228_v15  ;;  %v3210_v44 = vmul.f32 %v8016_v43, %v9893_v60 }
 0xaa9   : > { %8027 = vrsqrt.f32 %v3184_v56  ;;  %v3170_v42 = vmul.f32 0.03125, %v3152_v28  ;;  %v3231_v25 = vmul.f32 %v9981_v1, %v3211_v48 }
 0xaaa   : > { %v8018_v13 = vpop.eup %8017  ;;  %v3187_v14 = vadd.f32 1e-05, %v3171_v24  ;;  %7210 = vmatprep.mubr.msk.f32.mxu1 %vm510_vm0, %v10035_v37  ;;  %7242 = vmatprep.mubr.msk.f32.mxu0 %vm510_vm0, %v10035_v37  ;;  %v3230_v31 = vmul.f32 %v9981_v1, %v3210_v44 }
 0xaab   : > { %v8020_v22 = vpop.eup %8019  ;;  %v3186_v58 = vadd.f32 1e-05, %v3170_v42  ;;  %7211 = vmatmul.mubr.msk.f32.gmra.mrb[76].mxu1 %vm510_vm0, %v10039_v0  ;;  %7243 = vmatmul.mubr.msk.f32.gmra.mrb[84].mxu0 %vm510_vm0, %v10039_v0  ;;  %v3213_v60 = vmul.f32 %v8018_v13, %v9901_v47  ;;  %v10057_v45 = vadd.f32 %v9986_v55, %v3231_v25 }
 0xaac   : > { %8029 = vrsqrt.f32 %v3187_v14  ;;  %v10053_v4 = vadd.f32 %v9986_v55, %v3230_v31  ;;  %v3212_v30 = vmul.f32 %v8020_v22, %v9905_v63 }
 0xaad   : > { %8031 = vrsqrt.f32 %v3186_v58  ;;  %v3233_v50 = vmul.f32 %v9981_v1, %v3213_v60 }
 0xaae   : > { %v8022_v32 = vpop.eup %8021  ;;  %7213 = vmatprep.mubr.msk.f32.mxu1 %vm510_vm0, %v10053_v4  ;;  %7245 = vmatprep.mubr.msk.f32.mxu0 %vm510_vm0, %v10053_v4  ;;  %v3232_v47 = vmul.f32 %v9981_v1, %v3212_v30 }
 0xaaf   : > { %v8024_v35 = vpop.eup %8023  ;;  %7214 = vmatmul.mubr.msk.f32.gmra.mrb[78].mxu1 %vm510_vm0, %v10057_v45  ;;  %7246 = vmatmul.mubr.msk.f32.gmra.mrb[86].mxu0 %vm510_vm0, %v10057_v45  ;;  %v3215_v63 = vmul.f32 %v8022_v32, %v9913_v18  ;;  %v10075_v17 = vadd.f32 %v9986_v55, %v3233_v50 }
 0xab0   : > { %v10071_v23 = vadd.f32 %v9986_v55, %v3232_v47  ;;  %v3214_v41 = vmul.f32 %v8024_v35, %v9917_v29 }
 0xab1   : > { %v3235_v62 = vmul.f32 %v9981_v1, %v3215_v63 }
 0xab2   : > { %v8026_v38 = vpop.eup %8025  ;;  %7216 = vmatprep.mubr.msk.f32.mxu1 %vm510_vm0, %v10071_v23  ;;  %7248 = vmatprep.mubr.msk.f32.mxu0 %vm510_vm0, %v10071_v23  ;;  %v3234_v59 = vmul.f32 %v9981_v1, %v3214_v41 }
 0xab3   : > { %v8028_v18 = vpop.eup %8027  ;;  %7217 = vmatmul.mubr.msk.f32.gmra.mrb[80].mxu1 %vm510_vm0, %v10075_v17  ;;  %7249 = vmatmul.mubr.msk.f32.gmra.mrb[88].mxu0 %vm510_vm0, %v10075_v17  ;;  %v3217_v29 = vmul.f32 %v8026_v38, %v9925_v33  ;;  %v10093_v36 = vadd.f32 %v9986_v55, %v3235_v62 }
 0xab4   : > { %v10089_v11 = vadd.f32 %v9986_v55, %v3234_v59  ;;  %v3216_v8 = vmul.f32 %v8028_v18, %v9929_v7 }
 0xab5   : > { %v3237_v15 = vmul.f32 %v9981_v1, %v3217_v29 }
 0xab6   : > { %v8030_v43 = vpop.eup %8029  ;;  %7219 = vmatprep.mubr.msk.f32.mxu1 %vm510_vm0, %v10089_v11  ;;  %7251 = vmatprep.mubr.msk.f32.mxu0 %vm510_vm0, %v10089_v11  ;;  %v3236_v56 = vmul.f32 %v9981_v1, %v3216_v8 }
 0xab7   : > { %v8032_v33 = vpop.eup %8031  ;;  %7220 = vmatmul.mubr.msk.f32.gmra.mrb[82].mxu1 %vm510_vm0, %v10093_v36  ;;  %7252 = vmatmul.mubr.msk.f32.gmra.mrb[90].mxu0 %vm510_vm0, %v10093_v36  ;;  %v3219_v7 = vmul.f32 %v8030_v43, %v9937_v46  ;;  %v10111_v24 = vadd.f32 %v9986_v55, %v3237_v15 }
 0xab8   : > { %v10107_v2 = vadd.f32 %v9986_v55, %v3236_v56  ;;  %v3218_v48 = vmul.f32 %v8032_v33, %v9941_v5 }
 0xab9   : > { %v3239_v28 = vmul.f32 %v9981_v1, %v3219_v7 }
 0xaba   : > { %7222 = vmatprep.mubr.msk.f32.mxu1 %vm510_vm0, %v10107_v2  ;;  %7254 = vmatprep.mubr.msk.f32.mxu0 %vm510_vm0, %v10107_v2  ;;  %v3238_v44 = vmul.f32 %v9981_v1, %v3218_v48  ;;  %v10172_v1 = vld [vmem:[%s11337_s6 + $0x10] sm:$0xff] }
 0xabb   : > { %7223 = vmatmul.mubr.msk.f32.gmra.mrb[84].mxu1 %vm510_vm0, %v10111_v24  ;;  %7255 = vmatmul.mubr.msk.f32.gmra.mrb[92].mxu0 %vm510_vm0, %v10111_v24  ;;  %v10127_v5 = vadd.f32 %v9986_v55, %v3239_v28  ;;  %v10180_v42 = vrot.slane %v10172_v1, %v11421_v53 }
 0xabc   : > { %v10124_v46 = vadd.f32 %v9986_v55, %v3238_v44  ;;  %v10176_v55 = vrot.slane %v10172_v1, %v11420_v16 }
 0xabe   : > { %7225 = vmatprep.mubr.msk.f32.mxu1 %vm510_vm0, %v10124_v46  ;;  %7257 = vmatprep.mubr.msk.f32.mxu0 %vm510_vm0, %v10124_v46 }
 0xabf   : > { %7226 = vmatmul.mubr.msk.f32.gmra.mrb[86].mxu1 %vm510_vm0, %v10127_v5  ;;  %7258 = vmatmul.mubr.msk.f32.gmra.mrb[94].mxu0 %vm510_vm0, %v10127_v5 }
 0xac0   : > { %7268 = vmatprep.mubr.msk.f32.mxu1 %vm510_vm0, %v9997_v20 }
 0xac3   : > { %7269 = vmatmul.mubr.msk.f32.vlgmr.msra.gmra.mrb[88].mxu1 %vm510_vm0, %v10000_v54 }
 0xac4   : > { %7271 = vmatprep.mubr.msk.f32.mxu1 %vm510_vm0, %v10017_v3 }
 0xac7   : > { %7272 = vmatmul.mubr.msk.f32.gmra.mrb[90].mxu1 %vm510_vm0, %v10021_v49 }
 0xac8   : > { %7274 = vmatprep.mubr.msk.f32.mxu1 %vm510_vm0, %v10035_v37 }
 0xacb   : > { %7275 = vmatmul.mubr.msk.f32.gmra.mrb[92].mxu1 %vm510_vm0, %v10039_v0 }
 0xacc   : > { %7277 = vmatprep.mubr.msk.f32.mxu1 %vm510_vm0, %v10053_v4 }
 0xacf   : > { %7278 = vmatmul.mubr.msk.f32.gmra.mrb[94].mxu1 %vm510_vm0, %v10057_v45 }
 0xad0   : > { %7280 = vmatprep.mubr.msk.f32.mxu1 %vm510_vm0, %v10071_v23 }
 0xad3   : > { %7281 = vmatmul.mubr.msk.f32.gmra.mrb[96].mxu1 %vm510_vm0, %v10075_v17 }
 0xad4   : > { %7283 = vmatprep.mubr.msk.f32.mxu1 %vm510_vm0, %v10089_v11 }
 0xad7   : > { %7284 = vmatmul.mubr.msk.f32.gmra.mrb[98].mxu1 %vm510_vm0, %v10093_v36 }
 0xad8   : > { %7286 = vmatprep.mubr.msk.f32.mxu1 %vm510_vm0, %v10107_v2 }
 0xadb   : > { %7287 = vmatmul.mubr.msk.f32.gmra.mrb[100].mxu1 %vm510_vm0, %v10111_v24 }
 0xadc   : > { %7289 = vmatprep.mubr.msk.f32.mxu1 %vm510_vm0, %v10124_v46 }
 0xadf   : > { %7290 = vmatmul.mubr.msk.f32.gmra.mrb[102].mxu1 %vm510_vm0, %v10127_v5 }
 0xb72   : > { %v7206_v25 = vpop.f32.mrb[72].mxu1  ;;  %v7238_v13 = vpop.f32.mrb[80].mxu0 }
 0xb73   : > { %v10183_v14 = vadd.f32 %v7206_v25, %v10176_v55  ;;  %v3546_v31 = vadd.f32 %v7238_v13, %v10180_v42  ;;  %v3386_v22 = vpop.f32.mrb[73].mxu1  ;;  %v3540_v58 = vpop.f32.mrb[81].mxu0 }
 0xb74   : > { %v3387_v60 = vadd.f32 %v3386_v22, %v10176_v55  ;;  %v3541_v30 = vadd.f32 %v3540_v58, %v10180_v42 }
 0xb76   : > { %v3773_v50 = vmul.f32 0.17677669, %v3387_v60  ;;  %v7718_v32 = vpack.c.bf16 %v3546_v31, %v3541_v30 }
 0xb78   : > { %7720 = vmatprep.subr.msk.bf16.mxu0 %vm8858_vm5, %v7718_v32  ;;  %7324 = vmatprep.mubr.msk.f32.mxu0 %vm510_vm0, %v3773_v50 }
 0xb79   : > { %7723 = vmatpush3.bf16.xpose.msk.msra.mxu0 %vm8858_vm5, %v7718_v32 }
 0xb7a   : > { %v7209_v47 = vpop.f32.mrb[74].mxu1  ;;  %v7241_v35 = vpop.f32.mrb[82].mxu0 }
 0xb7b   : > { %v10194_v63 = vadd.f32 %v7209_v47, %v10176_v55  ;;  %v3556_v41 = vadd.f32 %v7241_v35, %v10180_v42  ;;  %v3396_v62 = vpop.f32.mrb[75].mxu1  ;;  %v3550_v38 = vpop.f32.mrb[83].mxu0 }
 0xb7c   : > { %v10198_v59 = vadd.f32 %v3396_v62, %v10176_v55  ;;  %v3551_v18 = vadd.f32 %v3550_v38, %v10180_v42 }
 0xb7d   : > { %v3776_v21 = vmul.f32 0.17677669, %v10194_v63 }
 0xb7e   : > { %v7724_v29 = vpack.c.bf16 %v3556_v41, %v3551_v18  ;;  %v7212_v8 = vpop.f32.mrb[76].mxu1  ;;  %v7244_v15 = vpop.f32.mrb[84].mxu0 }
 0xb7f   : > { %v10202_v43 = vadd.f32 %v7212_v8, %v10176_v55  ;;  %v3566_v56 = vadd.f32 %v7244_v15, %v10180_v42  ;;  %v3406_v33 = vpop.f32.mrb[77].mxu1  ;;  %v3560_v7 = vpop.f32.mrb[85].mxu0 }
 0xb80   : > { %v10206_v48 = vadd.f32 %v3406_v33, %v10176_v55  ;;  %v3561_v28 = vadd.f32 %v3560_v7, %v10180_v42  ;;  %7726 = vmatprep.subr.msk.bf16.mxu0 %vm8858_vm5, %v7724_v29 }
 0xb81   : > { %7729 = vmatpush3.bf16.xpose.msk.msra.mxu0 %vm8858_vm5, %v7724_v29 }
 0xb82   : > { %v7730_v44 = vpack.c.bf16 %v3566_v56, %v3561_v28  ;;  %v7215_v25 = vpop.f32.mrb[78].mxu1  ;;  %v7247_v13 = vpop.f32.mrb[86].mxu0 }
 0xb83   : > { %v10214_v31 = vadd.f32 %v7215_v25, %v10176_v55  ;;  %v3576_v22 = vadd.f32 %v7247_v13, %v10180_v42  ;;  %v3416_v58 = vpop.f32.mrb[79].mxu1  ;;  %v3570_v60 = vpop.f32.mrb[87].mxu0 }
 0xb84   : > { %v10218_v30 = vadd.f32 %v3416_v58, %v10176_v55  ;;  %v3571_v50 = vadd.f32 %v3570_v60, %v10180_v42  ;;  %7732 = vmatprep.subr.msk.bf16.mxu0 %vm8858_vm5, %v7730_v44 }
 0xb86   : > { %v7736_v32 = vpack.c.bf16 %v3576_v22, %v3571_v50  ;;  %v7218_v47 = vpop.f32.mrb[80].mxu1  ;;  %v7250_v35 = vpop.f32.mrb[88].mxu0 }
 0xb87   : > { %v10224_v41 = vadd.f32 %v7218_v47, %v10176_v55  ;;  %v3586_v62 = vadd.f32 %v7250_v35, %v10180_v42  ;;  %v3426_v38 = vpop.f32.mrb[81].mxu1  ;;  %v3580_v18 = vpop.f32.mrb[89].mxu0 }
 0xb88   : > { %v10228_v29 = vadd.f32 %v3426_v38, %v10176_v55  ;;  %v3581_v8 = vadd.f32 %v3580_v18, %v10180_v42 }
 0xb89   : > { %7735 = vmatpush3.bf16.xpose.msk.msra.mxu0 %vm8858_vm5, %v7730_v44  ;;  %v3782_v63 = vmul.f32 0.17677669, %v10224_v41 }
 0xb8a   : > { %v7742_v15 = vpack.c.bf16 %v3586_v62, %v3581_v8  ;;  %v7221_v56 = vpop.f32.mrb[82].mxu1  ;;  %v7253_v33 = vpop.f32.mrb[90].mxu0  ;;  %7738 = vmatprep.subr.msk.bf16.mxu0 %vm8858_vm5, %v7736_v32 }
 0xb8b   : > { %v10236_v7 = vadd.f32 %v7221_v56, %v10176_v55  ;;  %v3596_v28 = vadd.f32 %v7253_v33, %v10180_v42  ;;  %v3436_v25 = vpop.f32.mrb[83].mxu1  ;;  %v3590_v13 = vpop.f32.mrb[91].mxu0 }
 0xb8c   : > { %v10240_v22 = vadd.f32 %v3436_v25, %v10176_v55  ;;  %v3591_v58 = vadd.f32 %v3590_v13, %v10180_v42 }
 0xb8e   : > { %v7748_v60 = vpack.c.bf16 %v3596_v28, %v3591_v58  ;;  %v7224_v44 = vpop.f32.mrb[84].mxu1  ;;  %v7256_v50 = vpop.f32.mrb[92].mxu0 }
 0xb8f   : > { %v10244_v47 = vadd.f32 %v7224_v44, %v10176_v55  ;;  %v3606_v35 = vadd.f32 %v7256_v50, %v10180_v42  ;;  %v3446_v62 = vpop.f32.mrb[85].mxu1  ;;  %v3600_v38 = vpop.f32.mrb[93].mxu0  ;;  %v11422_v50 = vsub.s32 2, %v8406_v9 }
 0xb90   : > { %v10248_v18 = vadd.f32 %v3446_v62, %v10176_v55  ;;  %v3601_v8 = vadd.f32 %v3600_v38, %v10180_v42 }
 0xb91   : > { %7741 = vmatpush3.bf16.xpose.msk.msra.mxu0 %vm8858_vm5, %v7736_v32  ;;  %v3627_v62 = vrot.slane %v10172_v1, %v11422_v50 }
 0xb92   : > { %v7754_v56 = vpack.c.bf16 %v3606_v35, %v3601_v8  ;;  %v7227_v33 = vpop.f32.mrb[86].mxu1  ;;  %v7259_v28 = vpop.f32.mrb[94].mxu0  ;;  %7744 = vmatprep.subr.msk.bf16.mxu0 %vm8858_vm5, %v7742_v15 }
 0xb93   : > { %v10256_v25 = vadd.f32 %v7227_v33, %v10176_v55  ;;  %v3616_v13 = vadd.f32 %v7259_v28, %v10180_v42  ;;  %v3456_v58 = vpop.f32.mrb[87].mxu1  ;;  %v3610_v44 = vpop.f32.mrb[95].mxu0 }
 0xb94   : > { %v10263_v38 = vadd.f32 %v3456_v58, %v10176_v55  ;;  %v3611_v32 = vadd.f32 %v3610_v44, %v10180_v42 }
 0xb95   : > { %v3788_v41 = vmul.f32 0.17677669, %v10256_v25 }
 0xb96   : > { %v7760_v35 = vpack.c.bf16 %v3616_v13, %v3611_v32  ;;  %v7270_v8 = vpop.f32.mrb[88].mxu1 }
 0xb97   : > { %v3700_v6 = vadd.f32 %v7270_v8, %v3627_v62  ;;  %v3694_v57 = vpop.f32.mrb[89].mxu1 }
 0xb98   : > { %v3695_v40 = vadd.f32 %v3694_v57, %v3627_v62 }
 0xb99   : > { %7747 = vmatpush3.bf16.xpose.msk.msra.mxu0 %vm8858_vm5, %v7742_v15 }
 0xb9a   : > { %v7766_v33 = vpack.c.bf16 %v3700_v6, %v3695_v40  ;;  %v7273_v28 = vpop.f32.mrb[90].mxu1  ;;  %7750 = vmatprep.subr.msk.bf16.mxu0 %vm8858_vm5, %v7748_v60 }
 0xb9b   : > { %v3710_v26 = vadd.f32 %v7273_v28, %v3627_v62  ;;  %v3704_v50 = vpop.f32.mrb[91].mxu1 }
 0xb9c   : > { %v3705_v51 = vadd.f32 %v3704_v50, %v3627_v62  ;;  %7767 = vmatprep.subr.bf16.mxu1 %v7766_v33 }
 0xb9d   : > { %7769 = vmatpush3.bf16.msra.mxu1 %v7766_v33 }
 0xb9e   : > { %v7770_v55 = vpack.c.bf16 %v3710_v26, %v3705_v51  ;;  %v7276_v42 = vpop.f32.mrb[92].mxu1 }
 0xb9f   : > { %v3720_v13 = vadd.f32 %v7276_v42, %v3627_v62  ;;  %v3714_v58 = vpop.f32.mrb[93].mxu1 }
 0xba0   : > { %v3715_v44 = vadd.f32 %v3714_v58, %v3627_v62  ;;  %7771 = vmatprep.subr.bf16.mxu1 %v7770_v55 }
 0xba1   : > { %7773 = vmatpush3.bf16.msra.mxu1 %v7770_v55  ;;  %7753 = vmatpush3.bf16.xpose.msk.msra.mxu0 %vm8858_vm5, %v7748_v60 }
 0xba2   : > { %v7774_v40 = vpack.c.bf16 %v3720_v13, %v3715_v44  ;;  %v7279_v57 = vpop.f32.mrb[94].mxu1  ;;  %7756 = vmatprep.subr.msk.bf16.mxu0 %vm8858_vm5, %v7754_v56 }
 0xba3   : > { %v3730_v6 = vadd.f32 %v7279_v57, %v3627_v62  ;;  %v3724_v15 = vpop.f32.mrb[95].mxu1 }
 0xba4   : > { %v3725_v32 = vadd.f32 %v3724_v15, %v3627_v62  ;;  %7775 = vmatprep.subr.bf16.mxu1 %v7774_v40 }
 0xba5   : > { %7777 = vmatpush3.bf16.msra.mxu1 %v7774_v40 }
 0xba6   : > { %v7778_v51 = vpack.c.bf16 %v3730_v6, %v3725_v32  ;;  %v7282_v26 = vpop.f32.mrb[96].mxu1 }
 0xba7   : > { %v3740_v8 = vadd.f32 %v7282_v26, %v3627_v62  ;;  %v3734_v33 = vpop.f32.mrb[97].mxu1 }
 0xba8   : > { %v3735_v28 = vadd.f32 %v3734_v33, %v3627_v62  ;;  %7779 = vmatprep.subr.bf16.mxu1 %v7778_v51 }
 0xba9   : > { %7781 = vmatpush3.bf16.msra.mxu1 %v7778_v51  ;;  %7759 = vmatpush3.bf16.xpose.msk.msra.mxu0 %vm8858_vm5, %v7754_v56 }
 0xbaa   : > { %v7782_v60 = vpack.c.bf16 %v3740_v8, %v3735_v28  ;;  %v7285_v50 = vpop.f32.mrb[98].mxu1  ;;  %7762 = vmatprep.subr.msk.bf16.mxu0 %vm8858_vm5, %v7760_v35  ;;  %v3774_v8 = vmul.f32 0.17677669, %v10183_v14  ;;  %v3775_v28 = vmul.f32 0.17677669, %v10198_v59 }
 0xbab   : > { %v3750_v55 = vadd.f32 %v7285_v50, %v3627_v62  ;;  %v3744_v42 = vpop.f32.mrb[99].mxu1  ;;  %v3779_v14 = vmul.f32 0.17677669, %v10218_v30  ;;  %v3780_v59 = vmul.f32 0.17677669, %v10214_v31 }
 0xbac   : > { %v3745_v13 = vadd.f32 %v3744_v42, %v3627_v62  ;;  %7783 = vmatprep.subr.bf16.mxu1 %v7782_v60  ;;  %v3785_v30 = vmul.f32 0.17677669, %v10248_v18  ;;  %v3786_v31 = vmul.f32 0.17677669, %v10244_v47 }
 0xbad   : > { %7785 = vmatpush3.bf16.msra.mxu1 %v7782_v60  ;;  %v3781_v60 = vmul.f32 0.17677669, %v10228_v29  ;;  %v3787_v29 = vmul.f32 0.17677669, %v10263_v38 }
 0xbae   : > { %v7786_v58 = vpack.c.bf16 %v3750_v55, %v3745_v13  ;;  %v7288_v44 = vpop.f32.mrb[100].mxu1 }
 0xbaf   : > { %v3760_v40 = vadd.f32 %v7288_v44, %v3627_v62  ;;  %v3754_v57 = vpop.f32.mrb[101].mxu1 }
 0xbb0   : > { %v3755_v6 = vadd.f32 %v3754_v57, %v3627_v62  ;;  %7787 = vmatprep.subr.bf16.mxu1 %v7786_v58 }
 0xbb1   : > { %7789 = vmatpush3.bf16.msra.mxu1 %v7786_v58  ;;  %7765 = vmatpush3.bf16.xpose.msk.msra.mxu0 %vm8858_vm5, %v7760_v35  ;;  %v3777_v35 = vmul.f32 0.17677669, %v10206_v48  ;;  %v3783_v48 = vmul.f32 0.17677669, %v10240_v22 }
 0xbb2   : > { %v7790_v56 = vpack.c.bf16 %v3760_v40, %v3755_v6  ;;  %v7291_v15 = vpop.f32.mrb[102].mxu1 }
 0xbb3   : > { %v3770_v32 = vadd.f32 %v7291_v15, %v3627_v62  ;;  %v3764_v51 = vpop.f32.mrb[103].mxu1  ;;  %v11424_v15 = vld [vmem:[#allocation11_spill] sm:$0xff] }
 0xbb4   : > { %v3765_v26 = vadd.f32 %v3764_v51, %v3627_v62  ;;  %7791 = vmatprep.subr.bf16.mxu1 %v7790_v56  ;;  %v3778_v62 = vmul.f32 0.17677669, %v10202_v43  ;;  %v3784_v43 = vmul.f32 0.17677669, %v10236_v7 }
 0xbb5   : > { %7793 = vmatpush3.bf16.msra.mxu1 %v7790_v56 }
 0xbb6   : > { %v7794_v33 = vpack.c.bf16 %v3770_v32, %v3765_v26  ;;  %v11425_v32 = vld [vmem:[#allocation14_spill] sm:$0xff] }
 0xbb8   : > { %7795 = vmatprep.subr.bf16.mxu1 %v7794_v33  ;;  %7325 = vmatmul.mubr.msk.f32.vlgmr.msra.gmra.mrb[96].mxu0 %vm510_vm0, %v3774_v8 }
 0xbb9   : > { %7797 = vmatpush3.bf16.msra.mxu1 %v7794_v33  ;;  %7327 = vmatprep.mubr.msk.f32.mxu0 %vm510_vm0, %v3775_v28  ;;  %v11427_v33 = vld [vmem:[#allocation16_spill] sm:$0xff] }
 0xbbc   : > { %7328 = vmatmul.mubr.msk.f32.gmra.mrb[98].mxu0 %vm510_vm0, %v3776_v21 }
 0xbbd   : > { %7330 = vmatprep.mubr.msk.f32.mxu0 %vm510_vm0, %v3777_v35  ;;  %v11428_v35 = vld [vmem:[#allocation15_spill] sm:$0xff] }
 0xbc0   : > { %7331 = vmatmul.mubr.msk.f32.gmra.mrb[100].mxu0 %vm510_vm0, %v3778_v62 }
 0xbc1   : > { %7333 = vmatprep.mubr.msk.f32.mxu0 %vm510_vm0, %v3779_v14 }
 0xbc4   : > { %7334 = vmatmul.mubr.msk.f32.gmra.mrb[102].mxu0 %vm510_vm0, %v3780_v59  ;;  %v11429_v59 = vld [vmem:[#allocation18_spill] sm:$0xff] }
 0xbc5   : > { %7336 = vmatprep.mubr.msk.f32.mxu0 %vm510_vm0, %v3781_v60 }
 0xbc8   : > { %7337 = vmatmul.mubr.msk.f32.gmra.mrb[104].mxu0 %vm510_vm0, %v3782_v63 }
 0xbc9   : > { %7339 = vmatprep.mubr.msk.f32.mxu0 %vm510_vm0, %v3783_v48  ;;  %v11430_v48 = vld [vmem:[#allocation17_spill] sm:$0xff] }
 0xbcc   : > { %7340 = vmatmul.mubr.msk.f32.gmra.mrb[106].mxu0 %vm510_vm0, %v3784_v43 }
 0xbcd   : > { %7342 = vmatprep.mubr.msk.f32.mxu0 %vm510_vm0, %v3785_v30 }
 0xbd0   : > { %7343 = vmatmul.mubr.msk.f32.gmra.mrb[108].mxu0 %vm510_vm0, %v3786_v31 }
 0xbd1   : > { %7345 = vmatprep.mubr.msk.f32.mxu0 %vm510_vm0, %v3787_v29 }
 0xbd4   : > { %7346 = vmatmul.mubr.msk.f32.gmra.mrb[110].mxu0 %vm510_vm0, %v3788_v41 }
 0xc8b   : > { %v7326_v22 = vpop.f32.mrb[96].mxu0 }
 0xc8c   : > { %v3957_v7 = vadd.f32 %v7326_v22, %v8965_v39  ;;  %v3951_v18 = vpop.f32.mrb[97].mxu0 }
 0xc8d   : > { %v3952_v50 = vadd.f32 %v3951_v18, %v8972_v12 }
 0xc8e   : > { %4032 = vmax.xlane.f32.xlu0 %v3957_v7 }
 0xc8f   : > { %v7329_v55 = vpop.f32.mrb[98].mxu0  ;;  %4030 = vmax.xlane.f32.xlu1 %v3952_v50 }
 0xc90   : > { %v3967_v47 = vadd.f32 %v7329_v55, %v9042_v10  ;;  %v3961_v38 = vpop.f32.mrb[99].mxu0 }
 0xc91   : > { %v3962_v42 = vadd.f32 %v3961_v38, %v9006_v61  ;;  %v11423_v61 = vld [vmem:[#allocation12_spill] sm:$0xff] }
 0xc92   : > { %4036 = vmax.xlane.f32.xlu0 %v3967_v47 }
 0xc93   : > { %v7332_v13 = vpop.f32.mrb[100].mxu0  ;;  %4034 = vmax.xlane.f32.xlu1 %v3962_v42 }
 0xc94   : > { %v3977_v25 = vadd.f32 %v7332_v13, %v9084_v52  ;;  %v3971_v58 = vpop.f32.mrb[101].mxu0 }
 0xc95   : > { %v3972_v44 = vadd.f32 %v3971_v58, %v9045_v19 }
 0xc96   : > { %4040 = vmax.xlane.f32.xlu0 %v3977_v25 }
 0xc97   : > { %v7335_v39 = vpop.f32.mrb[102].mxu0  ;;  %4038 = vmax.xlane.f32.xlu1 %v3972_v44 }
 0xc98   : > { %v3987_v12 = vadd.f32 %v7335_v39, %v9131_v27  ;;  %v3981_v40 = vpop.f32.mrb[103].mxu0 }
 0xc99   : > { %v3982_v57 = vadd.f32 %v3981_v40, %v9087_v34  ;;  %v11426_v34 = vld [vmem:[#allocation13_spill] sm:$0xff] }
 0xc9a   : > { %4044 = vmax.xlane.f32.xlu0 %v3987_v12 }
 0xc9b   : > { %v7338_v10 = vpop.f32.mrb[104].mxu0  ;;  %4042 = vmax.xlane.f32.xlu1 %v3982_v57 }
 0xc9c   : > { %v10319_v6 = vadd.f32 %v7338_v10, %v11423_v61  ;;  %v3991_v56 = vpop.f32.mrb[105].mxu0 }
 0xc9d   : > { %v10322_v52 = vadd.f32 %v3991_v56, %v11424_v15 }
 0xc9e   : > { %4048 = vmax.xlane.f32.xlu0 %v10319_v6 }
 0xc9f   : > { %v7341_v19 = vpop.f32.mrb[106].mxu0  ;;  %4046 = vmax.xlane.f32.xlu1 %v10322_v52 }
 0xca0   : > { %v10327_v27 = vadd.f32 %v7341_v19, %v11425_v32  ;;  %v4001_v51 = vpop.f32.mrb[107].mxu0 }
 0xca1   : > { %v10330_v26 = vadd.f32 %v4001_v51, %v11426_v34 }
 0xca2   : > { %4052 = vmax.xlane.f32.xlu0 %v10327_v27 }
 0xca3   : > { %v7344_v8 = vpop.f32.mrb[108].mxu0  ;;  %4050 = vmax.xlane.f32.xlu1 %v10330_v26 }
 0xca4   : > { %v10335_v28 = vadd.f32 %v7344_v8, %v11427_v33  ;;  %v4011_v21 = vpop.f32.mrb[109].mxu0 }
 0xca5   : > { %v10338_v62 = vadd.f32 %v4011_v21, %v11428_v35 }
 0xca6   : > { %4056 = vmax.xlane.f32.xlu0 %v10335_v28 }
 0xca7   : > { %4054 = vmax.xlane.f32.xlu1 %v10338_v62  ;;  %v7347_v14 = vpop.f32.mrb[110].mxu0 }
 0xca8   : > { %v10343_v60 = vadd.f32 %v7347_v14, %v11429_v59  ;;  %v4021_v63 = vpop.f32.mrb[111].mxu0 }
 0xca9   : > { %v10346_v43 = vadd.f32 %v4021_v63, %v11430_v48 }
 0xcaa   : > { %4060 = vmax.xlane.f32.xlu0 %v10343_v60 }
 0xcab   : > { %4058 = vmax.xlane.f32.xlu1 %v10346_v43 }
 0xd1b   : > { %v4033_v30 = vpop.xlane.xlu0 %4032 }
 0xd1c   : > { %v4063_v31 = vsub.f32 %v3957_v7, %v4033_v30  ;;  %v4031_v29 = vpop.xlane.xlu1 %4030 }
 0xd1d   : > { %v4062_v41 = vsub.f32 %v3952_v50, %v4031_v29 }
 0xd1e   : > { %v4080_v22 = vmul.f32 1.442695, %v4063_v31 }
 0xd1f   : > { %v4078_v18 = vmul.f32 1.442695, %v4062_v41  ;;  %v4037_v55 = vpop.xlane.xlu0 %4036 }
 0xd20   : > { %8033 = vpow2.f32 %v4080_v22  ;;  %v4065_v38 = vsub.f32 %v3967_v47, %v4037_v55  ;;  %v4035_v13 = vpop.xlane.xlu1 %4034 }
 0xd21   : > { %8035 = vpow2.f32 %v4078_v18  ;;  %v4064_v58 = vsub.f32 %v3962_v42, %v4035_v13 }
 0xd22   : > { %v4084_v39 = vmul.f32 1.442695, %v4065_v38 }
 0xd23   : > { %v4082_v40 = vmul.f32 1.442695, %v4064_v58  ;;  %v4041_v10 = vpop.xlane.xlu0 %4040 }
 0xd24   : > { %8037 = vpow2.f32 %v4084_v39  ;;  %v4067_v61 = vsub.f32 %v3977_v25, %v4041_v10  ;;  %v4039_v56 = vpop.xlane.xlu1 %4038 }
 0xd25   : > { %8039 = vpow2.f32 %v4082_v40  ;;  %v4066_v15 = vsub.f32 %v3972_v44, %v4039_v56 }
 0xd26   : > { %v4088_v19 = vmul.f32 1.442695, %v4067_v61 }
 0xd27   : > { %v4086_v7 = vmul.f32 1.442695, %v4066_v15  ;;  %v4045_v32 = vpop.xlane.xlu0 %4044 }
 0xd28   : > { %8041 = vpow2.f32 %v4088_v19  ;;  %v4069_v50 = vsub.f32 %v3987_v12, %v4045_v32  ;;  %v4043_v51 = vpop.xlane.xlu1 %4042 }
 0xd29   : > { %8043 = vpow2.f32 %v4086_v7  ;;  %v4068_v34 = vsub.f32 %v3982_v57, %v4043_v51  ;;  %v6297_v51 = vld [vmem:[%s11334_s3 + $0xe0] sm:$0xff] }
 0xd2a   : > { %v10350_v47 = vpop.eup %8033  ;;  %v4092_v8 = vmul.f32 1.442695, %v4069_v50 }
 0xd2b   : > { %v10352_v42 = vpop.eup %8035  ;;  %v4090_v33 = vmul.f32 1.442695, %v4068_v34  ;;  %v4049_v21 = vpop.xlane.xlu0 %4048  ;;  %4112 = vadd.xlane.f32.xlu0 %v10350_v47  ;;  %v6298_v34 = vld [vmem:[%s11334_s3 + $0xe8] sm:$0xff] }
 0xd2c   : > { %8045 = vpow2.f32 %v4092_v8  ;;  %v4071_v25 = vsub.f32 %v10319_v6, %v4049_v21  ;;  %v4047_v44 = vpop.xlane.xlu1 %4046  ;;  %4110 = vadd.xlane.f32.xlu1 %v10352_v42  ;;  %v7798_v8 = vpack.c.bf16 %v6298_v34, %v6297_v51 }
 0xd2d   : > { %8047 = vpow2.f32 %v4090_v33  ;;  %v4070_v12 = vsub.f32 %v10322_v52, %v4047_v44 }
 0xd2e   : > { %v10358_v35 = vpop.eup %8037  ;;  %v4096_v57 = vmul.f32 1.442695, %v4071_v25  ;;  %7799 = vmatprep.subr.bf16.mxu1 %v7798_v8 }
 0xd2f   : > { %v10360_v14 = vpop.eup %8039  ;;  %v4094_v59 = vmul.f32 1.442695, %v4070_v12  ;;  %v4053_v63 = vpop.xlane.xlu0 %4052  ;;  %4116 = vadd.xlane.f32.xlu0 %v10358_v35 }
 0xd30   : > { %8049 = vpow2.f32 %v4096_v57  ;;  %v4073_v48 = vsub.f32 %v10327_v27, %v4053_v63  ;;  %v4051_v30 = vpop.xlane.xlu1 %4050  ;;  %4114 = vadd.xlane.f32.xlu1 %v10360_v14 }
 0xd31   : > { %8051 = vpow2.f32 %v4094_v59  ;;  %v4072_v6 = vsub.f32 %v10330_v26, %v4051_v30 }
 0xd32   : > { %v10366_v31 = vpop.eup %8041  ;;  %v4100_v52 = vmul.f32 1.442695, %v4073_v48 }
 0xd33   : > { %v10368_v29 = vpop.eup %8043  ;;  %v4098_v41 = vmul.f32 1.442695, %v4072_v6  ;;  %v4057_v22 = vpop.xlane.xlu0 %4056  ;;  %4120 = vadd.xlane.f32.xlu0 %v10366_v31 }
 0xd34   : > { %8053 = vpow2.f32 %v4100_v52  ;;  %v4075_v18 = vsub.f32 %v10335_v28, %v4057_v22  ;;  %v4055_v55 = vpop.xlane.xlu1 %4054  ;;  %4118 = vadd.xlane.f32.xlu1 %v10368_v29 }
 0xd35   : > { %8055 = vpow2.f32 %v4098_v41  ;;  %v4074_v27 = vsub.f32 %v10338_v62, %v4055_v55 }
 0xd36   : > { %v10374_v38 = vpop.eup %8045  ;;  %v4104_v26 = vmul.f32 1.442695, %v4075_v18 }
 0xd37   : > { %v10376_v13 = vpop.eup %8047  ;;  %v4102_v58 = vmul.f32 1.442695, %v4074_v27  ;;  %4124 = vadd.xlane.f32.xlu0 %v10374_v38  ;;  %v4061_v39 = vpop.xlane.xlu0 %4060 }
 0xd38   : > { %8057 = vpow2.f32 %v4104_v26  ;;  %v4077_v40 = vsub.f32 %v10343_v60, %v4061_v39  ;;  %4122 = vadd.xlane.f32.xlu1 %v10376_v13  ;;  %v4059_v28 = vpop.xlane.xlu1 %4058 }
 0xd39   : > { %8059 = vpow2.f32 %v4102_v58  ;;  %v4076_v10 = vsub.f32 %v10346_v43, %v4059_v28 }
 0xd3a   : > { %v10382_v61 = vpop.eup %8049  ;;  %v4108_v62 = vmul.f32 1.442695, %v4077_v40 }
 0xd3b   : > { %v10384_v56 = vpop.eup %8051  ;;  %v4106_v15 = vmul.f32 1.442695, %v4076_v10  ;;  %4128 = vadd.xlane.f32.xlu0 %v10382_v61  ;;  %v6299_v10 = vld [vmem:[%s11334_s3 + $0xf0] sm:$0xff] }
 0xd3c   : > { %8061 = vpow2.f32 %v4108_v62  ;;  %4126 = vadd.xlane.f32.xlu1 %v10384_v56  ;;  %v6300_v62 = vld [vmem:[%s11334_s3 + $0xf8] sm:$0xff] }
 0xd3d   : > { %8063 = vpow2.f32 %v4106_v15 }
 0xd3e   : > { %v10388_v19 = vpop.eup %8053 }
 0xd3f   : > { %v10390_v60 = vpop.eup %8055  ;;  %4132 = vadd.xlane.f32.xlu0 %v10388_v19 }
 0xd40   : > { %4130 = vadd.xlane.f32.xlu1 %v10390_v60 }
 0xd42   : > { %v10394_v43 = vpop.eup %8057 }
 0xd43   : > { %v10396_v7 = vpop.eup %8059  ;;  %4136 = vadd.xlane.f32.xlu0 %v10394_v43 }
 0xd44   : > { %4134 = vadd.xlane.f32.xlu1 %v10396_v7 }
 0xd46   : > { %v10400_v32 = vpop.eup %8061 }
 0xd47   : > { %v10402_v50 = vpop.eup %8063  ;;  %4140 = vadd.xlane.f32.xlu0 %v10400_v32 }
 0xd48   : > { %4138 = vadd.xlane.f32.xlu1 %v10402_v50 }
 0xdb8   : > { %v4113_v33 = vpop.xlane.xlu0 %4112 }
 0xdb9   : > { %8065 = vrcp.f32 %v4113_v33  ;;  %v4111_v21 = vpop.xlane.xlu1 %4110 }
 0xdba   : > { %8067 = vrcp.f32 %v4111_v21 }
 0xdbc   : > { %v4117_v25 = vpop.xlane.xlu0 %4116 }
 0xdbd   : > { %8069 = vrcp.f32 %v4117_v25  ;;  %v4115_v44 = vpop.xlane.xlu1 %4114 }
 0xdbe   : > { %8071 = vrcp.f32 %v4115_v44 }
 0xdc0   : > { %v4121_v12 = vpop.xlane.xlu0 %4120 }
 0xdc1   : > { %8073 = vrcp.f32 %v4121_v12  ;;  %v4119_v57 = vpop.xlane.xlu1 %4118 }
 0xdc2   : > { %8075 = vrcp.f32 %v4119_v57 }
 0xdc3   : > { %v8066_v59 = vpop.eup %8065 }
 0xdc4   : > { %v8068_v63 = vpop.eup %8067  ;;  %v4159_v48 = vmul.f32 %v8066_v59, %v4113_v33  ;;  %v4125_v30 = vpop.xlane.xlu0 %4124 }
 0xdc5   : > { %v4158_v6 = vmul.f32 %v8068_v63, %v4111_v21  ;;  %8077 = vrcp.f32 %v4125_v30  ;;  %v4123_v52 = vpop.xlane.xlu1 %4122 }
 0xdc6   : > { %v4175_v41 = vsub.f32 2.0, %v4159_v48  ;;  %8079 = vrcp.f32 %v4123_v52  ;;  %v7802_v48 = vpack.c.bf16 %v6300_v62, %v6299_v10 }
 0xdc7   : > { %v8070_v22 = vpop.eup %8069  ;;  %v4174_v18 = vsub.f32 2.0, %v4158_v6 }
 0xdc8   : > { %v8072_v55 = vpop.eup %8071  ;;  %v4191_v27 = vmul.f32 %v8066_v59, %v4175_v41  ;;  %v4161_v26 = vmul.f32 %v8070_v22, %v4117_v25  ;;  %v4129_v58 = vpop.xlane.xlu0 %4128 }
 0xdc9   : > { %v4160_v39 = vmul.f32 %v8072_v55, %v4115_v44  ;;  %8081 = vrcp.f32 %v4129_v58  ;;  %v4127_v40 = vpop.xlane.xlu1 %4126  ;;  %v4190_v28 = vmul.f32 %v8068_v63, %v4174_v18 }
 0xdca   : > { %v4177_v15 = vsub.f32 2.0, %v4161_v26  ;;  %8083 = vrcp.f32 %v4127_v40  ;;  %v4207_v25 = vmul.f32 %v10350_v47, %v4191_v27 }
 0xdcb   : > { %v8074_v51 = vpop.eup %8073  ;;  %v4176_v34 = vsub.f32 2.0, %v4160_v39  ;;  %v4206_v33 = vmul.f32 %v10352_v42, %v4190_v28 }
 0xdcc   : > { %v8076_v21 = vpop.eup %8075  ;;  %v4163_v44 = vmul.f32 %v8074_v51, %v4121_v12  ;;  %v4133_v59 = vpop.xlane.xlu0 %4132  ;;  %v4193_v63 = vmul.f32 %v8070_v22, %v4177_v15 }
 0xdcd   : > { %v4162_v6 = vmul.f32 %v8076_v21, %v4119_v57  ;;  %8085 = vrcp.f32 %v4133_v59  ;;  %7380 = vmatprep.mubr.f32.mxu1 %v4206_v33  ;;  %v4131_v41 = vpop.xlane.xlu1 %4130  ;;  %v4192_v18 = vmul.f32 %v8072_v55, %v4176_v34 }
 0xdce   : > { %v4179_v53 = vsub.f32 2.0, %v4163_v44  ;;  %8087 = vrcp.f32 %v4131_v41  ;;  %7381 = vmatmul.mubr.f32.vlgmr.msra.gmra.mrb[104].mxu1 %v4207_v25  ;;  %v4209_v12 = vmul.f32 %v10358_v35, %v4193_v63 }
 0xdcf   : > { %v8078_v26 = vpop.eup %8077  ;;  %v4178_v16 = vsub.f32 2.0, %v4162_v6  ;;  %v4208_v39 = vmul.f32 %v10360_v14, %v4192_v18  ;;  %7801 = vmatpush3.bf16.msra.mxu1 %v7798_v8 }
 0xdd0   : > { %v8080_v42 = vpop.eup %8079  ;;  %v4165_v28 = vmul.f32 %v8078_v26, %v4125_v30  ;;  %v4137_v47 = vpop.xlane.xlu0 %4136  ;;  %v4195_v22 = vmul.f32 %v8074_v51, %v4179_v53  ;;  %7803 = vmatprep.subr.bf16.mxu1 %v7802_v48 }
 0xdd1   : > { %v4164_v57 = vmul.f32 %v8080_v42, %v4123_v52  ;;  %8089 = vrcp.f32 %v4137_v47  ;;  %7383 = vmatprep.mubr.f32.mxu1 %v4208_v39  ;;  %v4135_v27 = vpop.xlane.xlu1 %4134  ;;  %v4194_v55 = vmul.f32 %v8076_v21, %v4178_v16 }
 0xdd2   : > { %v4181_v10 = vsub.f32 2.0, %v4165_v28  ;;  %8091 = vrcp.f32 %v4135_v27  ;;  %7384 = vmatmul.mubr.f32.gmra.mrb[106].mxu1 %v4209_v12  ;;  %v4211_v35 = vmul.f32 %v10366_v31, %v4195_v22 }
 0xdd3   : > { %v8082_v62 = vpop.eup %8081  ;;  %v4180_v15 = vsub.f32 2.0, %v4164_v57  ;;  %v4210_v14 = vmul.f32 %v10368_v29, %v4194_v55  ;;  %7805 = vmatpush3.bf16.msra.mxu1 %v7802_v48 }
 0xdd4   : > { %v8084_v8 = vpop.eup %8083  ;;  %v4167_v30 = vmul.f32 %v8082_v62, %v4129_v58  ;;  %v4141_v34 = vpop.xlane.xlu0 %4140  ;;  %v4197_v53 = vmul.f32 %v8078_v26, %v4181_v10 }
 0xdd5   : > { %v4166_v51 = vmul.f32 %v8084_v8, %v4127_v40  ;;  %8093 = vrcp.f32 %v4141_v34  ;;  %7386 = vmatprep.mubr.f32.mxu1 %v4210_v14  ;;  %v4139_v52 = vpop.xlane.xlu1 %4138  ;;  %v4196_v33 = vmul.f32 %v8080_v42, %v4180_v15 }
 0xdd6   : > { %v4183_v16 = vsub.f32 2.0, %v4167_v30  ;;  %8095 = vrcp.f32 %v4139_v52  ;;  %7387 = vmatmul.mubr.f32.gmra.mrb[108].mxu1 %v4211_v35  ;;  %v4213_v58 = vmul.f32 %v10374_v38, %v4197_v53 }
 0xdd7   : > { %v8086_v21 = vpop.eup %8085  ;;  %v4182_v25 = vsub.f32 2.0, %v4166_v51  ;;  %v4212_v44 = vmul.f32 %v10376_v13, %v4196_v33 }
 0xdd8   : > { %v8088_v29 = vpop.eup %8087  ;;  %v4169_v63 = vmul.f32 %v8086_v21, %v4133_v59  ;;  %v4199_v48 = vmul.f32 %v8082_v62, %v4183_v16 }
 0xdd9   : > { %v4168_v6 = vmul.f32 %v8088_v29, %v4131_v41  ;;  %7389 = vmatprep.mubr.f32.mxu1 %v4212_v44  ;;  %v4198_v31 = vmul.f32 %v8084_v8, %v4182_v25 }
 0xdda   : > { %v4185_v40 = vsub.f32 2.0, %v4169_v63  ;;  %7390 = vmatmul.mubr.f32.gmra.mrb[110].mxu1 %v4213_v58  ;;  %v4215_v12 = vmul.f32 %v10382_v61, %v4199_v48 }
 0xddb   : > { %v8090_v18 = vpop.eup %8089  ;;  %v4184_v26 = vsub.f32 2.0, %v4168_v6  ;;  %v4214_v39 = vmul.f32 %v10384_v56, %v4198_v31  ;;  %v11431_v6 = vsub.s32 3, %v8406_v9 }
 0xddc   : > { %v8092_v42 = vpop.eup %8091  ;;  %v4171_v28 = vmul.f32 %v8090_v18, %v4137_v47  ;;  %v4201_v22 = vmul.f32 %v8086_v21, %v4185_v40 }
 0xddd   : > { %v4170_v13 = vmul.f32 %v8092_v42, %v4135_v27  ;;  %7392 = vmatprep.mubr.f32.mxu1 %v4214_v39  ;;  %v4200_v59 = vmul.f32 %v8088_v29, %v4184_v26  ;;  %v10453_v31 = vrot.slane %v10172_v1, %v11431_v6 }
 0xdde   : > { %v4187_v57 = vsub.f32 2.0, %v4171_v28  ;;  %7393 = vmatmul.mubr.f32.gmra.mrb[112].mxu1 %v4215_v12  ;;  %v4217_v15 = vmul.f32 %v10388_v19, %v4201_v22 }
 0xddf   : > { %v8094_v38 = vpop.eup %8093  ;;  %v4186_v41 = vsub.f32 2.0, %v4170_v13  ;;  %v4216_v55 = vmul.f32 %v10390_v60, %v4200_v59 }
 0xde0   : > { %v8096_v10 = vpop.eup %8095  ;;  %v4173_v62 = vmul.f32 %v8094_v38, %v4141_v34  ;;  %v4203_v14 = vmul.f32 %v8090_v18, %v4187_v57 }
 0xde1   : > { %v4172_v56 = vmul.f32 %v8096_v10, %v4139_v52  ;;  %7395 = vmatprep.mubr.f32.mxu1 %v4216_v55  ;;  %v4202_v47 = vmul.f32 %v8092_v42, %v4186_v41 }
 0xde2   : > { %v4189_v8 = vsub.f32 2.0, %v4173_v62  ;;  %7396 = vmatmul.mubr.f32.gmra.mrb[114].mxu1 %v4217_v15  ;;  %v4219_v35 = vmul.f32 %v10394_v43, %v4203_v14 }
 0xde3   : > { %v4188_v61 = vsub.f32 2.0, %v4172_v56  ;;  %v4218_v27 = vmul.f32 %v10396_v7, %v4202_v47 }
 0xde4   : > { %v4205_v30 = vmul.f32 %v8094_v38, %v4189_v8 }
 0xde5   : > { %v4204_v53 = vmul.f32 %v8096_v10, %v4188_v61  ;;  %7398 = vmatprep.mubr.f32.mxu1 %v4218_v27 }
 0xde6   : > { %7399 = vmatmul.mubr.f32.gmra.mrb[116].mxu1 %v4219_v35  ;;  %v4221_v34 = vmul.f32 %v10400_v32, %v4205_v30 }
 0xde7   : > { %v4220_v60 = vmul.f32 %v10402_v50, %v4204_v53 }
 0xde9   : > { %7401 = vmatprep.mubr.f32.mxu1 %v4220_v60 }
 0xdea   : > { %7402 = vmatmul.mubr.f32.gmra.mrb[118].mxu1 %v4221_v34 }
 0xea1   : > { %v7382_v19 = vpop.f32.mrb[104].mxu1 }
 0xea2   : > { %v4288_v51 = vpop.f32.mrb[105].mxu1 }
 0xea3   : > { %7412 = vmatprep.mubr.msk.f32.mxu1 %vm510_vm0, %v4288_v51 }
 0xea4   : > { %7413 = vmatmul.mubr.msk.f32.vlgmr.msra.gmra.mrb[120].mxu1 %vm510_vm0, %v7382_v19 }
 0xea5   : > { %v7385_v52 = vpop.f32.mrb[106].mxu1 }
 0xea6   : > { %v4298_v7 = vpop.f32.mrb[107].mxu1 }
 0xea7   : > { %7415 = vmatprep.mubr.msk.f32.mxu1 %vm510_vm0, %v4298_v7 }
 0xea8   : > { %7416 = vmatmul.mubr.msk.f32.gmra.mrb[122].mxu1 %vm510_vm0, %v7385_v52 }
 0xea9   : > { %v7388_v43 = vpop.f32.mrb[108].mxu1 }
 0xeaa   : > { %v4308_v33 = vpop.f32.mrb[109].mxu1 }
 0xeab   : > { %7418 = vmatprep.mubr.msk.f32.mxu1 %vm510_vm0, %v4308_v33 }
 0xeac   : > { %7419 = vmatmul.mubr.msk.f32.gmra.mrb[124].mxu1 %vm510_vm0, %v7388_v43 }
 0xead   : > { %v7391_v32 = vpop.f32.mrb[110].mxu1 }
 0xeae   : > { %v4318_v50 = vpop.f32.mrb[111].mxu1 }
 0xeaf   : > { %7421 = vmatprep.mubr.msk.f32.mxu1 %vm510_vm0, %v4318_v50 }
 0xeb0   : > { %7422 = vmatmul.mubr.msk.f32.gmra.mrb[126].mxu1 %vm510_vm0, %v7391_v32 }
 0xeb1   : > { %v7394_v16 = vpop.f32.mrb[112].mxu1 }
 0xeb2   : > { %v4328_v21 = vpop.f32.mrb[113].mxu1 }
 0xeb3   : > { %7424 = vmatprep.mubr.msk.f32.mxu1 %vm510_vm0, %v4328_v21 }
 0xeb4   : > { %7425 = vmatmul.mubr.msk.f32.gmra.mrb[128].mxu1 %vm510_vm0, %v7394_v16 }
 0xeb5   : > { %v7397_v25 = vpop.f32.mrb[114].mxu1 }
 0xeb6   : > { %v4338_v44 = vpop.f32.mrb[115].mxu1 }
 0xeb7   : > { %7427 = vmatprep.mubr.msk.f32.mxu1 %vm510_vm0, %v4338_v44 }
 0xeb8   : > { %7428 = vmatmul.mubr.msk.f32.gmra.mrb[130].mxu1 %vm510_vm0, %v7397_v25 }
 0xeb9   : > { %v7400_v29 = vpop.f32.mrb[116].mxu1 }
 0xeba   : > { %v4348_v63 = vpop.f32.mrb[117].mxu1 }
 0xebb   : > { %7430 = vmatprep.mubr.msk.f32.mxu1 %vm510_vm0, %v4348_v63 }
 0xebc   : > { %7431 = vmatmul.mubr.msk.f32.gmra.mrb[132].mxu1 %vm510_vm0, %v7400_v29 }
 0xebd   : > { %v7403_v58 = vpop.f32.mrb[118].mxu1 }
 0xebe   : > { %v4358_v48 = vpop.f32.mrb[119].mxu1 }
 0xebf   : > { %7433 = vmatprep.mubr.msk.f32.mxu1 %vm510_vm0, %v4358_v48 }
 0xec0   : > { %7434 = vmatmul.mubr.msk.f32.gmra.mrb[134].mxu1 %vm510_vm0, %v7403_v58 }
 0xf77   : > { %v7414_v40 = vpop.f32.mrb[120].mxu1 }
 0xf78   : > { %v4496_v18 = vadd.f32 %v7414_v40, %v10453_v31  ;;  %v4490_v26 = vpop.f32.mrb[121].mxu1 }
 0xf79   : > { %v4491_v39 = vadd.f32 %v4490_v26, %v10453_v31 }
 0xf7a   : > { %v10458_v42 = vadd.f32 %v4496_v18, %v10000_v54 }
 0xf7b   : > { %v10461_v28 = vadd.f32 %v4491_v39, %v9997_v20  ;;  %v7417_v12 = vpop.f32.mrb[122].mxu1 }
 0xf7c   : > { %v4506_v22 = vadd.f32 %v7417_v12, %v10453_v31  ;;  %v4500_v13 = vpop.f32.mrb[123].mxu1  ;;  %v4588_v1 = vsel %vm510_vm0, %v10458_v42, 0.0 }
 0xf7d   : > { %v4501_v59 = vadd.f32 %v4500_v13, %v10453_v31  ;;  %4589 = vadd.xlane.f32.xlu0 %v4588_v1  ;;  %v4585_v57 = vsel %vm510_vm0, %v10461_v28, 0.0 }
 0xf7e   : > { %v10470_v38 = vadd.f32 %v4506_v22, %v10021_v49  ;;  %4586 = vadd.xlane.f32.xlu1 %v4585_v57 }
 0xf7f   : > { %v10473_v20 = vadd.f32 %v4501_v59, %v10017_v3  ;;  %v7420_v54 = vpop.f32.mrb[124].mxu1 }
 0xf80   : > { %v4516_v41 = vadd.f32 %v7420_v54, %v10453_v31  ;;  %v4510_v55 = vpop.f32.mrb[125].mxu1  ;;  %v4594_v10 = vsel %vm510_vm0, %v10470_v38, 0.0 }
 0xf81   : > { %v4511_v62 = vadd.f32 %v4510_v55, %v10453_v31  ;;  %4595 = vadd.xlane.f32.xlu0 %v4594_v10  ;;  %v4591_v15 = vsel %vm510_vm0, %v10473_v20, 0.0 }
 0xf82   : > { %v10482_v49 = vadd.f32 %v4516_v41, %v10039_v0  ;;  %4592 = vadd.xlane.f32.xlu1 %v4591_v15 }
 0xf83   : > { %v10485_v3 = vadd.f32 %v4511_v62, %v10035_v37  ;;  %v7423_v14 = vpop.f32.mrb[126].mxu1 }
 0xf84   : > { %v4526_v56 = vadd.f32 %v7423_v14, %v10453_v31  ;;  %v4520_v47 = vpop.f32.mrb[127].mxu1  ;;  %v4600_v8 = vsel %vm510_vm0, %v10482_v49, 0.0 }
 0xf85   : > { %v4521_v61 = vadd.f32 %v4520_v47, %v10453_v31  ;;  %4601 = vadd.xlane.f32.xlu0 %v4600_v8  ;;  %v4597_v27 = vsel %vm510_vm0, %v10485_v3, 0.0 }
 0xf86   : > { %v10494_v0 = vadd.f32 %v4526_v56, %v10057_v45  ;;  %4598 = vadd.xlane.f32.xlu1 %v4597_v27 }
 0xf87   : > { %v10497_v37 = vadd.f32 %v4521_v61, %v10053_v4  ;;  %v7426_v30 = vpop.f32.mrb[128].mxu1 }
 0xf88   : > { %v4536_v35 = vadd.f32 %v7426_v30, %v10453_v31  ;;  %v4530_v53 = vpop.f32.mrb[129].mxu1  ;;  %v4606_v60 = vsel %vm510_vm0, %v10494_v0, 0.0 }
 0xf89   : > { %v4531_v34 = vadd.f32 %v4530_v53, %v10453_v31  ;;  %4607 = vadd.xlane.f32.xlu0 %v4606_v60  ;;  %v4603_v19 = vsel %vm510_vm0, %v10497_v37, 0.0 }
 0xf8a   : > { %v10506_v45 = vadd.f32 %v4536_v35, %v10075_v17  ;;  %4604 = vadd.xlane.f32.xlu1 %v4603_v19 }
 0xf8b   : > { %v10509_v4 = vadd.f32 %v4531_v34, %v10071_v23  ;;  %v7429_v51 = vpop.f32.mrb[130].mxu1 }
 0xf8c   : > { %v4546_v52 = vadd.f32 %v7429_v51, %v10453_v31  ;;  %v4540_v7 = vpop.f32.mrb[131].mxu1  ;;  %v4612_v43 = vsel %vm510_vm0, %v10506_v45, 0.0 }
 0xf8d   : > { %v4541_v33 = vadd.f32 %v4540_v7, %v10453_v31  ;;  %4613 = vadd.xlane.f32.xlu0 %v4612_v43  ;;  %v4609_v32 = vsel %vm510_vm0, %v10509_v4, 0.0 }
 0xf8e   : > { %v10518_v17 = vadd.f32 %v4546_v52, %v10093_v36  ;;  %4610 = vadd.xlane.f32.xlu1 %v4609_v32 }
 0xf8f   : > { %v10521_v23 = vadd.f32 %v4541_v33, %v10089_v11  ;;  %v7432_v50 = vpop.f32.mrb[132].mxu1 }
 0xf90   : > { %v4556_v16 = vadd.f32 %v7432_v50, %v10453_v31  ;;  %v4550_v21 = vpop.f32.mrb[133].mxu1  ;;  %v4618_v25 = vsel %vm510_vm0, %v10518_v17, 0.0 }
 0xf91   : > { %v4551_v44 = vadd.f32 %v4550_v21, %v10453_v31  ;;  %4619 = vadd.xlane.f32.xlu0 %v4618_v25  ;;  %v4615_v29 = vsel %vm510_vm0, %v10521_v23, 0.0 }
 0xf92   : > { %v10530_v36 = vadd.f32 %v4556_v16, %v10111_v24  ;;  %4616 = vadd.xlane.f32.xlu1 %v4615_v29 }
 0xf93   : > { %v10533_v11 = vadd.f32 %v4551_v44, %v10107_v2  ;;  %v7435_v63 = vpop.f32.mrb[134].mxu1 }
 0xf94   : > { %v4566_v58 = vadd.f32 %v7435_v63, %v10453_v31  ;;  %v4560_v48 = vpop.f32.mrb[135].mxu1  ;;  %v4624_v6 = vsel %vm510_vm0, %v10530_v36, 0.0 }
 0xf95   : > { %v4561_v40 = vadd.f32 %v4560_v48, %v10453_v31  ;;  %4625 = vadd.xlane.f32.xlu0 %v4624_v6  ;;  %v4621_v18 = vsel %vm510_vm0, %v10533_v11, 0.0  ;;  %v6317_v31 = vld [vmem:[%s11335_s4 + $0x20] sm:$0xff] }
 0xf96   : > { %v10542_v24 = vadd.f32 %v4566_v58, %v10127_v5  ;;  %4622 = vadd.xlane.f32.xlu1 %v4621_v18  ;;  %v6318_v5 = vld [vmem:[%s11335_s4 + $0x28] sm:$0xff] }
 0xf97   : > { %v10545_v2 = vadd.f32 %v4561_v40, %v10124_v46  ;;  %v7806_v12 = vpack.c.bf16 %v6318_v5, %v6317_v31 }
 0xf98   : > { %v4630_v26 = vsel %vm510_vm0, %v10542_v24, 0.0 }
 0xf99   : > { %4631 = vadd.xlane.f32.xlu0 %v4630_v26  ;;  %v4627_v39 = vsel %vm510_vm0, %v10545_v2, 0.0  ;;  %7807 = vmatprep.subr.bf16.mxu0 %v7806_v12 }
 0xf9a   : > { %4628 = vadd.xlane.f32.xlu1 %v4627_v39  ;;  %7809 = vmatpush3.bf16.msra.mxu0 %v7806_v12 }
0x100a   : > { %v4590_v46 = vpop.xlane.xlu0 %4589 }
0x100b   : > { %v4634_v22 = vmul.f32 0.03125, %v4590_v46  ;;  %v4587_v13 = vpop.xlane.xlu1 %4586 }
0x100c   : > { %v4633_v1 = vmul.f32 0.03125, %v4587_v13 }
0x100d   : > { %v10558_v59 = vsub.f32 %v10458_v42, %v4634_v22 }
0x100e   : > { %v10561_v57 = vsub.f32 %v10461_v28, %v4633_v1  ;;  %v4596_v54 = vpop.xlane.xlu0 %4595 }
0x100f   : > { %v4636_v41 = vmul.f32 0.03125, %v4596_v54  ;;  %v4593_v55 = vpop.xlane.xlu1 %4592  ;;  %v4666_v10 = vmul.f32 %v10558_v59, %v10558_v59 }
0x1010   : > { %v4635_v62 = vmul.f32 0.03125, %v4593_v55  ;;  %v4665_v15 = vmul.f32 %v10561_v57, %v10561_v57 }
0x1011   : > { %v10568_v14 = vsub.f32 %v10470_v38, %v4636_v41  ;;  %v4684_v56 = vsel %vm510_vm0, %v4666_v10, 0.0 }
0x1012   : > { %v10572_v42 = vsub.f32 %v10473_v20, %v4635_v62  ;;  %v4602_v28 = vpop.xlane.xlu0 %4601  ;;  %4685 = vadd.xlane.f32.xlu0 %v4684_v56  ;;  %v4681_v47 = vsel %vm510_vm0, %v4665_v15, 0.0 }
0x1013   : > { %v4638_v8 = vmul.f32 0.03125, %v4602_v28  ;;  %4682 = vadd.xlane.f32.xlu1 %v4681_v47  ;;  %v4599_v61 = vpop.xlane.xlu1 %4598  ;;  %v4668_v27 = vmul.f32 %v10568_v14, %v10568_v14 }
0x1014   : > { %v4637_v30 = vmul.f32 0.03125, %v4599_v61  ;;  %v4667_v38 = vmul.f32 %v10572_v42, %v10572_v42 }
0x1015   : > { %v10580_v35 = vsub.f32 %v10482_v49, %v4638_v8  ;;  %v4690_v20 = vsel %vm510_vm0, %v4668_v27, 0.0 }
0x1016   : > { %v10584_v53 = vsub.f32 %v10485_v3, %v4637_v30  ;;  %v4608_v60 = vpop.xlane.xlu0 %4607  ;;  %4691 = vadd.xlane.f32.xlu0 %v4690_v20  ;;  %v4687_v34 = vsel %vm510_vm0, %v4667_v38, 0.0  ;;  %v6320_v20 = vld [vmem:[%s11335_s4 + $0x38] sm:$0xff] }
0x1017   : > { %v4640_v19 = vmul.f32 0.03125, %v4608_v60  ;;  %4688 = vadd.xlane.f32.xlu1 %v4687_v34  ;;  %v4605_v51 = vpop.xlane.xlu1 %4604  ;;  %v4670_v52 = vmul.f32 %v10580_v35, %v10580_v35  ;;  %v6337_v34 = vld [vmem:[%s11336_s5 + $0x40] sm:$0xff] }
0x1018   : > { %v4639_v7 = vmul.f32 0.03125, %v4605_v51  ;;  %v4669_v49 = vmul.f32 %v10584_v53, %v10584_v53  ;;  %v6339_v51 = vld [vmem:[%s11336_s5 + $0x50] sm:$0xff] }
0x1019   : > { %v10592_v43 = vsub.f32 %v10494_v0, %v4640_v19  ;;  %v4696_v3 = vsel %vm510_vm0, %v4670_v52, 0.0  ;;  %v6338_v19 = vld [vmem:[%s11336_s5 + $0x48] sm:$0xff] }
0x101a   : > { %v10596_v33 = vsub.f32 %v10497_v37, %v4639_v7  ;;  %v4614_v32 = vpop.xlane.xlu0 %4613  ;;  %4697 = vadd.xlane.f32.xlu0 %v4696_v3  ;;  %v4693_v50 = vsel %vm510_vm0, %v4669_v49, 0.0  ;;  %v7814_v52 = vpack.c.bf16 %v6338_v19, %v6337_v34  ;;  %v6340_v7 = vld [vmem:[%s11336_s5 + $0x58] sm:$0xff]  ;;  %v6341_v3 = vld [vmem:[%s11336_s5 + $0x60] sm:$0xff] }
0x101b   : > { %v4642_v16 = vmul.f32 0.03125, %v4614_v32  ;;  %4694 = vadd.xlane.f32.xlu1 %v4693_v50  ;;  %v4611_v21 = vpop.xlane.xlu1 %4610  ;;  %v4672_v25 = vmul.f32 %v10592_v43, %v10592_v43  ;;  %v7818_v49 = vpack.c.bf16 %v6340_v7, %v6339_v51  ;;  %v6342_v32 = vld [vmem:[%s11336_s5 + $0x68] sm:$0xff] }
0x101c   : > { %v4641_v44 = vmul.f32 0.03125, %v4611_v21  ;;  %v4671_v0 = vmul.f32 %v10596_v33, %v10596_v33  ;;  %7815 = vmatprep.subr.bf16.mxu1 %v7814_v52  ;;  %v7822_v50 = vpack.c.bf16 %v6342_v32, %v6341_v3  ;;  %v6344_v21 = vld [vmem:[%s11336_s5 + $0x78] sm:$0xff] }
0x101d   : > { %v10604_v29 = vsub.f32 %v10506_v45, %v4642_v16  ;;  %v4702_v37 = vsel %vm510_vm0, %v4672_v25, 0.0  ;;  %7817 = vmatpush3.bf16.msra.mxu1 %v7814_v52  ;;  %v6343_v16 = vld [vmem:[%s11336_s5 + $0x70] sm:$0xff] }
0x101e   : > { %v10608_v63 = vsub.f32 %v10509_v4, %v4641_v44  ;;  %v4620_v58 = vpop.xlane.xlu0 %4619  ;;  %4703 = vadd.xlane.f32.xlu0 %v4702_v37  ;;  %v4699_v48 = vsel %vm510_vm0, %v4671_v0, 0.0  ;;  %7819 = vmatprep.subr.bf16.mxu1 %v7818_v49  ;;  %v7826_v25 = vpack.c.bf16 %v6344_v21, %v6343_v16 }
0x101f   : > { %v4644_v6 = vmul.f32 0.03125, %v4620_v58  ;;  %4700 = vadd.xlane.f32.xlu1 %v4699_v48  ;;  %v4617_v40 = vpop.xlane.xlu1 %4616  ;;  %v4674_v18 = vmul.f32 %v10604_v29, %v10604_v29 }
0x1020   : > { %v4643_v26 = vmul.f32 0.03125, %v4617_v40  ;;  %v4673_v45 = vmul.f32 %v10608_v63, %v10608_v63 }
0x1021   : > { %v10616_v39 = vsub.f32 %v10518_v17, %v4644_v6  ;;  %v4708_v4 = vsel %vm510_vm0, %v4674_v18, 0.0  ;;  %7821 = vmatpush3.bf16.msra.mxu1 %v7818_v49 }
0x1022   : > { %v10620_v31 = vsub.f32 %v10521_v23, %v4643_v26  ;;  %v4626_v5 = vpop.xlane.xlu0 %4625  ;;  %4709 = vadd.xlane.f32.xlu0 %v4708_v4  ;;  %v4705_v12 = vsel %vm510_vm0, %v4673_v45, 0.0  ;;  %7823 = vmatprep.subr.bf16.mxu1 %v7822_v50 }
0x1023   : > { %v4646_v46 = vmul.f32 0.03125, %v4626_v5  ;;  %4706 = vadd.xlane.f32.xlu1 %v4705_v12  ;;  %v4623_v22 = vpop.xlane.xlu1 %4622  ;;  %v4676_v13 = vmul.f32 %v10616_v39, %v10616_v39 }
0x1024   : > { %v4645_v1 = vmul.f32 0.03125, %v4623_v22  ;;  %v4675_v17 = vmul.f32 %v10620_v31, %v10620_v31 }
0x1025   : > { %v10628_v54 = vsub.f32 %v10530_v36, %v4646_v46  ;;  %v4714_v23 = vsel %vm510_vm0, %v4676_v13, 0.0  ;;  %7825 = vmatpush3.bf16.msra.mxu1 %v7822_v50 }
0x1026   : > { %v10632_v41 = vsub.f32 %v10533_v11, %v4645_v1  ;;  %4715 = vadd.xlane.f32.xlu0 %v4714_v23  ;;  %v4632_v55 = vpop.xlane.xlu0 %4631  ;;  %v4711_v10 = vsel %vm510_vm0, %v4675_v17, 0.0  ;;  %7827 = vmatprep.subr.bf16.mxu1 %v7826_v25 }
0x1027   : > { %v4648_v62 = vmul.f32 0.03125, %v4632_v55  ;;  %4712 = vadd.xlane.f32.xlu1 %v4711_v10  ;;  %v4629_v15 = vpop.xlane.xlu1 %4628  ;;  %v4678_v56 = vmul.f32 %v10628_v54, %v10628_v54 }
0x1028   : > { %v4647_v28 = vmul.f32 0.03125, %v4629_v15  ;;  %v4677_v36 = vmul.f32 %v10632_v41, %v10632_v41  ;;  %v11432_v15 = vsub.s32 4, %v8406_v9 }
0x1029   : > { %v10640_v47 = vsub.f32 %v10542_v24, %v4648_v62  ;;  %v4720_v11 = vsel %vm510_vm0, %v4678_v56, 0.0  ;;  %7829 = vmatpush3.bf16.msra.mxu1 %v7826_v25  ;;  %v10686_v62 = vld [vmem:[%s11337_s6 + $0x10] sm:$0xff] }
0x102a   : > { %v10644_v8 = vsub.f32 %v10545_v2, %v4647_v28  ;;  %4721 = vadd.xlane.f32.xlu0 %v4720_v11  ;;  %v4717_v61 = vsel %vm510_vm0, %v4677_v36, 0.0  ;;  %v6319_v2 = vld [vmem:[%s11335_s4 + $0x30] sm:$0xff]  ;;  %v10691_v56 = vrot.slane %v10686_v62, %v11432_v15 }
0x102b   : > { %4718 = vadd.xlane.f32.xlu1 %v4717_v61  ;;  %v4680_v27 = vmul.f32 %v10640_v47, %v10640_v47  ;;  %v7810_v60 = vpack.c.bf16 %v6320_v20, %v6319_v2 }
0x102c   : > { %v4679_v30 = vmul.f32 %v10644_v8, %v10644_v8 }
0x102d   : > { %v4726_v38 = vsel %vm510_vm0, %v4680_v27, 0.0  ;;  %7811 = vmatprep.subr.bf16.mxu0 %v7810_v60 }
0x102e   : > { %4727 = vadd.xlane.f32.xlu0 %v4726_v38  ;;  %v4723_v24 = vsel %vm510_vm0, %v4679_v30, 0.0  ;;  %7813 = vmatpush3.bf16.msra.mxu0 %v7810_v60 }
0x102f   : > { %4724 = vadd.xlane.f32.xlu1 %v4723_v24  ;;  %v11433_v24 = vsub.s32 5, %v8406_v9 }
0x1031   : > { %v10697_v2 = vrot.slane %v10686_v62, %v11433_v24 }
0x109f   : > { %v4686_v44 = vpop.xlane.xlu0 %4685 }
0x10a0   : > { %v4730_v0 = vmul.f32 0.03125, %v4686_v44  ;;  %v4683_v37 = vpop.xlane.xlu1 %4682 }
0x10a1   : > { %v4729_v58 = vmul.f32 0.03125, %v4683_v37 }
0x10a2   : > { %v4746_v48 = vadd.f32 1e-05, %v4730_v0 }
0x10a3   : > { %v4745_v6 = vadd.f32 1e-05, %v4729_v58  ;;  %v4692_v40 = vpop.xlane.xlu0 %4691 }
0x10a4   : > { %8097 = vrsqrt.f32 %v4746_v48  ;;  %v4732_v18 = vmul.f32 0.03125, %v4692_v40  ;;  %v4689_v26 = vpop.xlane.xlu1 %4688 }
0x10a5   : > { %8099 = vrsqrt.f32 %v4745_v6  ;;  %v4731_v45 = vmul.f32 0.03125, %v4689_v26 }
0x10a6   : > { %v4748_v4 = vadd.f32 1e-05, %v4732_v18 }
0x10a7   : > { %v4747_v5 = vadd.f32 1e-05, %v4731_v45  ;;  %v4698_v12 = vpop.xlane.xlu0 %4697 }
0x10a8   : > { %8101 = vrsqrt.f32 %v4748_v4  ;;  %v4734_v46 = vmul.f32 0.03125, %v4698_v12  ;;  %v4695_v22 = vpop.xlane.xlu1 %4694 }
0x10a9   : > { %8103 = vrsqrt.f32 %v4747_v5  ;;  %v4733_v13 = vmul.f32 0.03125, %v4695_v22 }
0x10aa   : > { %v4750_v1 = vadd.f32 1e-05, %v4734_v46 }
0x10ab   : > { %v4749_v17 = vadd.f32 1e-05, %v4733_v13  ;;  %v4704_v23 = vpop.xlane.xlu0 %4703 }
0x10ac   : > { %8105 = vrsqrt.f32 %v4750_v1  ;;  %v4736_v55 = vmul.f32 0.03125, %v4704_v23  ;;  %v4701_v10 = vpop.xlane.xlu1 %4700 }
0x10ad   : > { %8107 = vrsqrt.f32 %v4749_v17  ;;  %v4735_v28 = vmul.f32 0.03125, %v4701_v10 }
0x10ae   : > { %v8098_v36 = vpop.eup %8097  ;;  %v4752_v11 = vadd.f32 1e-05, %v4736_v55 }
0x10af   : > { %v8100_v61 = vpop.eup %8099  ;;  %v4778_v27 = vmul.f32 %v8098_v36, %v10558_v59  ;;  %v4751_v30 = vadd.f32 1e-05, %v4735_v28  ;;  %v4710_v38 = vpop.xlane.xlu0 %4709 }
0x10b0   : > { %8109 = vrsqrt.f32 %v4752_v11  ;;  %v4738_v20 = vmul.f32 0.03125, %v4710_v38  ;;  %v4707_v60 = vpop.xlane.xlu1 %4706  ;;  %v4777_v34 = vmul.f32 %v8100_v61, %v10561_v57 }
0x10b1   : > { %v4798_v19 = vmul.f32 %v10691_v56, %v4778_v27  ;;  %8111 = vrsqrt.f32 %v4751_v30  ;;  %v4737_v51 = vmul.f32 0.03125, %v4707_v60 }
0x10b2   : > { %v8102_v52 = vpop.eup %8101  ;;  %v4754_v7 = vadd.f32 1e-05, %v4738_v20  ;;  %v4797_v59 = vmul.f32 %v10691_v56, %v4777_v34 }
0x10b3   : > { %v8104_v49 = vpop.eup %8103  ;;  %v4753_v3 = vadd.f32 1e-05, %v4737_v51  ;;  %v4716_v32 = vpop.xlane.xlu0 %4715  ;;  %v4780_v50 = vmul.f32 %v8102_v52, %v10568_v14  ;;  %v10708_v44 = vadd.f32 %v10697_v2, %v4798_v19 }
0x10b4   : > { %8113 = vrsqrt.f32 %v4754_v7  ;;  %v4740_v16 = vmul.f32 0.03125, %v4716_v32  ;;  %v4713_v21 = vpop.xlane.xlu1 %4712  ;;  %v10704_v25 = vadd.f32 %v10697_v2, %v4797_v59  ;;  %v4779_v57 = vmul.f32 %v8104_v49, %v10572_v42 }
0x10b5   : > { %8115 = vrsqrt.f32 %v4753_v3  ;;  %v4739_v0 = vmul.f32 0.03125, %v4713_v21  ;;  %v4800_v37 = vmul.f32 %v10691_v56, %v4780_v50 }
0x10b6   : > { %v8106_v58 = vpop.eup %8105  ;;  %v4756_v48 = vadd.f32 1e-05, %v4740_v16  ;;  %7444 = vmatprep.mubr.msk.f32.mxu0 %vm510_vm0, %v10704_v25  ;;  %v4799_v14 = vmul.f32 %v10691_v56, %v4779_v57 }
0x10b7   : > { %v8108_v6 = vpop.eup %8107  ;;  %v4755_v40 = vadd.f32 1e-05, %v4739_v0  ;;  %v4722_v18 = vpop.xlane.xlu0 %4721  ;;  %7445 = vmatmul.mubr.msk.f32.vlgmr.msra.gmra.mrb[112].mxu0 %vm510_vm0, %v10708_v44  ;;  %v4782_v42 = vmul.f32 %v8106_v58, %v10580_v35  ;;  %v10722_v46 = vadd.f32 %v10697_v2, %v4800_v37 }
0x10b8   : > { %8117 = vrsqrt.f32 %v4756_v48  ;;  %v4742_v26 = vmul.f32 0.03125, %v4722_v18  ;;  %v4719_v45 = vpop.xlane.xlu1 %4718  ;;  %v10718_v4 = vadd.f32 %v10697_v2, %v4799_v14  ;;  %v4781_v5 = vmul.f32 %v8108_v6, %v10584_v53 }
0x10b9   : > { %8119 = vrsqrt.f32 %v4755_v40  ;;  %v4741_v12 = vmul.f32 0.03125, %v4719_v45  ;;  %v4802_v22 = vmul.f32 %v10691_v56, %v4782_v42 }
0x10ba   : > { %v8110_v13 = vpop.eup %8109  ;;  %v4758_v1 = vadd.f32 1e-05, %v4742_v26  ;;  %7447 = vmatprep.mubr.msk.f32.mxu0 %vm510_vm0, %v10718_v4  ;;  %v4801_v35 = vmul.f32 %v10691_v56, %v4781_v5 }
0x10bb   : > { %v8112_v17 = vpop.eup %8111  ;;  %v4757_v23 = vadd.f32 1e-05, %v4741_v12  ;;  %v4728_v55 = vpop.xlane.xlu0 %4727  ;;  %7448 = vmatmul.mubr.msk.f32.gmra.mrb[114].mxu0 %vm510_vm0, %v10722_v46  ;;  %v4784_v53 = vmul.f32 %v8110_v13, %v10592_v43  ;;  %v10736_v61 = vadd.f32 %v10697_v2, %v4802_v22 }
0x10bc   : > { %8121 = vrsqrt.f32 %v4758_v1  ;;  %v4744_v10 = vmul.f32 0.03125, %v4728_v55  ;;  %v4725_v15 = vpop.xlane.xlu1 %4724  ;;  %v10732_v28 = vadd.f32 %v10697_v2, %v4801_v35  ;;  %v4783_v36 = vmul.f32 %v8112_v17, %v10596_v33 }
0x10bd   : > { %8123 = vrsqrt.f32 %v4757_v23  ;;  %v4743_v11 = vmul.f32 0.03125, %v4725_v15  ;;  %v4804_v27 = vmul.f32 %v10691_v56, %v4784_v53 }
0x10be   : > { %v8114_v30 = vpop.eup %8113  ;;  %v4760_v38 = vadd.f32 1e-05, %v4744_v10  ;;  %7450 = vmatprep.mubr.msk.f32.mxu0 %vm510_vm0, %v10732_v28  ;;  %v4803_v43 = vmul.f32 %v10691_v56, %v4783_v36 }
0x10bf   : > { %v8116_v24 = vpop.eup %8115  ;;  %v4759_v20 = vadd.f32 1e-05, %v4743_v11  ;;  %7451 = vmatmul.mubr.msk.f32.gmra.mrb[116].mxu0 %vm510_vm0, %v10736_v61  ;;  %v4786_v33 = vmul.f32 %v8114_v30, %v10604_v29  ;;  %v10750_v19 = vadd.f32 %v10697_v2, %v4804_v27 }
0x10c0   : > { %8125 = vrsqrt.f32 %v4760_v38  ;;  %v10746_v60 = vadd.f32 %v10697_v2, %v4803_v43  ;;  %v4785_v34 = vmul.f32 %v8116_v24, %v10608_v63 }
0x10c1   : > { %8127 = vrsqrt.f32 %v4759_v20  ;;  %v4806_v51 = vmul.f32 %v10691_v56, %v4786_v33 }
0x10c2   : > { %v8118_v52 = vpop.eup %8117  ;;  %7453 = vmatprep.mubr.msk.f32.mxu0 %vm510_vm0, %v10746_v60  ;;  %v4805_v7 = vmul.f32 %v10691_v56, %v4785_v34 }
0x10c3   : > { %v8120_v59 = vpop.eup %8119  ;;  %7454 = vmatmul.mubr.msk.f32.gmra.mrb[118].mxu0 %vm510_vm0, %v10750_v19  ;;  %v4788_v29 = vmul.f32 %v8118_v52, %v10616_v39  ;;  %v10764_v3 = vadd.f32 %v10697_v2, %v4806_v51 }
0x10c4   : > { %v10760_v63 = vadd.f32 %v10697_v2, %v4805_v7  ;;  %v4787_v49 = vmul.f32 %v8120_v59, %v10620_v31 }
0x10c5   : > { %v4808_v32 = vmul.f32 %v10691_v56, %v4788_v29 }
0x10c6   : > { %v8122_v50 = vpop.eup %8121  ;;  %7456 = vmatprep.mubr.msk.f32.mxu0 %vm510_vm0, %v10760_v63  ;;  %v4807_v16 = vmul.f32 %v10691_v56, %v4787_v49 }
0x10c7   : > { %v8124_v21 = vpop.eup %8123  ;;  %7457 = vmatmul.mubr.msk.f32.gmra.mrb[120].mxu0 %vm510_vm0, %v10764_v3  ;;  %v4790_v39 = vmul.f32 %v8122_v50, %v10628_v54  ;;  %v10778_v0 = vadd.f32 %v10697_v2, %v4808_v32 }
0x10c8   : > { %v10774_v57 = vadd.f32 %v10697_v2, %v4807_v16  ;;  %v4789_v31 = vmul.f32 %v8124_v21, %v10632_v41 }
0x10c9   : > { %v4810_v37 = vmul.f32 %v10691_v56, %v4790_v39 }
0x10ca   : > { %v8126_v58 = vpop.eup %8125  ;;  %7459 = vmatprep.mubr.msk.f32.mxu0 %vm510_vm0, %v10774_v57  ;;  %v4809_v48 = vmul.f32 %v10691_v56, %v4789_v31 }
0x10cb   : > { %v8128_v14 = vpop.eup %8127  ;;  %7460 = vmatmul.mubr.msk.f32.gmra.mrb[122].mxu0 %vm510_vm0, %v10778_v0  ;;  %v4792_v54 = vmul.f32 %v8126_v58, %v10640_v47  ;;  %v10792_v40 = vadd.f32 %v10697_v2, %v4810_v37 }
0x10cc   : > { %v10788_v6 = vadd.f32 %v10697_v2, %v4809_v48  ;;  %v4791_v41 = vmul.f32 %v8128_v14, %v10644_v8  ;;  %v11434_v8 = vsub.s32 6, %v8406_v9 }
0x10cd   : > { %v4812_v18 = vmul.f32 %v10691_v56, %v4792_v54 }
0x10ce   : > { %7462 = vmatprep.mubr.msk.f32.mxu0 %vm510_vm0, %v10788_v6  ;;  %v4811_v42 = vmul.f32 %v10691_v56, %v4791_v41  ;;  %v4841_v45 = vrot.slane %v10686_v62, %v11434_v8 }
0x10cf   : > { %7463 = vmatmul.mubr.msk.f32.gmra.mrb[124].mxu0 %vm510_vm0, %v10792_v40  ;;  %v10804_v26 = vadd.f32 %v10697_v2, %v4812_v18 }
0x10d0   : > { %v10801_v47 = vadd.f32 %v10697_v2, %v4811_v42 }
0x10d2   : > { %7465 = vmatprep.mubr.msk.f32.mxu0 %vm510_vm0, %v10801_v47 }
0x10d3   : > { %7466 = vmatmul.mubr.msk.f32.gmra.mrb[126].mxu0 %vm510_vm0, %v10804_v26 }
0x118a   : > { %v7446_v56 = vpop.f32.mrb[112].mxu0 }
0x118b   : > { %v4962_v5 = vadd.f32 %v7446_v56, %v4841_v45  ;;  %v4956_v12 = vpop.f32.mrb[113].mxu0 }
0x118c   : > { %v4957_v22 = vadd.f32 %v4956_v12, %v4841_v45 }
0x118d   : > { %v5036_v35 = vmax.f32 %v4962_v5, 0.0 }
0x118e   : > { %v5035_v13 = vmax.f32 %v4957_v22, 0.0  ;;  %v7449_v1 = vpop.f32.mrb[114].mxu0  ;;  %v11435_v22 = vsub.s32 7, %v8406_v9 }
0x118f   : > { %v4972_v17 = vadd.f32 %v7449_v1, %v4841_v45  ;;  %v4966_v2 = vpop.f32.mrb[115].mxu0 }
0x1190   : > { %v4967_v23 = vadd.f32 %v4966_v2, %v4841_v45  ;;  %7484 = vmatprep.mubr.msk.f32.mxu1 %vm2802_vm13, %v5035_v13  ;;  %v10832_v13 = vrot.slane %v10686_v62, %v11435_v22 }
0x1191   : > { %7485 = vmatmul.mubr.msk.f32.vlgmr.msra.gmra.mrb[136].mxu1 %vm2802_vm13, %v5036_v35  ;;  %v5038_v10 = vmax.f32 %v4972_v17, 0.0 }
0x1192   : > { %v5037_v55 = vmax.f32 %v4967_v23, 0.0  ;;  %v7452_v53 = vpop.f32.mrb[116].mxu0 }
0x1193   : > { %v4982_v15 = vadd.f32 %v7452_v53, %v4841_v45  ;;  %v4976_v36 = vpop.f32.mrb[117].mxu0 }
0x1194   : > { %v4977_v11 = vadd.f32 %v4976_v36, %v4841_v45  ;;  %7487 = vmatprep.mubr.msk.f32.mxu1 %vm2802_vm13, %v5037_v55 }
0x1195   : > { %7488 = vmatmul.mubr.msk.f32.gmra.mrb[138].mxu1 %vm2802_vm13, %v5038_v10  ;;  %v5040_v38 = vmax.f32 %v4982_v15, 0.0 }
0x1196   : > { %v5039_v27 = vmax.f32 %v4977_v11, 0.0  ;;  %v7455_v30 = vpop.f32.mrb[118].mxu0 }
0x1197   : > { %v4992_v43 = vadd.f32 %v7455_v30, %v4841_v45  ;;  %v4986_v24 = vpop.f32.mrb[119].mxu0 }
0x1198   : > { %v4987_v20 = vadd.f32 %v4986_v24, %v4841_v45  ;;  %7490 = vmatprep.mubr.msk.f32.mxu1 %vm2802_vm13, %v5039_v27 }
0x1199   : > { %7491 = vmatmul.mubr.msk.f32.gmra.mrb[140].mxu1 %vm2802_vm13, %v5040_v38  ;;  %v5042_v51 = vmax.f32 %v4992_v43, 0.0 }
0x119a   : > { %v5041_v33 = vmax.f32 %v4987_v20, 0.0  ;;  %v7458_v34 = vpop.f32.mrb[120].mxu0 }
0x119b   : > { %v5002_v52 = vadd.f32 %v7458_v34, %v4841_v45  ;;  %v4996_v7 = vpop.f32.mrb[121].mxu0 }
0x119c   : > { %v4997_v59 = vadd.f32 %v4996_v7, %v4841_v45  ;;  %7493 = vmatprep.mubr.msk.f32.mxu1 %vm2802_vm13, %v5041_v33 }
0x119d   : > { %7494 = vmatmul.mubr.msk.f32.gmra.mrb[142].mxu1 %vm2802_vm13, %v5042_v51  ;;  %v5044_v32 = vmax.f32 %v5002_v52, 0.0 }
0x119e   : > { %v5043_v29 = vmax.f32 %v4997_v59, 0.0  ;;  %v7461_v49 = vpop.f32.mrb[122].mxu0 }
0x119f   : > { %v5012_v50 = vadd.f32 %v7461_v49, %v4841_v45  ;;  %v5006_v16 = vpop.f32.mrb[123].mxu0 }
0x11a0   : > { %v5007_v21 = vadd.f32 %v5006_v16, %v4841_v45  ;;  %7496 = vmatprep.mubr.msk.f32.mxu1 %vm2802_vm13, %v5043_v29 }
0x11a1   : > { %7497 = vmatmul.mubr.msk.f32.gmra.mrb[144].mxu1 %vm2802_vm13, %v5044_v32  ;;  %v5046_v37 = vmax.f32 %v5012_v50, 0.0 }
0x11a2   : > { %v5045_v39 = vmax.f32 %v5007_v21, 0.0  ;;  %v7464_v31 = vpop.f32.mrb[124].mxu0 }
0x11a3   : > { %v5022_v58 = vadd.f32 %v7464_v31, %v4841_v45  ;;  %v5016_v48 = vpop.f32.mrb[125].mxu0 }
0x11a4   : > { %v5017_v14 = vadd.f32 %v5016_v48, %v4841_v45  ;;  %7499 = vmatprep.mubr.msk.f32.mxu1 %vm2802_vm13, %v5045_v39 }
0x11a5   : > { %7500 = vmatmul.mubr.msk.f32.gmra.mrb[146].mxu1 %vm2802_vm13, %v5046_v37  ;;  %v5048_v18 = vmax.f32 %v5022_v58, 0.0 }
0x11a6   : > { %v5047_v54 = vmax.f32 %v5017_v14, 0.0  ;;  %v7467_v41 = vpop.f32.mrb[126].mxu0 }
0x11a7   : > { %v5032_v42 = vadd.f32 %v7467_v41, %v4841_v45  ;;  %v5026_v8 = vpop.f32.mrb[127].mxu0 }
0x11a8   : > { %v5027_v56 = vadd.f32 %v5026_v8, %v4841_v45  ;;  %7502 = vmatprep.mubr.msk.f32.mxu1 %vm2802_vm13, %v5047_v54 }
0x11a9   : > { %7503 = vmatmul.mubr.msk.f32.gmra.mrb[148].mxu1 %vm2802_vm13, %v5048_v18  ;;  %v5050_v12 = vmax.f32 %v5032_v42, 0.0 }
0x11aa   : > { %v5049_v5 = vmax.f32 %v5027_v56, 0.0 }
0x11ac   : > { %7505 = vmatprep.mubr.msk.f32.mxu1 %vm2802_vm13, %v5049_v5 }
0x11ad   : > { %7506 = vmatmul.mubr.msk.f32.gmra.mrb[150].mxu1 %vm2802_vm13, %v5050_v12 }
0x1264   : > { %v7486_v1 = vpop.f32.mrb[136].mxu1 }
0x1265   : > { %v5184_v35 = vadd.f32 %v7486_v1, %v10832_v13  ;;  %v5178_v17 = vpop.f32.mrb[137].mxu1 }
0x1266   : > { %v5179_v45 = vadd.f32 %v5178_v17, %v10832_v13 }
0x1267   : > { %v10837_v2 = vadd.f32 %v5184_v35, %v10708_v44 }
0x1268   : > { %v10840_v23 = vadd.f32 %v5179_v45, %v10704_v25  ;;  %v7489_v55 = vpop.f32.mrb[138].mxu1 }
0x1269   : > { %v5194_v53 = vadd.f32 %v7489_v55, %v10832_v13  ;;  %v5188_v10 = vpop.f32.mrb[139].mxu1  ;;  %v5276_v9 = vsel %vm510_vm0, %v10837_v2, 0.0 }
0x126a   : > { %v5189_v62 = vadd.f32 %v5188_v10, %v10832_v13  ;;  %5277 = vadd.xlane.f32.xlu0 %v5276_v9  ;;  %v5273_v15 = vsel %vm510_vm0, %v10840_v23, 0.0 }
0x126b   : > { %v10849_v36 = vadd.f32 %v5194_v53, %v10722_v46  ;;  %5274 = vadd.xlane.f32.xlu1 %v5273_v15 }
0x126c   : > { %v10852_v25 = vadd.f32 %v5189_v62, %v10718_v4  ;;  %v7492_v44 = vpop.f32.mrb[140].mxu1 }
0x126d   : > { %v5204_v11 = vadd.f32 %v7492_v44, %v10832_v13  ;;  %v5198_v27 = vpop.f32.mrb[141].mxu1  ;;  %v5282_v30 = vsel %vm510_vm0, %v10849_v36, 0.0 }
0x126e   : > { %v5199_v38 = vadd.f32 %v5198_v27, %v10832_v13  ;;  %5283 = vadd.xlane.f32.xlu0 %v5282_v30  ;;  %v5279_v43 = vsel %vm510_vm0, %v10852_v25, 0.0 }
0x126f   : > { %v10861_v46 = vadd.f32 %v5204_v11, %v10736_v61  ;;  %5280 = vadd.xlane.f32.xlu1 %v5279_v43 }
0x1270   : > { %v10864_v4 = vadd.f32 %v5199_v38, %v10732_v28  ;;  %v7495_v24 = vpop.f32.mrb[142].mxu1 }
0x1271   : > { %v5214_v20 = vadd.f32 %v7495_v24, %v10832_v13  ;;  %v5208_v33 = vpop.f32.mrb[143].mxu1  ;;  %v5288_v34 = vsel %vm510_vm0, %v10861_v46, 0.0 }
0x1272   : > { %v5209_v51 = vadd.f32 %v5208_v33, %v10832_v13  ;;  %5289 = vadd.xlane.f32.xlu0 %v5288_v34  ;;  %v5285_v52 = vsel %vm510_vm0, %v10864_v4, 0.0 }
0x1273   : > { %v10873_v61 = vadd.f32 %v5214_v20, %v10750_v19  ;;  %5286 = vadd.xlane.f32.xlu1 %v5285_v52 }
0x1274   : > { %v10876_v28 = vadd.f32 %v5209_v51, %v10746_v60  ;;  %v7498_v7 = vpop.f32.mrb[144].mxu1 }
0x1275   : > { %v5224_v59 = vadd.f32 %v7498_v7, %v10832_v13  ;;  %v5218_v29 = vpop.f32.mrb[145].mxu1  ;;  %v5294_v49 = vsel %vm510_vm0, %v10873_v61, 0.0 }
0x1276   : > { %v5219_v32 = vadd.f32 %v5218_v29, %v10832_v13  ;;  %5295 = vadd.xlane.f32.xlu0 %v5294_v49  ;;  %v5291_v50 = vsel %vm510_vm0, %v10876_v28, 0.0 }
0x1277   : > { %v10885_v19 = vadd.f32 %v5224_v59, %v10764_v3  ;;  %5292 = vadd.xlane.f32.xlu1 %v5291_v50 }
0x1278   : > { %v10888_v60 = vadd.f32 %v5219_v32, %v10760_v63  ;;  %v7501_v16 = vpop.f32.mrb[146].mxu1 }
0x1279   : > { %v5234_v21 = vadd.f32 %v7501_v16, %v10832_v13  ;;  %v5228_v39 = vpop.f32.mrb[147].mxu1  ;;  %v5300_v31 = vsel %vm510_vm0, %v10885_v19, 0.0 }
0x127a   : > { %v5229_v37 = vadd.f32 %v5228_v39, %v10832_v13  ;;  %5301 = vadd.xlane.f32.xlu0 %v5300_v31  ;;  %v5297_v58 = vsel %vm510_vm0, %v10888_v60, 0.0 }
0x127b   : > { %v10897_v3 = vadd.f32 %v5234_v21, %v10778_v0  ;;  %5298 = vadd.xlane.f32.xlu1 %v5297_v58 }
0x127c   : > { %v10900_v63 = vadd.f32 %v5229_v37, %v10774_v57  ;;  %v7504_v48 = vpop.f32.mrb[148].mxu1 }
0x127d   : > { %v5244_v14 = vadd.f32 %v7504_v48, %v10832_v13  ;;  %v5238_v54 = vpop.f32.mrb[149].mxu1  ;;  %v5306_v41 = vsel %vm510_vm0, %v10897_v3, 0.0 }
0x127e   : > { %v5239_v18 = vadd.f32 %v5238_v54, %v10832_v13  ;;  %5307 = vadd.xlane.f32.xlu0 %v5306_v41  ;;  %v5303_v42 = vsel %vm510_vm0, %v10900_v63, 0.0 }
0x127f   : > { %v10909_v0 = vadd.f32 %v5244_v14, %v10792_v40  ;;  %5304 = vadd.xlane.f32.xlu1 %v5303_v42 }
0x1280   : > { %v10912_v57 = vadd.f32 %v5239_v18, %v10788_v6  ;;  %v7507_v8 = vpop.f32.mrb[150].mxu1 }
0x1281   : > { %v5254_v56 = vadd.f32 %v7507_v8, %v10832_v13  ;;  %v5248_v5 = vpop.f32.mrb[151].mxu1  ;;  %v5312_v12 = vsel %vm510_vm0, %v10909_v0, 0.0 }
0x1282   : > { %v5249_v22 = vadd.f32 %v5248_v5, %v10832_v13  ;;  %5313 = vadd.xlane.f32.xlu0 %v5312_v12  ;;  %v5309_v1 = vsel %vm510_vm0, %v10912_v57, 0.0  ;;  %v5521_v13 = vld [vmem:[%s11338_s7] sm:$0xff] }
0x1283   : > { %v10921_v40 = vadd.f32 %v5254_v56, %v10804_v26  ;;  %5310 = vadd.xlane.f32.xlu1 %v5309_v1  ;;  %v5522_v26 = vld [vmem:[%s11338_s7 + $0x8] sm:$0xff] }
0x1284   : > { %v10924_v6 = vadd.f32 %v5249_v22, %v10801_v47  ;;  %v7830_v45 = vpack.c.bf16 %v5522_v26, %v5521_v13 }
0x1285   : > { %v5318_v35 = vsel %vm510_vm0, %v10921_v40, 0.0 }
0x1286   : > { %5319 = vadd.xlane.f32.xlu0 %v5318_v35  ;;  %v5315_v17 = vsel %vm510_vm0, %v10924_v6, 0.0  ;;  %7831 = vmatprep.subr.bf16.mxu0 %v7830_v45 }
0x1287   : > { %5316 = vadd.xlane.f32.xlu1 %v5315_v17  ;;  %7833 = vmatpush3.bf16.msra.mxu0 %v7830_v45 }
0x12f7   : > { %v5278_v47 = vpop.xlane.xlu0 %5277 }
0x12f8   : > { %v5322_v55 = vmul.f32 0.03125, %v5278_v47  ;;  %v5275_v53 = vpop.xlane.xlu1 %5274 }
0x12f9   : > { %v5321_v10 = vmul.f32 0.03125, %v5275_v53 }
0x12fa   : > { %v10937_v9 = vsub.f32 %v10837_v2, %v5322_v55 }
0x12fb   : > { %v10940_v62 = vsub.f32 %v10840_v23, %v5321_v10  ;;  %v5284_v15 = vpop.xlane.xlu0 %5283 }
0x12fc   : > { %v5324_v44 = vmul.f32 0.03125, %v5284_v15  ;;  %v5281_v11 = vpop.xlane.xlu1 %5280  ;;  %v5354_v27 = vmul.f32 %v10937_v9, %v10937_v9 }
0x12fd   : > { %v5323_v30 = vmul.f32 0.03125, %v5281_v11  ;;  %v5353_v38 = vmul.f32 %v10940_v62, %v10940_v62 }
0x12fe   : > { %v10947_v43 = vsub.f32 %v10849_v36, %v5324_v44  ;;  %v5372_v24 = vsel %vm510_vm0, %v5354_v27, 0.0 }
0x12ff   : > { %v10951_v2 = vsub.f32 %v10852_v25, %v5323_v30  ;;  %v5290_v23 = vpop.xlane.xlu0 %5289  ;;  %5373 = vadd.xlane.f32.xlu0 %v5372_v24  ;;  %v5369_v20 = vsel %vm510_vm0, %v5353_v38, 0.0 }
0x1300   : > { %v5326_v33 = vmul.f32 0.03125, %v5290_v23  ;;  %5370 = vadd.xlane.f32.xlu1 %v5369_v20  ;;  %v5287_v34 = vpop.xlane.xlu1 %5286  ;;  %v5356_v51 = vmul.f32 %v10947_v43, %v10947_v43 }
0x1301   : > { %v5325_v52 = vmul.f32 0.03125, %v5287_v34  ;;  %v5355_v36 = vmul.f32 %v10951_v2, %v10951_v2 }
0x1302   : > { %v10959_v7 = vsub.f32 %v10861_v46, %v5326_v33  ;;  %v5378_v25 = vsel %vm510_vm0, %v5356_v51, 0.0 }
0x1303   : > { %v10963_v59 = vsub.f32 %v10864_v4, %v5325_v52  ;;  %v5296_v29 = vpop.xlane.xlu0 %5295  ;;  %5379 = vadd.xlane.f32.xlu0 %v5378_v25  ;;  %v5375_v49 = vsel %vm510_vm0, %v5355_v36, 0.0  ;;  %v5524_v36 = vld [vmem:[%s11338_s7 + $0x18] sm:$0xff] }
0x1304   : > { %v5328_v32 = vmul.f32 0.03125, %v5296_v29  ;;  %5376 = vadd.xlane.f32.xlu1 %v5375_v49  ;;  %v5293_v50 = vpop.xlane.xlu1 %5292  ;;  %v5358_v16 = vmul.f32 %v10959_v7, %v10959_v7 }
0x1305   : > { %v5327_v21 = vmul.f32 0.03125, %v5293_v50  ;;  %v5357_v46 = vmul.f32 %v10963_v59, %v10963_v59 }
0x1306   : > { %v10971_v39 = vsub.f32 %v10873_v61, %v5328_v32  ;;  %v5384_v4 = vsel %vm510_vm0, %v5358_v16, 0.0 }
0x1307   : > { %v10975_v31 = vsub.f32 %v10876_v28, %v5327_v21  ;;  %v5302_v37 = vpop.xlane.xlu0 %5301  ;;  %5385 = vadd.xlane.f32.xlu0 %v5384_v4  ;;  %v5381_v58 = vsel %vm510_vm0, %v5357_v46, 0.0 }
0x1308   : > { %v5330_v48 = vmul.f32 0.03125, %v5302_v37  ;;  %5382 = vadd.xlane.f32.xlu1 %v5381_v58  ;;  %v5299_v14 = vpop.xlane.xlu1 %5298  ;;  %v5360_v54 = vmul.f32 %v10971_v39, %v10971_v39 }
0x1309   : > { %v5329_v41 = vmul.f32 0.03125, %v5299_v14  ;;  %v5359_v61 = vmul.f32 %v10975_v31, %v10975_v31 }
0x130a   : > { %v10983_v18 = vsub.f32 %v10885_v19, %v5330_v48  ;;  %v5390_v28 = vsel %vm510_vm0, %v5360_v54, 0.0 }
0x130b   : > { %v10987_v42 = vsub.f32 %v10888_v60, %v5329_v41  ;;  %v5308_v8 = vpop.xlane.xlu0 %5307  ;;  %5391 = vadd.xlane.f32.xlu0 %v5390_v28  ;;  %v5387_v56 = vsel %vm510_vm0, %v5359_v61, 0.0 }
0x130c   : > { %v5332_v5 = vmul.f32 0.03125, %v5308_v8  ;;  %5388 = vadd.xlane.f32.xlu1 %v5387_v56  ;;  %v5305_v12 = vpop.xlane.xlu1 %5304  ;;  %v5362_v22 = vmul.f32 %v10983_v18, %v10983_v18  ;;  %v6204_v8 = vld [vmem:[%s11337_s6 + $0x18] sm:$0x3] }
0x130d   : > { %v5331_v1 = vmul.f32 0.03125, %v5305_v12  ;;  %v5361_v19 = vmul.f32 %v10987_v42, %v10987_v42 }
0x130e   : > { %v10995_v35 = vsub.f32 %v10897_v3, %v5332_v5  ;;  %v5396_v60 = vsel %vm510_vm0, %v5362_v22, 0.0 }
0x130f   : > { %v10999_v17 = vsub.f32 %v10900_v63, %v5331_v1  ;;  %v5314_v13 = vpop.xlane.xlu0 %5313  ;;  %5397 = vadd.xlane.f32.xlu0 %v5396_v60  ;;  %v5393_v26 = vsel %vm510_vm0, %v5361_v19, 0.0  ;;  %v11436_v19 = vld [vmem:[#allocation9_spill] sm:$0xff] }
0x1310   : > { %v5334_v45 = vmul.f32 0.03125, %v5314_v13  ;;  %5394 = vadd.xlane.f32.xlu1 %v5393_v26  ;;  %v5311_v47 = vpop.xlane.xlu1 %5310  ;;  %v5364_v55 = vmul.f32 %v10995_v35, %v10995_v35  ;;  %v11042_v60 = vrot.slane %v6204_v8, %v11436_v19 }
0x1311   : > { %v5333_v53 = vmul.f32 0.03125, %v5311_v47  ;;  %v5363_v3 = vmul.f32 %v10999_v17, %v10999_v17 }
0x1312   : > { %v11007_v10 = vsub.f32 %v10909_v0, %v5334_v45  ;;  %v5402_v63 = vsel %vm510_vm0, %v5364_v55, 0.0 }
0x1313   : > { %v11011_v15 = vsub.f32 %v10912_v57, %v5333_v53  ;;  %5403 = vadd.xlane.f32.xlu0 %v5402_v63  ;;  %v5320_v44 = vpop.xlane.xlu0 %5319  ;;  %v5399_v11 = vsel %vm510_vm0, %v5363_v3, 0.0  ;;  %v11437_v63 = vld [vmem:[#allocation10_spill] sm:$0xff] }
0x1314   : > { %v5336_v27 = vmul.f32 0.03125, %v5320_v44  ;;  %5400 = vadd.xlane.f32.xlu1 %v5399_v11  ;;  %v5317_v30 = vpop.xlane.xlu1 %5316  ;;  %v5366_v38 = vmul.f32 %v11007_v10, %v11007_v10  ;;  %v11046_v44 = vrot.slane %v6204_v8, %v11437_v63 }
0x1315   : > { %v5335_v24 = vmul.f32 0.03125, %v5317_v30  ;;  %v5365_v0 = vmul.f32 %v11011_v15, %v11011_v15 }
0x1316   : > { %v11019_v23 = vsub.f32 %v10921_v40, %v5336_v27  ;;  %v5408_v57 = vsel %vm510_vm0, %v5366_v38, 0.0 }
0x1317   : > { %v11023_v20 = vsub.f32 %v10924_v6, %v5335_v24  ;;  %5409 = vadd.xlane.f32.xlu0 %v5408_v57  ;;  %v5405_v33 = vsel %vm510_vm0, %v5365_v0, 0.0  ;;  %v5523_v6 = vld [vmem:[%s11338_s7 + $0x10] sm:$0xff] }
0x1318   : > { %5406 = vadd.xlane.f32.xlu1 %v5405_v33  ;;  %v5368_v34 = vmul.f32 %v11019_v23, %v11019_v23  ;;  %v7834_v25 = vpack.c.bf16 %v5524_v36, %v5523_v6 }
0x1319   : > { %v5367_v51 = vmul.f32 %v11023_v20, %v11023_v20 }
0x131a   : > { %v5414_v52 = vsel %vm510_vm0, %v5368_v34, 0.0  ;;  %7835 = vmatprep.subr.bf16.mxu0 %v7834_v25 }
0x131b   : > { %5415 = vadd.xlane.f32.xlu0 %v5414_v52  ;;  %v5411_v40 = vsel %vm510_vm0, %v5367_v51, 0.0  ;;  %7837 = vmatpush3.bf16.msra.mxu0 %v7834_v25 }
0x131c   : > { %5412 = vadd.xlane.f32.xlu1 %v5411_v40 }
0x138c   : > { %v5374_v29 = vpop.xlane.xlu0 %5373 }
0x138d   : > { %v5418_v49 = vmul.f32 0.03125, %v5374_v29  ;;  %v5371_v32 = vpop.xlane.xlu1 %5370 }
0x138e   : > { %v5417_v50 = vmul.f32 0.03125, %v5371_v32 }
0x138f   : > { %v5434_v16 = vadd.f32 1e-05, %v5418_v49 }
0x1390   : > { %v5433_v21 = vadd.f32 1e-05, %v5417_v50  ;;  %v5380_v46 = vpop.xlane.xlu0 %5379 }
0x1391   : > { %8129 = vrsqrt.f32 %v5434_v16  ;;  %v5420_v4 = vmul.f32 0.03125, %v5380_v46  ;;  %v5377_v37 = vpop.xlane.xlu1 %5376 }
0x1392   : > { %8131 = vrsqrt.f32 %v5433_v21  ;;  %v5419_v58 = vmul.f32 0.03125, %v5377_v37 }
0x1393   : > { %v5436_v48 = vadd.f32 1e-05, %v5420_v4 }
0x1394   : > { %v5435_v14 = vadd.f32 1e-05, %v5419_v58  ;;  %v5386_v54 = vpop.xlane.xlu0 %5385 }
0x1395   : > { %8133 = vrsqrt.f32 %v5436_v48  ;;  %v5422_v41 = vmul.f32 0.03125, %v5386_v54  ;;  %v5383_v61 = vpop.xlane.xlu1 %5382 }
0x1396   : > { %8135 = vrsqrt.f32 %v5435_v14  ;;  %v5421_v28 = vmul.f32 0.03125, %v5383_v61 }
0x1397   : > { %v5438_v56 = vadd.f32 1e-05, %v5422_v41 }
0x1398   : > { %v5437_v5 = vadd.f32 1e-05, %v5421_v28  ;;  %v5392_v12 = vpop.xlane.xlu0 %5391 }
0x1399   : > { %8137 = vrsqrt.f32 %v5438_v56  ;;  %v5424_v22 = vmul.f32 0.03125, %v5392_v12  ;;  %v5389_v1 = vpop.xlane.xlu1 %5388 }
0x139a   : > { %8139 = vrsqrt.f32 %v5437_v5  ;;  %v5423_v13 = vmul.f32 0.03125, %v5389_v1 }
0x139b   : > { %v8130_v26 = vpop.eup %8129  ;;  %v5440_v45 = vadd.f32 1e-05, %v5424_v22 }
0x139c   : > { %v8132_v47 = vpop.eup %8131  ;;  %v5466_v55 = vmul.f32 %v8130_v26, %v10937_v9  ;;  %v5439_v53 = vadd.f32 1e-05, %v5423_v13  ;;  %v5398_v3 = vpop.xlane.xlu0 %5397 }
0x139d   : > { %8141 = vrsqrt.f32 %v5440_v45  ;;  %v5426_v11 = vmul.f32 0.03125, %v5398_v3  ;;  %v5395_v27 = vpop.xlane.xlu1 %5394  ;;  %v5465_v30 = vmul.f32 %v8132_v47, %v10940_v62 }
0x139e   : > { %v5486_v38 = vmul.f32 %v11042_v60, %v5466_v55  ;;  %8143 = vrsqrt.f32 %v5439_v53  ;;  %v5425_v24 = vmul.f32 0.03125, %v5395_v27 }
0x139f   : > { %v8134_v0 = vpop.eup %8133  ;;  %v5442_v57 = vadd.f32 1e-05, %v5426_v11  ;;  %v5485_v33 = vmul.f32 %v11042_v60, %v5465_v30 }
0x13a0   : > { %v8136_v34 = vpop.eup %8135  ;;  %v5441_v9 = vadd.f32 1e-05, %v5425_v24  ;;  %v5404_v51 = vpop.xlane.xlu0 %5403  ;;  %v5468_v52 = vmul.f32 %v8134_v0, %v10947_v43  ;;  %v5506_v25 = vadd.f32 %v11046_v44, %v5486_v38 }
0x13a1   : > { %8145 = vrsqrt.f32 %v5442_v57  ;;  %v5428_v40 = vmul.f32 0.03125, %v5404_v51  ;;  %v5401_v6 = vpop.xlane.xlu1 %5400  ;;  %v5505_v36 = vadd.f32 %v11046_v44, %v5485_v33  ;;  %v5467_v62 = vmul.f32 %v8136_v34, %v10951_v2 }
0x13a2   : > { %8147 = vrsqrt.f32 %v5441_v9  ;;  %v5427_v29 = vmul.f32 0.03125, %v5401_v6  ;;  %v5488_v49 = vmul.f32 %v11042_v60, %v5468_v52 }
0x13a3   : > { %v8138_v32 = vpop.eup %8137  ;;  %v5444_v50 = vadd.f32 1e-05, %v5428_v40  ;;  %7516 = vmatprep.mubr.msk.f32.mxu0 %vm510_vm0, %v5505_v36  ;;  %v5487_v16 = vmul.f32 %v11042_v60, %v5467_v62 }
0x13a4   : > { %v8140_v43 = vpop.eup %8139  ;;  %v5443_v21 = vadd.f32 1e-05, %v5427_v29  ;;  %v5410_v46 = vpop.xlane.xlu0 %5409  ;;  %7517 = vmatmul.mubr.msk.f32.vlgmr.msra.gmra.mrb[128].mxu0 %vm510_vm0, %v5506_v25  ;;  %v5470_v4 = vmul.f32 %v8138_v32, %v10959_v7  ;;  %v5508_v54 = vadd.f32 %v11046_v44, %v5488_v49 }
0x13a5   : > { %8149 = vrsqrt.f32 %v5444_v50  ;;  %v5430_v2 = vmul.f32 0.03125, %v5410_v46  ;;  %v5407_v37 = vpop.xlane.xlu1 %5406  ;;  %v5507_v58 = vadd.f32 %v11046_v44, %v5487_v16  ;;  %v5469_v48 = vmul.f32 %v8140_v43, %v10963_v59 }
0x13a6   : > { %8151 = vrsqrt.f32 %v5443_v21  ;;  %v5429_v14 = vmul.f32 0.03125, %v5407_v37  ;;  %v5490_v41 = vmul.f32 %v11042_v60, %v5470_v4 }
0x13a7   : > { %v8142_v61 = vpop.eup %8141  ;;  %v5446_v28 = vadd.f32 1e-05, %v5430_v2  ;;  %7519 = vmatprep.mubr.msk.f32.mxu0 %vm510_vm0, %v5507_v58  ;;  %v5489_v8 = vmul.f32 %v11042_v60, %v5469_v48 }
0x13a8   : > { %v8144_v7 = vpop.eup %8143  ;;  %v5445_v56 = vadd.f32 1e-05, %v5429_v14  ;;  %v5416_v5 = vpop.xlane.xlu0 %5415  ;;  %7520 = vmatmul.mubr.msk.f32.gmra.mrb[130].mxu0 %vm510_vm0, %v5508_v54  ;;  %v5472_v12 = vmul.f32 %v8142_v61, %v10971_v39  ;;  %v5510_v26 = vadd.f32 %v11046_v44, %v5490_v41 }
0x13a9   : > { %8153 = vrsqrt.f32 %v5446_v28  ;;  %v5432_v59 = vmul.f32 0.03125, %v5416_v5  ;;  %v5413_v22 = vpop.xlane.xlu1 %5412  ;;  %v5509_v1 = vadd.f32 %v11046_v44, %v5489_v8  ;;  %v5471_v19 = vmul.f32 %v8144_v7, %v10975_v31 }
0x13aa   : > { %8155 = vrsqrt.f32 %v5445_v56  ;;  %v5431_v13 = vmul.f32 0.03125, %v5413_v22  ;;  %v5492_v45 = vmul.f32 %v11042_v60, %v5472_v12 }
0x13ab   : > { %v8146_v47 = vpop.eup %8145  ;;  %v5448_v55 = vadd.f32 1e-05, %v5432_v59  ;;  %7522 = vmatprep.mubr.msk.f32.mxu0 %vm510_vm0, %v5509_v1  ;;  %v5491_v53 = vmul.f32 %v11042_v60, %v5471_v19 }
0x13ac   : > { %v8148_v39 = vpop.eup %8147  ;;  %v5447_v3 = vadd.f32 1e-05, %v5431_v13  ;;  %7523 = vmatmul.mubr.msk.f32.gmra.mrb[132].mxu0 %vm510_vm0, %v5510_v26  ;;  %v5474_v63 = vmul.f32 %v8146_v47, %v10983_v18  ;;  %v5512_v27 = vadd.f32 %v11046_v44, %v5492_v45 }
0x13ad   : > { %8157 = vrsqrt.f32 %v5448_v55  ;;  %v5511_v31 = vadd.f32 %v11046_v44, %v5491_v53  ;;  %v5473_v11 = vmul.f32 %v8148_v39, %v10987_v42 }
0x13ae   : > { %8159 = vrsqrt.f32 %v5447_v3  ;;  %v5494_v30 = vmul.f32 %v11042_v60, %v5474_v63 }
0x13af   : > { %v8150_v38 = vpop.eup %8149  ;;  %7525 = vmatprep.mubr.msk.f32.mxu0 %vm510_vm0, %v5511_v31  ;;  %v5493_v24 = vmul.f32 %v11042_v60, %v5473_v11 }
0x13b0   : > { %v8152_v0 = vpop.eup %8151  ;;  %7526 = vmatmul.mubr.msk.f32.gmra.mrb[134].mxu0 %vm510_vm0, %v5512_v27  ;;  %v5476_v18 = vmul.f32 %v8150_v38, %v10995_v35  ;;  %v5514_v42 = vadd.f32 %v11046_v44, %v5494_v30 }
0x13b1   : > { %v5513_v57 = vadd.f32 %v11046_v44, %v5493_v24  ;;  %v5475_v33 = vmul.f32 %v8152_v0, %v10999_v17 }
0x13b2   : > { %v5496_v34 = vmul.f32 %v11042_v60, %v5476_v18 }
0x13b3   : > { %v8154_v9 = vpop.eup %8153  ;;  %7528 = vmatprep.mubr.msk.f32.mxu0 %vm510_vm0, %v5513_v57  ;;  %v5495_v51 = vmul.f32 %v11042_v60, %v5475_v33 }
0x13b4   : > { %v8156_v52 = vpop.eup %8155  ;;  %7529 = vmatmul.mubr.msk.f32.gmra.mrb[136].mxu0 %vm510_vm0, %v5514_v42  ;;  %v5478_v40 = vmul.f32 %v8154_v9, %v11007_v10  ;;  %v5516_v17 = vadd.f32 %v11046_v44, %v5496_v34 }
0x13b5   : > { %v5515_v35 = vadd.f32 %v11046_v44, %v5495_v51  ;;  %v5477_v6 = vmul.f32 %v8156_v52, %v11011_v15 }
0x13b6   : > { %v5498_v36 = vmul.f32 %v11042_v60, %v5478_v40 }
0x13b7   : > { %v8158_v62 = vpop.eup %8157  ;;  %7531 = vmatprep.mubr.msk.f32.mxu0 %vm510_vm0, %v5515_v35  ;;  %v5497_v25 = vmul.f32 %v11042_v60, %v5477_v6 }
0x13b8   : > { %v8160_v29 = vpop.eup %8159  ;;  %7532 = vmatmul.mubr.msk.f32.gmra.mrb[138].mxu0 %vm510_vm0, %v5516_v17  ;;  %v5480_v49 = vmul.f32 %v8158_v62, %v11019_v23  ;;  %v5518_v15 = vadd.f32 %v11046_v44, %v5498_v36  ;;  %v6361_v23 = vld [vmem:[%s11338_s7 + $0x20] ss:$0 sm:$0xff] }
0x13b9   : > { %v5517_v10 = vadd.f32 %v11046_v44, %v5497_v25  ;;  %v5479_v32 = vmul.f32 %v8160_v29, %v11023_v20 }
0x13ba   : > { %v5500_v50 = vmul.f32 %v11042_v60, %v5480_v49 }
0x13bb   : > { %7534 = vmatprep.mubr.msk.f32.mxu0 %vm510_vm0, %v5517_v10  ;;  %v5499_v16 = vmul.f32 %v11042_v60, %v5479_v32 }
0x13bc   : > { %7535 = vmatmul.mubr.msk.f32.gmra.mrb[140].mxu0 %vm510_vm0, %v5518_v15  ;;  %v5520_v21 = vadd.f32 %v11046_v44, %v5500_v50 }
0x13bd   : > { %v5519_v43 = vadd.f32 %v11046_v44, %v5499_v16 }
0x13bf   : > { %7537 = vmatprep.mubr.msk.f32.mxu0 %vm510_vm0, %v5519_v43 }
0x13c0   : > { %7538 = vmatmul.mubr.msk.f32.gmra.mrb[142].mxu0 %vm510_vm0, %v5520_v21 }
0x1477   : > { %v7518_v20 = vpop.f32.mrb[128].mxu0 }
0x1478   : > { %v11114_v46 = vadd.f32 %v7518_v20, %v6361_v23  ;;  %v5644_v4 = vpop.f32.mrb[129].mxu0 }
0x1479   : > { %v11116_v2 = vadd.f32 %v6361_v23, %v5644_v4 }
0x147a   : > { %5725 = vmax.xlane.f32.xlu0 %v11114_v46 }
0x147b   : > { %5723 = vmax.xlane.f32.xlu1 %v11116_v2  ;;  %v7521_v60 = vpop.f32.mrb[130].mxu0 }
0x147c   : > { %v11120_v44 = vadd.f32 %v7521_v60, %v6361_v23  ;;  %v5654_v37 = vpop.f32.mrb[131].mxu0 }
0x147d   : > { %v11122_v58 = vadd.f32 %v6361_v23, %v5654_v37 }
0x147e   : > { %5729 = vmax.xlane.f32.xlu0 %v11120_v44 }
0x147f   : > { %5727 = vmax.xlane.f32.xlu1 %v11122_v58  ;;  %v7524_v48 = vpop.f32.mrb[132].mxu0 }
0x1480   : > { %v11126_v14 = vadd.f32 %v7524_v48, %v6361_v23  ;;  %v5664_v54 = vpop.f32.mrb[133].mxu0 }
0x1481   : > { %v11128_v41 = vadd.f32 %v6361_v23, %v5664_v54 }
0x1482   : > { %5733 = vmax.xlane.f32.xlu0 %v11126_v14 }
0x1483   : > { %5731 = vmax.xlane.f32.xlu1 %v11128_v41  ;;  %v7527_v61 = vpop.f32.mrb[134].mxu0 }
0x1484   : > { %v11132_v28 = vadd.f32 %v7527_v61, %v6361_v23  ;;  %v5674_v8 = vpop.f32.mrb[135].mxu0 }
0x1485   : > { %v11134_v7 = vadd.f32 %v6361_v23, %v5674_v8 }
0x1486   : > { %5737 = vmax.xlane.f32.xlu0 %v11132_v28 }
0x1487   : > { %5735 = vmax.xlane.f32.xlu1 %v11134_v7  ;;  %v7530_v56 = vpop.f32.mrb[136].mxu0 }
0x1488   : > { %v11138_v5 = vadd.f32 %v7530_v56, %v6361_v23  ;;  %v5684_v12 = vpop.f32.mrb[137].mxu0 }
0x1489   : > { %v11140_v59 = vadd.f32 %v6361_v23, %v5684_v12 }
0x148a   : > { %5741 = vmax.xlane.f32.xlu0 %v11138_v5 }
0x148b   : > { %5739 = vmax.xlane.f32.xlu1 %v11140_v59  ;;  %v7533_v22 = vpop.f32.mrb[138].mxu0 }
0x148c   : > { %v11144_v1 = vadd.f32 %v7533_v22, %v6361_v23  ;;  %v5694_v19 = vpop.f32.mrb[139].mxu0 }
0x148d   : > { %v11146_v13 = vadd.f32 %v6361_v23, %v5694_v19 }
0x148e   : > { %5745 = vmax.xlane.f32.xlu0 %v11144_v1 }
0x148f   : > { %5743 = vmax.xlane.f32.xlu1 %v11146_v13  ;;  %v7536_v26 = vpop.f32.mrb[140].mxu0 }
0x1490   : > { %v11150_v45 = vadd.f32 %v7536_v26, %v6361_v23  ;;  %v5704_v47 = vpop.f32.mrb[141].mxu0 }
0x1491   : > { %v11152_v55 = vadd.f32 %v6361_v23, %v5704_v47 }
0x1492   : > { %5749 = vmax.xlane.f32.xlu0 %v11150_v45 }
0x1493   : > { %5747 = vmax.xlane.f32.xlu1 %v11152_v55  ;;  %v7539_v53 = vpop.f32.mrb[142].mxu0 }
0x1494   : > { %v11156_v39 = vadd.f32 %v7539_v53, %v6361_v23  ;;  %v5714_v3 = vpop.f32.mrb[143].mxu0 }
0x1495   : > { %v11158_v63 = vadd.f32 %v6361_v23, %v5714_v3 }
0x1496   : > { %5753 = vmax.xlane.f32.xlu0 %v11156_v39 }
0x1497   : > { %5751 = vmax.xlane.f32.xlu1 %v11158_v63 }
0x1507   : > { %v11162_v31 = vpop.xlane.xlu0 %5725 }
0x1508   : > { %v5756_v11 = vsub.f32 %v11114_v46, %v11162_v31  ;;  %v11166_v27 = vpop.xlane.xlu1 %5723 }
0x1509   : > { %v5755_v30 = vsub.f32 %v11116_v2, %v11166_v27 }
0x150a   : > { %v5773_v38 = vmul.f32 1.442695, %v5756_v11 }
0x150b   : > { %v5771_v24 = vmul.f32 1.442695, %v5755_v30  ;;  %v11170_v0 = vpop.xlane.xlu0 %5729 }
0x150c   : > { %8161 = vpow2.f32 %v5773_v38  ;;  %v5758_v18 = vsub.f32 %v11120_v44, %v11170_v0  ;;  %v11174_v57 = vpop.xlane.xlu1 %5727 }
0x150d   : > { %8163 = vpow2.f32 %v5771_v24  ;;  %v5757_v33 = vsub.f32 %v11122_v58, %v11174_v57 }
0x150e   : > { %v5777_v42 = vmul.f32 1.442695, %v5758_v18 }
0x150f   : > { %v5775_v34 = vmul.f32 1.442695, %v5757_v33  ;;  %v11178_v9 = vpop.xlane.xlu0 %5733 }
0x1510   : > { %8165 = vpow2.f32 %v5777_v42  ;;  %v5760_v51 = vsub.f32 %v11126_v14, %v11178_v9  ;;  %v11182_v52 = vpop.xlane.xlu1 %5731 }
0x1511   : > { %8167 = vpow2.f32 %v5775_v34  ;;  %v5759_v40 = vsub.f32 %v11128_v41, %v11182_v52 }
0x1512   : > { %v5781_v35 = vmul.f32 1.442695, %v5760_v51 }
0x1513   : > { %v5779_v6 = vmul.f32 1.442695, %v5759_v40  ;;  %v11186_v17 = vpop.xlane.xlu0 %5737 }
0x1514   : > { %8169 = vpow2.f32 %v5781_v35  ;;  %v5762_v36 = vsub.f32 %v11132_v28, %v11186_v17  ;;  %v11190_v62 = vpop.xlane.xlu1 %5735 }
0x1515   : > { %8171 = vpow2.f32 %v5779_v6  ;;  %v5761_v25 = vsub.f32 %v11134_v7, %v11190_v62 }
0x1516   : > { %v8162_v29 = vpop.eup %8161  ;;  %v5785_v49 = vmul.f32 1.442695, %v5762_v36 }
0x1517   : > { %v8164_v10 = vpop.eup %8163  ;;  %v5783_v32 = vmul.f32 1.442695, %v5761_v25  ;;  %v11194_v15 = vpop.xlane.xlu0 %5741  ;;  %5805 = vadd.xlane.f32.xlu0 %v8162_v29 }
0x1518   : > { %8173 = vpow2.f32 %v5785_v49  ;;  %v5764_v50 = vsub.f32 %v11138_v5, %v11194_v15  ;;  %5803 = vadd.xlane.f32.xlu1 %v8164_v10  ;;  %v11198_v16 = vpop.xlane.xlu1 %5739 }
0x1519   : > { %8175 = vpow2.f32 %v5783_v32  ;;  %v5763_v43 = vsub.f32 %v11140_v59, %v11198_v16 }
0x151a   : > { %v8166_v21 = vpop.eup %8165  ;;  %v5789_v23 = vmul.f32 1.442695, %v5764_v50 }
0x151b   : > { %v8168_v20 = vpop.eup %8167  ;;  %v5787_v4 = vmul.f32 1.442695, %v5763_v43  ;;  %v11202_v60 = vpop.xlane.xlu0 %5745  ;;  %5809 = vadd.xlane.f32.xlu0 %v8166_v21 }
0x151c   : > { %8177 = vpow2.f32 %v5789_v23  ;;  %v5766_v37 = vsub.f32 %v11144_v1, %v11202_v60  ;;  %5807 = vadd.xlane.f32.xlu1 %v8168_v20  ;;  %v11206_v48 = vpop.xlane.xlu1 %5743 }
0x151d   : > { %8179 = vpow2.f32 %v5787_v4  ;;  %v5765_v54 = vsub.f32 %v11146_v13, %v11206_v48 }
0x151e   : > { %v8170_v61 = vpop.eup %8169  ;;  %v5793_v8 = vmul.f32 1.442695, %v5766_v37 }
0x151f   : > { %v8172_v56 = vpop.eup %8171  ;;  %v5791_v12 = vmul.f32 1.442695, %v5765_v54  ;;  %v11210_v22 = vpop.xlane.xlu0 %5749  ;;  %5813 = vadd.xlane.f32.xlu0 %v8170_v61 }
0x1520   : > { %8181 = vpow2.f32 %v5793_v8  ;;  %v5768_v19 = vsub.f32 %v11150_v45, %v11210_v22  ;;  %5811 = vadd.xlane.f32.xlu1 %v8172_v56  ;;  %v11214_v26 = vpop.xlane.xlu1 %5747 }
0x1521   : > { %8183 = vpow2.f32 %v5791_v12  ;;  %v5767_v47 = vsub.f32 %v11152_v55, %v11214_v26 }
0x1522   : > { %v8174_v53 = vpop.eup %8173  ;;  %v5797_v3 = vmul.f32 1.442695, %v5768_v19 }
0x1523   : > { %v8176_v11 = vpop.eup %8175  ;;  %v5795_v30 = vmul.f32 1.442695, %v5767_v47  ;;  %5817 = vadd.xlane.f32.xlu0 %v8174_v53  ;;  %v11218_v38 = vpop.xlane.xlu0 %5753 }
0x1524   : > { %8185 = vpow2.f32 %v5797_v3  ;;  %v5770_v24 = vsub.f32 %v11156_v39, %v11218_v38  ;;  %5815 = vadd.xlane.f32.xlu1 %v8176_v11  ;;  %v11222_v18 = vpop.xlane.xlu1 %5751 }
0x1525   : > { %8187 = vpow2.f32 %v5795_v30  ;;  %v5769_v33 = vsub.f32 %v11158_v63, %v11222_v18 }
0x1526   : > { %v8178_v42 = vpop.eup %8177  ;;  %v5801_v34 = vmul.f32 1.442695, %v5770_v24 }
0x1527   : > { %v8180_v51 = vpop.eup %8179  ;;  %v5799_v40 = vmul.f32 1.442695, %v5769_v33  ;;  %5821 = vadd.xlane.f32.xlu0 %v8178_v42 }
0x1528   : > { %8189 = vpow2.f32 %v5801_v34  ;;  %5819 = vadd.xlane.f32.xlu1 %v8180_v51 }
0x1529   : > { %8191 = vpow2.f32 %v5799_v40 }
0x152a   : > { %v8182_v35 = vpop.eup %8181 }
0x152b   : > { %v8184_v6 = vpop.eup %8183  ;;  %5825 = vadd.xlane.f32.xlu0 %v8182_v35 }
0x152c   : > { %5823 = vadd.xlane.f32.xlu1 %v8184_v6 }
0x152e   : > { %v8186_v36 = vpop.eup %8185 }
0x152f   : > { %v8188_v25 = vpop.eup %8187  ;;  %5829 = vadd.xlane.f32.xlu0 %v8186_v36 }
0x1530   : > { %5827 = vadd.xlane.f32.xlu1 %v8188_v25 }
0x1532   : > { %v8190_v29 = vpop.eup %8189 }
0x1533   : > { %v8192_v49 = vpop.eup %8191  ;;  %5833 = vadd.xlane.f32.xlu0 %v8190_v29 }
0x1534   : > { %5831 = vadd.xlane.f32.xlu1 %v8192_v49 }
0x15a4   : > { %v5806_v10 = vpop.xlane.xlu0 %5805 }
0x15a5   : > { %8193 = vlog2.f32 %v5806_v10  ;;  %v5804_v32 = vpop.xlane.xlu1 %5803 }
0x15a6   : > { %8195 = vlog2.f32 %v5804_v32 }
0x15a8   : > { %v5810_v50 = vpop.xlane.xlu0 %5809 }
0x15a9   : > { %8197 = vlog2.f32 %v5810_v50  ;;  %v5808_v43 = vpop.xlane.xlu1 %5807 }
0x15aa   : > { %8199 = vlog2.f32 %v5808_v43 }
0x15ac   : > { %v5814_v21 = vpop.xlane.xlu0 %5813 }
0x15ad   : > { %8201 = vlog2.f32 %v5814_v21  ;;  %v5812_v23 = vpop.xlane.xlu1 %5811 }
0x15ae   : > { %8203 = vlog2.f32 %v5812_v23 }
0x15af   : > { %v8194_v20 = vpop.eup %8193 }
0x15b0   : > { %v8196_v4 = vpop.eup %8195  ;;  %v5838_v37 = vmul.f32 0.6931472, %v8194_v20  ;;  %v5818_v54 = vpop.xlane.xlu0 %5817 }
0x15b1   : > { %v5836_v61 = vmul.f32 0.6931472, %v8196_v4  ;;  %8205 = vlog2.f32 %v5818_v54  ;;  %v5816_v8 = vpop.xlane.xlu1 %5815 }
0x15b2   : > { %v5868_v56 = vadd.f32 %v5838_v37, %v11162_v31  ;;  %8207 = vlog2.f32 %v5816_v8 }
0x15b3   : > { %v8198_v12 = vpop.eup %8197  ;;  %v5867_v19 = vadd.f32 %v5836_v61, %v11166_v27 }
0x15b4   : > { %v8200_v47 = vpop.eup %8199  ;;  %v5884_v53 = vsub.f32 %v11114_v46, %v5868_v56  ;;  %v5842_v3 = vmul.f32 0.6931472, %v8198_v12  ;;  %v5822_v11 = vpop.xlane.xlu0 %5821 }
0x15b5   : > { %v5883_v30 = vsub.f32 %v11116_v2, %v5867_v19  ;;  %v5840_v24 = vmul.f32 0.6931472, %v8200_v47  ;;  %8209 = vlog2.f32 %v5822_v11  ;;  %v5820_v33 = vpop.xlane.xlu1 %5819 }
0x15b6   : > { %5900 = vst [vmem:[%s11233_s19 + $0x8] sm:$0xff] %v5884_v53  ;;  %v5870_v31 = vadd.f32 %v5842_v3, %v11170_v0  ;;  %8211 = vlog2.f32 %v5820_v33 }
0x15b7   : > { %v8202_v27 = vpop.eup %8201  ;;  %5899 = vst [vmem:[%s11233_s19] sm:$0xff] %v5883_v30  ;;  %v5869_v46 = vadd.f32 %v5840_v24, %v11174_v57 }
0x15b8   : > { %v8204_v42 = vpop.eup %8203  ;;  %v5886_v2 = vsub.f32 %v11120_v44, %v5870_v31  ;;  %v5846_v34 = vmul.f32 0.6931472, %v8202_v27  ;;  %v5826_v51 = vpop.xlane.xlu0 %5825 }
0x15b9   : > { %v5885_v40 = vsub.f32 %v11122_v58, %v5869_v46  ;;  %v5844_v35 = vmul.f32 0.6931472, %v8204_v42  ;;  %8213 = vlog2.f32 %v5826_v51  ;;  %v5824_v6 = vpop.xlane.xlu1 %5823 }
0x15ba   : > { %5902 = vst [vmem:[%s11233_s19 + $0x18] sm:$0xff] %v5886_v2  ;;  %v5872_v0 = vadd.f32 %v5846_v34, %v11178_v9  ;;  %8215 = vlog2.f32 %v5824_v6 }
0x15bb   : > { %v8206_v36 = vpop.eup %8205  ;;  %5901 = vst [vmem:[%s11233_s19 + $0x10] sm:$0xff] %v5885_v40  ;;  %v5871_v57 = vadd.f32 %v5844_v35, %v11182_v52 }
0x15bc   : > { %v8208_v25 = vpop.eup %8207  ;;  %v5888_v44 = vsub.f32 %v11126_v14, %v5872_v0  ;;  %v5850_v29 = vmul.f32 0.6931472, %v8206_v36  ;;  %v5830_v49 = vpop.xlane.xlu0 %5829 }
0x15bd   : > { %v5887_v58 = vsub.f32 %v11128_v41, %v5871_v57  ;;  %v5848_v10 = vmul.f32 0.6931472, %v8208_v25  ;;  %8217 = vlog2.f32 %v5830_v49  ;;  %v5828_v32 = vpop.xlane.xlu1 %5827 }
0x15be   : > { %5904 = vst [vmem:[%s11233_s19 + $0x28] sm:$0xff] %v5888_v44  ;;  %v5874_v9 = vadd.f32 %v5850_v29, %v11186_v17  ;;  %8219 = vlog2.f32 %v5828_v32 }
0x15bf   : > { %v8210_v50 = vpop.eup %8209  ;;  %5903 = vst [vmem:[%s11233_s19 + $0x20] sm:$0xff] %v5887_v58  ;;  %v5873_v52 = vadd.f32 %v5848_v10, %v11190_v62 }
0x15c0   : > { %v8212_v43 = vpop.eup %8211  ;;  %v5890_v14 = vsub.f32 %v11132_v28, %v5874_v9  ;;  %v5854_v21 = vmul.f32 0.6931472, %v8210_v50  ;;  %v5834_v23 = vpop.xlane.xlu0 %5833 }
0x15c1   : > { %v5889_v41 = vsub.f32 %v11134_v7, %v5873_v52  ;;  %v5852_v20 = vmul.f32 0.6931472, %v8212_v43  ;;  %8221 = vlog2.f32 %v5834_v23  ;;  %v5832_v4 = vpop.xlane.xlu1 %5831 }
0x15c2   : > { %5906 = vst [vmem:[%s11233_s19 + $0x38] sm:$0xff] %v5890_v14  ;;  %v5876_v17 = vadd.f32 %v5854_v21, %v11194_v15  ;;  %8223 = vlog2.f32 %v5832_v4 }
0x15c3   : > { %v8214_v37 = vpop.eup %8213  ;;  %5905 = vst [vmem:[%s11233_s19 + $0x30] sm:$0xff] %v5889_v41  ;;  %v5875_v62 = vadd.f32 %v5852_v20, %v11198_v16 }
0x15c4   : > { %v8216_v54 = vpop.eup %8215  ;;  %v5892_v28 = vsub.f32 %v11138_v5, %v5876_v17  ;;  %v5858_v61 = vmul.f32 0.6931472, %v8214_v37 }
0x15c5   : > { %v5891_v7 = vsub.f32 %v11140_v59, %v5875_v62  ;;  %v5856_v8 = vmul.f32 0.6931472, %v8216_v54 }
0x15c6   : > { %5908 = vst [vmem:[%s11233_s19 + $0x48] sm:$0xff] %v5892_v28  ;;  %v5878_v56 = vadd.f32 %v5858_v61, %v11202_v60 }
0x15c7   : > { %v8218_v12 = vpop.eup %8217  ;;  %5907 = vst [vmem:[%s11233_s19 + $0x40] sm:$0xff] %v5891_v7  ;;  %v5877_v15 = vadd.f32 %v5856_v8, %v11206_v48 }
0x15c8   : > { %v8220_v19 = vpop.eup %8219  ;;  %v5894_v16 = vsub.f32 %v11144_v1, %v5878_v56  ;;  %v5862_v47 = vmul.f32 0.6931472, %v8218_v12 }
0x15c9   : > { %v5893_v5 = vsub.f32 %v11146_v13, %v5877_v15  ;;  %v5860_v53 = vmul.f32 0.6931472, %v8220_v19 }
0x15ca   : > { %5910 = vst [vmem:[%s11233_s19 + $0x58] sm:$0xff] %v5894_v16  ;;  %v5880_v59 = vadd.f32 %v5862_v47, %v11210_v22 }
0x15cb   : > { %v8222_v3 = vpop.eup %8221  ;;  %5909 = vst [vmem:[%s11233_s19 + $0x50] sm:$0xff] %v5893_v5  ;;  %v5879_v60 = vadd.f32 %v5860_v53, %v11214_v26 }
0x15cc   : > { %v8224_v48 = vpop.eup %8223  ;;  %v5896_v11 = vsub.f32 %v11150_v45, %v5880_v59  ;;  %v5866_v1 = vmul.f32 0.6931472, %v8222_v3 }
0x15cd   : > { %v5895_v30 = vsub.f32 %v11152_v55, %v5879_v60  ;;  %v5864_v24 = vmul.f32 0.6931472, %v8224_v48 }
0x15ce   : > { %5912 = vst [vmem:[%s11233_s19 + $0x68] sm:$0xff] %v5896_v11  ;;  %v5882_v13 = vadd.f32 %v5866_v1, %v11218_v38 }
0x15cf   : > { %5911 = vst [vmem:[%s11233_s19 + $0x60] sm:$0xff] %v5895_v30  ;;  %v5881_v22 = vadd.f32 %v5864_v24, %v11222_v18 }
0x15d0   : > { %v5898_v26 = vsub.f32 %v11156_v39, %v5882_v13 }
0x15d1   : > { %v5897_v45 = vsub.f32 %v11158_v63, %v5881_v22 }
0x15d2   : > { %5914 = vst [vmem:[%s11233_s19 + $0x78] sm:$0xff] %v5898_v26 }
0x15d3   : > { %5913 = vst [vmem:[%s11233_s19 + $0x70] sm:$0xff] %v5897_v45 }
0x15d4   : > { %8240 = shalt.err (!%p8237_p3)
}
0x15d5   : > { %s8241_s12 = scalar_lea.hbm %s11281_s23, 2048  ;;  %s8245_s19 = scalar_lea.hbm %s11339_s8, 4096 }
0x15d6   : > { %p8242_p4 = scmp.ne.s32.totalorder %s11281_s23, %s8241_s12  ;;  %p8246_p9 = scmp.lt.u32.totalorder %s11281_s23, %s11339_s8 }
0x15d7   : > { %p8247_p10 = scmp.lt.u32.totalorder %s8245_s19, %s8241_s12  ;;  %p8249_p12 = scmp.lt.u32.totalorder %s8241_s12, %s11281_s23 }
0x15d8   : > { %p8243_p7 = pnand %p8242_p4, %p8381_p5 }
0x15d9   : > { %p8248_p11 = por %p8247_p10, %p8246_p9 }
0x15da   : > { %p8244_p8 = pneg %p8243_p7 }
0x15db   : > { %p8250_p13 = por %p8249_p12, %p8248_p11 }
0x15dd   : > { %p8251_p0 = pnand %p8250_p13, %p8244_p8 }
0x15df   : > { %8254 = shalt.err (!%p8251_p0)
}
0x15e0   : > { %s8296_s22 = smov 128   ;;  %s8297_s24 = smov 8  }
0x15e1   : > { %7858 = dma.vmem_to_hbm [thread:$0]  (%p8381_p5), %s11283_s21, 2048, %s11281_s23, %s11290_s9, %s8296_s22, %s8296_s22, %s8297_s24  }
0x15e2 PF: > { %p7864_p1 = scmp.ge.s32.totalorder %s8289_s30, 2  ;;  %s5944_s25 = sand.u32 1, %s8277_s27  }
0x15e3   : > { %s5945_s26 = scalar_lea.sflag [#allocation3], %s5944_s25 }
0x15e4   : > { %p7861_p2 = pnand %p7864_p1, %p8385_p6 }
0x15e6   : > { %8272 = dma.done.wait (!%p7861_p2), %s5945_s26, 2048  }
0x15e7   : > { %8274 = vsyncadd (!%p7861_p2), %s5945_s26, 4294965248  ;;  %p18_p3 = scmp.ge.s32.totalorder %s8368_s11, 4   ;;  %s11438_s27 = smov %s8281_s28 }
0x15e8   : > { %s11439_s28 = smov %s8285_s29  ;;  %s11440_s29 = smov %s8379_s14 }
0x15e9   : > { %s11441_s30 = smov %s8368_s11  ;;  %20 = sbr.rel (!%p18_p3) target bundleno = 3 (0x3), region = 97 }
0x15f0   :  { %5950 = vsyncpa [#allocation3], 1 }
0x15f1   :  { %5952 = vsyncpa [#allocation3 + $0x1], 1 }

</bundles_post_ra>
